<compile_context>
chip_gen: v5e
topology: v5e:2x2
jax: 0.10.0
libtpu: 0.0.40
codegen_flags: <defaults>
</compile_context>

<pallas_src>
import functools

import jax
import jax.numpy as jnp
from jax.experimental import pallas as pl
from jax.experimental.pallas import tpu as pltpu

EPS = 1e-5


def _conv_stats_kernel(x0_ref, x1_ref, x2_ref, w_ref, out_ref, stats_ref, *,
                       H, W, Cout):
    """Pass 1: upsample-folded conv (8 parity combos) + partial BN statistics.

    x0/x1/x2_ref: (Rp_pad, Cin) bf16  - padded depth planes d, d+1, d+2 (flattened rows)
    w_ref:        (64, Cin, Cout) bf16 - combined per-parity tap weights
    out_ref:      (8, H, W, Cout) bf16 - conv result per parity combo
    stats_ref:    (2, Cout) f32        - per-(n, d) partial [sum; sum_sq]
    """
    Wp2 = W + 2
    Rrows = H * Wp2
    planes = (x0_ref, x1_ref, x2_ref)

    # Row-validity mask (flattened tap window carries 2 junk columns per H row);
    # hoisted out of the combo loop.
    r = jax.lax.broadcasted_iota(jnp.int32, (Rrows, 1), 0)
    row_valid = (r % Wp2) < W

    sum_acc = jnp.zeros((1, Cout), jnp.float32)
    sq_acc = jnp.zeros((1, Cout), jnp.float32)

    for c in range(8):                                  # combo = (pd, ph, pw)
        pd, ph, pw = (c >> 2) & 1, (c >> 1) & 1, c & 1
        acc = jnp.zeros((Rrows, Cout), jnp.float32)
        for td in range(2):
            xr = planes[pd + td]                        # depth tap plane
            for th in range(2):
                for tw in range(2):
                    start = (ph + th) * Wp2 + (pw + tw)  # static row offset
                    lhs = xr[start:start + Rrows, :]
                    wt = w_ref[c * 8 + td * 4 + th * 2 + tw]
                    acc = acc + jnp.dot(lhs, wt,
                                        preferred_element_type=jnp.float32)
        # Partial BN stats from the live f32 accumulator (junk rows masked).
        masked = jnp.where(row_valid, acc, 0.0)
        sum_acc = sum_acc + jnp.sum(masked, axis=0, keepdims=True)
        sq_acc = sq_acc + jnp.sum(masked * acc, axis=0, keepdims=True)
        # Strip junk columns and store the bf16 conv intermediate (lane dense).
        y = acc.reshape(H, Wp2, Cout)[:, :W, :]
        out_ref[c] = y.astype(out_ref.dtype)

    stats_ref[...] = jnp.concatenate([sum_acc, sq_acc], axis=0)


def _bn_relu_kernel(y_ref, scale_ref, shift_ref, o_ref):
    """Pass 2: folded BatchNorm (scale/shift) + ReLU, bf16 -> f32."""
    y = y_ref[...].astype(jnp.float32)
    o_ref[...] = jnp.maximum(y * scale_ref[...] + shift_ref[...], 0.0)


def up_conv_forward(x_ncdhw, w_oidhw, bias, gamma, beta):
    """x_ncdhw: (N, Cin, D, H, W) f32. Returns (N, Cout, 2D, 2H, 2W) f32."""
    del bias  # exactly cancelled by training-mode BatchNorm mean subtraction

    N, Cin, D, H, W = x_ncdhw.shape
    Cout = w_oidhw.shape[0]
    Wp2 = W + 2
    Rp = (H + 2) * Wp2
    Rrows = H * Wp2
    # Tap slices of length H*Wp2 start at up to 2*Wp2 + 2 -> pad the flattened
    # row axis so every static slice stays in bounds (rounded to a sublane mult).
    Rp_pad = ((Rp + 2 + 7) // 8) * 8

    # ---- glue (ORIGINAL resolution only, bf16 before any padding) ----
    xt = jnp.transpose(x_ncdhw, (0, 2, 3, 4, 1)).astype(jnp.bfloat16)  # N,D,H,W,Cin
    xp = jnp.pad(xt, ((0, 0), (1, 1), (1, 1), (1, 1), (0, 0)))         # +1 halo
    x_rows = xp.reshape(N, D + 2, Rp, Cin)
    x_rows = jnp.pad(x_rows, ((0, 0), (0, 0), (0, Rp_pad - Rp), (0, 0)))

    # ---- glue: fold the nearest-x2 upsample into the conv weights ----
    # Per axis: even output -> taps (w0, w1+w2); odd output -> taps (w0+w1, w2).
    comb = jnp.array([[[1., 0., 0.], [0., 1., 1.]],
                      [[1., 1., 0.], [0., 0., 1.]]], jnp.float32)  # (parity, tap, k)
    wc = jnp.einsum('pak,qbl,rcm,oiklm->pqrabcio', comb, comb, comb,
                    w_oidhw.astype(jnp.float32))      # (2,2,2, 2,2,2, Cin, Cout)
    w_taps = wc.reshape(64, Cin, Cout).astype(jnp.bfloat16)

    conv_kernel = functools.partial(_conv_stats_kernel, H=H, W=W, Cout=Cout)

    flops = 2 * N * D * 64 * Rrows * Cin * Cout
    bytes_accessed = (N * D * 3 * Rp_pad * Cin * 2       # 3 planes per (n, d)
                      + 64 * Cin * Cout * 2               # resident weights
                      + N * D * 8 * H * W * Cout * 2      # bf16 intermediate write
                      + N * D * 2 * Cout * 4)             # partial stats write

    conv_out, stats = pl.pallas_call(
        conv_kernel,
        out_shape=(jax.ShapeDtypeStruct((N, D, 8, H, W, Cout), jnp.bfloat16),
                   jax.ShapeDtypeStruct((N, D, 2, Cout), jnp.float32)),
        grid_spec=pltpu.PrefetchScalarGridSpec(
            num_scalar_prefetch=0,
            grid=(N, D),
            in_specs=[
                pl.BlockSpec((None, None, Rp_pad, Cin), lambda n, d: (n, d, 0, 0)),
                pl.BlockSpec((None, None, Rp_pad, Cin), lambda n, d: (n, d + 1, 0, 0)),
                pl.BlockSpec((None, None, Rp_pad, Cin), lambda n, d: (n, d + 2, 0, 0)),
                # full combined weights, constant index_map -> fetched once, resident
                pl.BlockSpec((64, Cin, Cout), lambda n, d: (0, 0, 0)),
            ],
            out_specs=[
                pl.BlockSpec((None, None, 8, H, W, Cout),
                             lambda n, d: (n, d, 0, 0, 0, 0)),
                pl.BlockSpec((None, None, 2, Cout), lambda n, d: (n, d, 0, 0)),
            ],
        ),
        compiler_params=pltpu.CompilerParams(
            dimension_semantics=("parallel", "parallel"),
            vmem_limit_bytes=32 * 1024 * 1024),
        cost_estimate=pl.CostEstimate(flops=flops, transcendentals=0,
                                      bytes_accessed=bytes_accessed),
    )(x_rows, x_rows, x_rows, w_taps)

    # ---- glue: fold BN (training-mode batch stats) into per-channel scale/shift ----
    total = jnp.sum(stats, axis=(0, 1))                   # (2, Cout), f32
    count = float(N * D * 8 * H * W)                      # == N * 2D * 2H * 2W
    mean = total[0] / count
    var = total[1] / count - mean * mean                  # biased var (BN forward)
    inv_std = jax.lax.rsqrt(var + EPS)
    scale = (gamma * inv_std).reshape(1, Cout).astype(jnp.float32)
    shift = (beta - mean * gamma * inv_std).reshape(1, Cout).astype(jnp.float32)

    out6 = pl.pallas_call(
        _bn_relu_kernel,
        out_shape=jax.ShapeDtypeStruct((N, D, 8, H, W, Cout), jnp.float32),
        grid_spec=pltpu.PrefetchScalarGridSpec(
            num_scalar_prefetch=0,
            grid=(N, D),
            in_specs=[
                pl.BlockSpec((None, None, 8, H, W, Cout),
                             lambda n, d: (n, d, 0, 0, 0, 0)),
                pl.BlockSpec((1, Cout), lambda n, d: (0, 0)),
                pl.BlockSpec((1, Cout), lambda n, d: (0, 0)),
            ],
            out_specs=pl.BlockSpec((None, None, 8, H, W, Cout),
                                   lambda n, d: (n, d, 0, 0, 0, 0)),
        ),
        compiler_params=pltpu.CompilerParams(
            dimension_semantics=("parallel", "parallel"),
            vmem_limit_bytes=32 * 1024 * 1024),
    )(conv_out, scale, shift)

    # ---- glue: parity interleave is a free reshape, folded into the single
    #            NDHWC->NCDHW transpose that is needed anyway ----
    out = out6.reshape(N, D, 2, 2, 2, H, W, Cout)          # (n,d,pd,ph,pw,h,w,c)
    out = jnp.transpose(out, (0, 7, 1, 2, 5, 3, 6, 4))     # (n,c,d,pd,h,ph,w,pw)
    return out.reshape(N, Cout, 2 * D, 2 * H, 2 * W)


def reference_forward(x_ncdhw, w_oidhw, bias, gamma, beta):
    """Pure-JAX (XLA) reference mirroring the PyTorch module forward."""
    x = jnp.repeat(x_ncdhw, 2, axis=2)
    x = jnp.repeat(x, 2, axis=3)
    x = jnp.repeat(x, 2, axis=4)
    y = jax.lax.conv_general_dilated(
        x, w_oidhw, window_strides=(1, 1, 1),
        padding=((1, 1), (1, 1), (1, 1)),
        dimension_numbers=('NCDHW', 'OIDHW', 'NCDHW'))
    y = y + bias.reshape(1, -1, 1, 1, 1)
    mean = jnp.mean(y, axis=(0, 2, 3, 4), keepdims=True)
    var = jnp.mean((y - mean) ** 2, axis=(0, 2, 3, 4), keepdims=True)
    y = (y - mean) * jax.lax.rsqrt(var + EPS)
    y = y * gamma.reshape(1, -1, 1, 1, 1) + beta.reshape(1, -1, 1, 1, 1)
    return jnp.maximum(y, 0.0)


if __name__ == "__main__":
    # Small deterministic setup: batch=2, in_ch=4, out_ch=8, spatial 4^3 (-> 8^3 out).
    N, Cin, Cout, D, H, W = 2, 4, 8, 4, 4, 4
    key = jax.random.PRNGKey(0)
    kx, kw, kb, kg, kbt = jax.random.split(key, 5)

    x = jax.random.normal(kx, (N, Cin, D, H, W), dtype=jnp.float32)

    fan_in = Cin * 3 * 3 * 3
    bound = 1.0 / (fan_in ** 0.5)
    w = jax.random.uniform(kw, (Cout, Cin, 3, 3, 3), jnp.float32, -bound, bound)
    b = jax.random.uniform(kb, (Cout,), jnp.float32, -bound, bound)
    gamma = 1.0 + 0.1 * jax.random.normal(kg, (Cout,), jnp.float32)
    beta = 0.1 * jax.random.normal(kbt, (Cout,), jnp.float32)

    out = jax.block_until_ready(jax.jit(up_conv_forward)(x, w, b, gamma, beta))
    ref = jax.block_until_ready(jax.jit(reference_forward)(x, w, b, gamma, beta))

    assert out.shape == (N, Cout, 2 * D, 2 * H, 2 * W), out.shape
    # bf16 MXU operands / bf16 intermediate -> slightly loose tolerance.
    max_err = float(jnp.abs(out - ref).max())
    assert jnp.allclose(out, ref, atol=2e-2, rtol=2e-2), max_err

    print("KERNEL_OK")
</pallas_src>

<mosaic_0001>
module attributes {stable_mosaic.version = 11 : i64} {
  func.func @_bn_relu_kernel(%arg0: i32, %arg1: i32, %arg2: memref<1x1x8x4x4x8xbf16, #tpu.memory_space<vmem>>, %arg3: memref<1x8xf32, #tpu.memory_space<vmem>>, %arg4: memref<1x8xf32, #tpu.memory_space<vmem>>, %arg5: memref<1x1x8x4x4x8xf32, #tpu.memory_space<vmem>>) attributes {dimension_semantics = [#tpu.dimension_semantics<parallel>, #tpu.dimension_semantics<parallel>], iteration_bounds = array<i64: 2, 4>, scalar_prefetch = 0 : i64, scratch_operands = 0 : i64, tpu.core_type = #tpu.core_type<tc>, window_params = [{transform_indices = @transform_0, window_bounds = array<i64: 1, 1, 8, 4, 4, 8>}, {pipeline_mode = #tpu.pipeline_mode<synchronous>, transform_indices = @transform_1, window_bounds = array<i64: 1, 8>}, {pipeline_mode = #tpu.pipeline_mode<synchronous>, transform_indices = @transform_2, window_bounds = array<i64: 1, 8>}, {transform_indices = @transform_3, window_bounds = array<i64: 1, 1, 8, 4, 4, 8>}]} {
    %c0 = arith.constant 0 : index
    %c0_0 = arith.constant 0 : index
    %c0_1 = arith.constant 0 : index
    %c0_2 = arith.constant 0 : index
    %c0_3 = arith.constant 0 : index
    %c0_4 = arith.constant 0 : index
    %0 = vector.load %arg2[%c0, %c0_0, %c0_1, %c0_2, %c0_3, %c0_4] : memref<1x1x8x4x4x8xbf16, #tpu.memory_space<vmem>>, vector<1x1x8x4x4x8xbf16>
    %1 = vector.shape_cast %0 : vector<1x1x8x4x4x8xbf16> to vector<8x4x4x8xbf16>
    %2 = arith.extf %1 : vector<8x4x4x8xbf16> to vector<8x4x4x8xf32>
    %c0_5 = arith.constant 0 : index
    %c0_6 = arith.constant 0 : index
    %3 = vector.load %arg3[%c0_5, %c0_6] : memref<1x8xf32, #tpu.memory_space<vmem>>, vector<1x8xf32>
    %4 = vector.shape_cast %3 : vector<1x8xf32> to vector<1x1x1x8xf32>
    %5 = vector.broadcast %4 : vector<1x1x1x8xf32> to vector<8x4x4x8xf32>
    %6 = arith.mulf %2, %5 : vector<8x4x4x8xf32>
    %c0_7 = arith.constant 0 : index
    %c0_8 = arith.constant 0 : index
    %7 = vector.load %arg4[%c0_7, %c0_8] : memref<1x8xf32, #tpu.memory_space<vmem>>, vector<1x8xf32>
    %8 = vector.shape_cast %7 : vector<1x8xf32> to vector<1x1x1x8xf32>
    %9 = vector.broadcast %8 : vector<1x1x1x8xf32> to vector<8x4x4x8xf32>
    %10 = arith.addf %6, %9 : vector<8x4x4x8xf32>
    %cst = arith.constant 0.000000e+00 : f32
    %11 = vector.broadcast %cst : f32 to vector<8x4x4x8xf32>
    %12 = arith.maximumf %10, %11 : vector<8x4x4x8xf32>
    %c0_9 = arith.constant 0 : index
    %c0_10 = arith.constant 0 : index
    %c0_11 = arith.constant 0 : index
    %c0_12 = arith.constant 0 : index
    %c0_13 = arith.constant 0 : index
    %c0_14 = arith.constant 0 : index
    %13 = vector.load %arg5[%c0_9, %c0_10, %c0_11, %c0_12, %c0_13, %c0_14] : memref<1x1x8x4x4x8xf32, #tpu.memory_space<vmem>>, vector<1x1x8x4x4x8xf32>
    %14 = vector.shape_cast %13 : vector<1x1x8x4x4x8xf32> to vector<8x4x4x8xf32>
    %15 = vector.shape_cast %12 : vector<8x4x4x8xf32> to vector<1x1x8x4x4x8xf32>
    tpu.vector_store %arg5[%c0_9, %c0_10, %c0_11, %c0_12, %c0_13, %c0_14], %15 {strides = array<i32>} : memref<1x1x8x4x4x8xf32, #tpu.memory_space<vmem>>, vector<1x1x8x4x4x8xf32>,
    return
  }
  func.func @transform_0(%arg0: i32, %arg1: i32) -> (i32, i32, i32, i32, i32, i32) {
    %c0_i32 = arith.constant 0 : i32
    %c0_i32_0 = arith.constant 0 : i32
    %c0_i32_1 = arith.constant 0 : i32
    %c0_i32_2 = arith.constant 0 : i32
    %c0_i32_3 = arith.constant 0 : i32
    return %arg0, %arg1, %c0_i32, %c0_i32_0, %c0_i32_1, %c0_i32_2 : i32, i32, i32, i32, i32, i32
  }
  func.func @transform_1(%arg0: i32, %arg1: i32) -> (i32, i32) {
    %c0_i32 = arith.constant 0 : i32
    %c0_i32_0 = arith.constant 0 : i32
    %c0_i32_1 = arith.constant 0 : i32
    return %c0_i32, %c0_i32_0 : i32, i32
  }
  func.func @transform_2(%arg0: i32, %arg1: i32) -> (i32, i32) {
    %c0_i32 = arith.constant 0 : i32
    %c0_i32_0 = arith.constant 0 : i32
    %c0_i32_1 = arith.constant 0 : i32
    return %c0_i32, %c0_i32_0 : i32, i32
  }
  func.func @transform_3(%arg0: i32, %arg1: i32) -> (i32, i32, i32, i32, i32, i32) {
    %c0_i32 = arith.constant 0 : i32
    %c0_i32_0 = arith.constant 0 : i32
    %c0_i32_1 = arith.constant 0 : i32
    %c0_i32_2 = arith.constant 0 : i32
    %c0_i32_3 = arith.constant 0 : i32
    return %arg0, %arg1, %c0_i32, %c0_i32_0, %c0_i32_1, %c0_i32_2 : i32, i32, i32, i32, i32, i32
  }
}

module attributes {stable_mosaic.version = 11 : i64} {
  func.func @_conv_stats_kernel(%arg0: i32, %arg1: i32, %arg2: memref<1x1x40x4xbf16, #tpu.memory_space<vmem>>, %arg3: memref<1x1x40x4xbf16, #tpu.memory_space<vmem>>, %arg4: memref<1x1x40x4xbf16, #tpu.memory_space<vmem>>, %arg5: memref<64x4x8xbf16, #tpu.memory_space<vmem>>, %arg6: memref<1x1x8x4x4x8xbf16, #tpu.memory_space<vmem>>, %arg7: memref<1x1x2x8xf32, #tpu.memory_space<vmem>>) attributes {dimension_semantics = [#tpu.dimension_semantics<parallel>, #tpu.dimension_semantics<parallel>], iteration_bounds = array<i64: 2, 4>, scalar_prefetch = 0 : i64, scratch_operands = 0 : i64, tpu.core_type = #tpu.core_type<tc>, window_params = [{transform_indices = @transform_0, window_bounds = array<i64: 1, 1, 40, 4>}, {transform_indices = @transform_1, window_bounds = array<i64: 1, 1, 40, 4>}, {transform_indices = @transform_2, window_bounds = array<i64: 1, 1, 40, 4>}, {pipeline_mode = #tpu.pipeline_mode<synchronous>, transform_indices = @transform_3, window_bounds = array<i64: 64, 4, 8>}, {transform_indices = @transform_4, window_bounds = array<i64: 1, 1, 8, 4, 4, 8>}, {transform_indices = @transform_5, window_bounds = array<i64: 1, 1, 2, 8>}]} {
    %0 = tpu.iota {dimensions = array<i32: 0>} : vector<24x1xi32>
    %c6_i32 = arith.constant 6 : i32
    %c0_i32 = arith.constant 0 : i32
    %1 = arith.cmpi eq, %c6_i32, %c0_i32 : i32
    %c1_i32 = arith.constant 1 : i32
    %2 = arith.select %1, %c1_i32, %c6_i32 : i32
    %3 = vector.broadcast %2 : i32 to vector<24x1xi32>
    %4 = arith.remsi %0, %3 : vector<24x1xi32>
    %c0_i32_0 = arith.constant 0 : i32
    %5 = vector.broadcast %c0_i32_0 : i32 to vector<24x1xi32>
    %6 = arith.cmpi ne, %4, %5 : vector<24x1xi32>
    %c0_i32_1 = arith.constant 0 : i32
    %7 = vector.broadcast %c0_i32_1 : i32 to vector<24x1xi32>
    %8 = arith.cmpi slt, %4, %7 : vector<24x1xi32>
    %c0_i32_2 = arith.constant 0 : i32
    %9 = arith.cmpi slt, %2, %c0_i32_2 : i32
    %10 = vector.broadcast %9 : i1 to vector<24x1xi1>
    %11 = vector.broadcast %10 : vector<24x1xi1> to vector<24x1xi1>
    %12 = arith.xori %8, %11 : vector<24x1xi1>
    %13 = arith.andi %12, %6 : vector<24x1xi1>
    %14 = vector.broadcast %2 : i32 to vector<24x1xi32>
    %15 = arith.addi %4, %14 : vector<24x1xi32>
    %16 = arith.select %13, %15, %4 : vector<24x1xi1>, vector<24x1xi32>
    %c4_i32 = arith.constant 4 : i32
    %17 = vector.broadcast %c4_i32 : i32 to vector<24x1xi32>
    %18 = arith.cmpi slt, %16, %17 : vector<24x1xi32>
    %cst = arith.constant 0.000000e+00 : f32
    %19 = vector.broadcast %cst : f32 to vector<1x8xf32>
    %cst_3 = arith.constant 0.000000e+00 : f32
    %20 = vector.broadcast %cst_3 : f32 to vector<1x8xf32>
    %cst_4 = arith.constant 0.000000e+00 : f32
    %21 = vector.broadcast %cst_4 : f32 to vector<24x8xf32>
    %c0 = arith.constant 0 : index
    %c0_5 = arith.constant 0 : index
    %c0_6 = arith.constant 0 : index
    %c0_7 = arith.constant 0 : index
    %22 = vector.load %arg2[%c0, %c0_5, %c0_6, %c0_7] : memref<1x1x40x4xbf16, #tpu.memory_space<vmem>>, vector<1x1x24x4xbf16>
    %23 = vector.shape_cast %22 : vector<1x1x24x4xbf16> to vector<24x4xbf16>
    %c0_8 = arith.constant 0 : index
    %c0_9 = arith.constant 0 : index
    %c0_10 = arith.constant 0 : index
    %24 = vector.load %arg5[%c0_8, %c0_9, %c0_10] : memref<64x4x8xbf16, #tpu.memory_space<vmem>>, vector<1x4x8xbf16>
    %25 = vector.shape_cast %24 : vector<1x4x8xbf16> to vector<4x8xbf16>
    %cst_11 = arith.constant dense<0.000000e+00> : vector<24x8xf32>
    %26 = tpu.matmul %23, %25, %cst_11 {dimension_numbers = #tpu.dot_dimension_numbers<[1], [0], [0], [1], [0, 0, 1, 1], [], []>} : vector<24x4xbf16>, vector<4x8xbf16>, vector<24x8xf32> -> vector<24x8xf32>
    %27 = arith.addf %21, %26 : vector<24x8xf32>
    %c0_12 = arith.constant 0 : index
    %c0_13 = arith.constant 0 : index
    %c1 = arith.constant 1 : index
    %c0_14 = arith.constant 0 : index
    %28 = vector.load %arg2[%c0_12, %c0_13, %c1, %c0_14] : memref<1x1x40x4xbf16, #tpu.memory_space<vmem>>, vector<1x1x24x4xbf16>
    %29 = vector.shape_cast %28 : vector<1x1x24x4xbf16> to vector<24x4xbf16>
    %c1_15 = arith.constant 1 : index
    %c0_16 = arith.constant 0 : index
    %c0_17 = arith.constant 0 : index
    %30 = vector.load %arg5[%c1_15, %c0_16, %c0_17] : memref<64x4x8xbf16, #tpu.memory_space<vmem>>, vector<1x4x8xbf16>
    %31 = vector.shape_cast %30 : vector<1x4x8xbf16> to vector<4x8xbf16>
    %cst_18 = arith.constant dense<0.000000e+00> : vector<24x8xf32>
    %32 = tpu.matmul %29, %31, %cst_18 {dimension_numbers = #tpu.dot_dimension_numbers<[1], [0], [0], [1], [0, 0, 1, 1], [], []>} : vector<24x4xbf16>, vector<4x8xbf16>, vector<24x8xf32> -> vector<24x8xf32>
    %33 = arith.addf %27, %32 : vector<24x8xf32>
    %c0_19 = arith.constant 0 : index
    %c0_20 = arith.constant 0 : index
    %c6 = arith.constant 6 : index
    %c0_21 = arith.constant 0 : index
    %34 = vector.load %arg2[%c0_19, %c0_20, %c6, %c0_21] : memref<1x1x40x4xbf16, #tpu.memory_space<vmem>>, vector<1x1x24x4xbf16>
    %35 = vector.shape_cast %34 : vector<1x1x24x4xbf16> to vector<24x4xbf16>
    %c2 = arith.constant 2 : index
    %c0_22 = arith.constant 0 : index
    %c0_23 = arith.constant 0 : index
    %36 = vector.load %arg5[%c2, %c0_22, %c0_23] : memref<64x4x8xbf16, #tpu.memory_space<vmem>>, vector<1x4x8xbf16>
    %37 = vector.shape_cast %36 : vector<1x4x8xbf16> to vector<4x8xbf16>
    %cst_24 = arith.constant dense<0.000000e+00> : vector<24x8xf32>
    %38 = tpu.matmul %35, %37, %cst_24 {dimension_numbers = #tpu.dot_dimension_numbers<[1], [0], [0], [1], [0, 0, 1, 1], [], []>} : vector<24x4xbf16>, vector<4x8xbf16>, vector<24x8xf32> -> vector<24x8xf32>
    %39 = arith.addf %33, %38 : vector<24x8xf32>
    %c0_25 = arith.constant 0 : index
    %c0_26 = arith.constant 0 : index
    %c7 = arith.constant 7 : index
    %c0_27 = arith.constant 0 : index
    %40 = vector.load %arg2[%c0_25, %c0_26, %c7, %c0_27] : memref<1x1x40x4xbf16, #tpu.memory_space<vmem>>, vector<1x1x24x4xbf16>
    %41 = vector.shape_cast %40 : vector<1x1x24x4xbf16> to vector<24x4xbf16>
    %c3 = arith.constant 3 : index
    %c0_28 = arith.constant 0 : index
    %c0_29 = arith.constant 0 : index
    %42 = vector.load %arg5[%c3, %c0_28, %c0_29] : memref<64x4x8xbf16, #tpu.memory_space<vmem>>, vector<1x4x8xbf16>
    %43 = vector.shape_cast %42 : vector<1x4x8xbf16> to vector<4x8xbf16>
    %cst_30 = arith.constant dense<0.000000e+00> : vector<24x8xf32>
    %44 = tpu.matmul %41, %43, %cst_30 {dimension_numbers = #tpu.dot_dimension_numbers<[1], [0], [0], [1], [0, 0, 1, 1], [], []>} : vector<24x4xbf16>, vector<4x8xbf16>, vector<24x8xf32> -> vector<24x8xf32>
    %45 = arith.addf %39, %44 : vector<24x8xf32>
    %c0_31 = arith.constant 0 : index
    %c0_32 = arith.constant 0 : index
    %c0_33 = arith.constant 0 : index
    %c0_34 = arith.constant 0 : index
    %46 = vector.load %arg3[%c0_31, %c0_32, %c0_33, %c0_34] : memref<1x1x40x4xbf16, #tpu.memory_space<vmem>>, vector<1x1x24x4xbf16>
    %47 = vector.shape_cast %46 : vector<1x1x24x4xbf16> to vector<24x4xbf16>
    %c4 = arith.constant 4 : index
    %c0_35 = arith.constant 0 : index
    %c0_36 = arith.constant 0 : index
    %48 = vector.load %arg5[%c4, %c0_35, %c0_36] : memref<64x4x8xbf16, #tpu.memory_space<vmem>>, vector<1x4x8xbf16>
    %49 = vector.shape_cast %48 : vector<1x4x8xbf16> to vector<4x8xbf16>
    %cst_37 = arith.constant dense<0.000000e+00> : vector<24x8xf32>
    %50 = tpu.matmul %47, %49, %cst_37 {dimension_numbers = #tpu.dot_dimension_numbers<[1], [0], [0], [1], [0, 0, 1, 1], [], []>} : vector<24x4xbf16>, vector<4x8xbf16>, vector<24x8xf32> -> vector<24x8xf32>
    %51 = arith.addf %45, %50 : vector<24x8xf32>
    %c0_38 = arith.constant 0 : index
    %c0_39 = arith.constant 0 : index
    %c1_40 = arith.constant 1 : index
    %c0_41 = arith.constant 0 : index
    %52 = vector.load %arg3[%c0_38, %c0_39, %c1_40, %c0_41] : memref<1x1x40x4xbf16, #tpu.memory_space<vmem>>, vector<1x1x24x4xbf16>
    %53 = vector.shape_cast %52 : vector<1x1x24x4xbf16> to vector<24x4xbf16>
    %c5 = arith.constant 5 : index
    %c0_42 = arith.constant 0 : index
    %c0_43 = arith.constant 0 : index
    %54 = vector.load %arg5[%c5, %c0_42, %c0_43] : memref<64x4x8xbf16, #tpu.memory_space<vmem>>, vector<1x4x8xbf16>
    %55 = vector.shape_cast %54 : vector<1x4x8xbf16> to vector<4x8xbf16>
    %cst_44 = arith.constant dense<0.000000e+00> : vector<24x8xf32>
    %56 = tpu.matmul %53, %55, %cst_44 {dimension_numbers = #tpu.dot_dimension_numbers<[1], [0], [0], [1], [0, 0, 1, 1], [], []>} : vector<24x4xbf16>, vector<4x8xbf16>, vector<24x8xf32> -> vector<24x8xf32>
    %57 = arith.addf %51, %56 : vector<24x8xf32>
    %c0_45 = arith.constant 0 : index
    %c0_46 = arith.constant 0 : index
    %c6_47 = arith.constant 6 : index
    %c0_48 = arith.constant 0 : index
    %58 = vector.load %arg3[%c0_45, %c0_46, %c6_47, %c0_48] : memref<1x1x40x4xbf16, #tpu.memory_space<vmem>>, vector<1x1x24x4xbf16>
    %59 = vector.shape_cast %58 : vector<1x1x24x4xbf16> to vector<24x4xbf16>
    %c6_49 = arith.constant 6 : index
    %c0_50 = arith.constant 0 : index
    %c0_51 = arith.constant 0 : index
    %60 = vector.load %arg5[%c6_49, %c0_50, %c0_51] : memref<64x4x8xbf16, #tpu.memory_space<vmem>>, vector<1x4x8xbf16>
    %61 = vector.shape_cast %60 : vector<1x4x8xbf16> to vector<4x8xbf16>
    %cst_52 = arith.constant dense<0.000000e+00> : vector<24x8xf32>
    %62 = tpu.matmul %59, %61, %cst_52 {dimension_numbers = #tpu.dot_dimension_numbers<[1], [0], [0], [1], [0, 0, 1, 1], [], []>} : vector<24x4xbf16>, vector<4x8xbf16>, vector<24x8xf32> -> vector<24x8xf32>
    %63 = arith.addf %57, %62 : vector<24x8xf32>
    %c0_53 = arith.constant 0 : index
    %c0_54 = arith.constant 0 : index
    %c7_55 = arith.constant 7 : index
    %c0_56 = arith.constant 0 : index
    %64 = vector.load %arg3[%c0_53, %c0_54, %c7_55, %c0_56] : memref<1x1x40x4xbf16, #tpu.memory_space<vmem>>, vector<1x1x24x4xbf16>
    %65 = vector.shape_cast %64 : vector<1x1x24x4xbf16> to vector<24x4xbf16>
    %c7_57 = arith.constant 7 : index
    %c0_58 = arith.constant 0 : index
    %c0_59 = arith.constant 0 : index
    %66 = vector.load %arg5[%c7_57, %c0_58, %c0_59] : memref<64x4x8xbf16, #tpu.memory_space<vmem>>, vector<1x4x8xbf16>
    %67 = vector.shape_cast %66 : vector<1x4x8xbf16> to vector<4x8xbf16>
    %cst_60 = arith.constant dense<0.000000e+00> : vector<24x8xf32>
    %68 = tpu.matmul %65, %67, %cst_60 {dimension_numbers = #tpu.dot_dimension_numbers<[1], [0], [0], [1], [0, 0, 1, 1], [], []>} : vector<24x4xbf16>, vector<4x8xbf16>, vector<24x8xf32> -> vector<24x8xf32>
    %69 = arith.addf %63, %68 : vector<24x8xf32>
    %cst_61 = arith.constant 0.000000e+00 : f32
    %70 = vector.shape_cast %18 : vector<24x1xi1> to vector<24x1xi1>
    %71 = vector.broadcast %70 : vector<24x1xi1> to vector<24x8xi1>
    %72 = vector.broadcast %cst_61 : f32 to vector<24x8xf32>
    %73 = arith.select %71, %69, %72 : vector<24x8xi1>, vector<24x8xf32>
    %cst_62 = arith.constant dense<0.000000e+00> : vector<8xf32>
    %74 = vector.multi_reduction <add>, %73, %cst_62 [0] : vector<24x8xf32> to vector<8xf32>
    %75 = vector.shape_cast %74 : vector<8xf32> to vector<1x8xf32>
    %76 = arith.addf %19, %75 : vector<1x8xf32>
    %77 = arith.mulf %73, %69 : vector<24x8xf32>
    %cst_63 = arith.constant dense<0.000000e+00> : vector<8xf32>
    %78 = vector.multi_reduction <add>, %77, %cst_63 [0] : vector<24x8xf32> to vector<8xf32>
    %79 = vector.shape_cast %78 : vector<8xf32> to vector<1x8xf32>
    %80 = arith.addf %20, %79 : vector<1x8xf32>
    %81 = vector.shape_cast %69 : vector<24x8xf32> to vector<4x6x8xf32>
    %82 = vector.extract_strided_slice %81 {offsets = [0, 0, 0], sizes = [4, 4, 8], strides = [1, 1, 1]} : vector<4x6x8xf32> to vector<4x4x8xf32>
    %83 = arith.truncf %82 : vector<4x4x8xf32> to vector<4x4x8xbf16>
    %c0_64 = arith.constant 0 : index
    %c0_65 = arith.constant 0 : index
    %c0_66 = arith.constant 0 : index
    %c0_67 = arith.constant 0 : index
    %c0_68 = arith.constant 0 : index
    %c0_69 = arith.constant 0 : index
    %84 = vector.load %arg6[%c0_64, %c0_65, %c0_66, %c0_67, %c0_68, %c0_69] : memref<1x1x8x4x4x8xbf16, #tpu.memory_space<vmem>>, vector<1x1x1x4x4x8xbf16>
    %85 = vector.shape_cast %84 : vector<1x1x1x4x4x8xbf16> to vector<4x4x8xbf16>
    %86 = vector.shape_cast %83 : vector<4x4x8xbf16> to vector<1x1x1x4x4x8xbf16>
    tpu.vector_store %arg6[%c0_64, %c0_65, %c0_66, %c0_67, %c0_68, %c0_69], %86 {strides = array<i32>} : memref<1x1x8x4x4x8xbf16, #tpu.memory_space<vmem>>, vector<1x1x1x4x4x8xbf16>,
    %cst_70 = arith.constant 0.000000e+00 : f32
    %87 = vector.broadcast %cst_70 : f32 to vector<24x8xf32>
    %c0_71 = arith.constant 0 : index
    %c0_72 = arith.constant 0 : index
    %c1_73 = arith.constant 1 : index
    %c0_74 = arith.constant 0 : index
    %88 = vector.load %arg2[%c0_71, %c0_72, %c1_73, %c0_74] : memref<1x1x40x4xbf16, #tpu.memory_space<vmem>>, vector<1x1x24x4xbf16>
    %89 = vector.shape_cast %88 : vector<1x1x24x4xbf16> to vector<24x4xbf16>
    %c8 = arith.constant 8 : index
    %c0_75 = arith.constant 0 : index
    %c0_76 = arith.constant 0 : index
    %90 = vector.load %arg5[%c8, %c0_75, %c0_76] : memref<64x4x8xbf16, #tpu.memory_space<vmem>>, vector<1x4x8xbf16>
    %91 = vector.shape_cast %90 : vector<1x4x8xbf16> to vector<4x8xbf16>
    %cst_77 = arith.constant dense<0.000000e+00> : vector<24x8xf32>
    %92 = tpu.matmul %89, %91, %cst_77 {dimension_numbers = #tpu.dot_dimension_numbers<[1], [0], [0], [1], [0, 0, 1, 1], [], []>} : vector<24x4xbf16>, vector<4x8xbf16>, vector<24x8xf32> -> vector<24x8xf32>
    %93 = arith.addf %87, %92 : vector<24x8xf32>
    %c0_78 = arith.constant 0 : index
    %c0_79 = arith.constant 0 : index
    %c2_80 = arith.constant 2 : index
    %c0_81 = arith.constant 0 : index
    %94 = vector.load %arg2[%c0_78, %c0_79, %c2_80, %c0_81] : memref<1x1x40x4xbf16, #tpu.memory_space<vmem>>, vector<1x1x24x4xbf16>
    %95 = vector.shape_cast %94 : vector<1x1x24x4xbf16> to vector<24x4xbf16>
    %c9 = arith.constant 9 : index
    %c0_82 = arith.constant 0 : index
    %c0_83 = arith.constant 0 : index
    %96 = vector.load %arg5[%c9, %c0_82, %c0_83] : memref<64x4x8xbf16, #tpu.memory_space<vmem>>, vector<1x4x8xbf16>
    %97 = vector.shape_cast %96 : vector<1x4x8xbf16> to vector<4x8xbf16>
    %cst_84 = arith.constant dense<0.000000e+00> : vector<24x8xf32>
    %98 = tpu.matmul %95, %97, %cst_84 {dimension_numbers = #tpu.dot_dimension_numbers<[1], [0], [0], [1], [0, 0, 1, 1], [], []>} : vector<24x4xbf16>, vector<4x8xbf16>, vector<24x8xf32> -> vector<24x8xf32>
    %99 = arith.addf %93, %98 : vector<24x8xf32>
    %c0_85 = arith.constant 0 : index
    %c0_86 = arith.constant 0 : index
    %c7_87 = arith.constant 7 : index
    %c0_88 = arith.constant 0 : index
    %100 = vector.load %arg2[%c0_85, %c0_86, %c7_87, %c0_88] : memref<1x1x40x4xbf16, #tpu.memory_space<vmem>>, vector<1x1x24x4xbf16>
    %101 = vector.shape_cast %100 : vector<1x1x24x4xbf16> to vector<24x4xbf16>
    %c10 = arith.constant 10 : index
    %c0_89 = arith.constant 0 : index
    %c0_90 = arith.constant 0 : index
    %102 = vector.load %arg5[%c10, %c0_89, %c0_90] : memref<64x4x8xbf16, #tpu.memory_space<vmem>>, vector<1x4x8xbf16>
    %103 = vector.shape_cast %102 : vector<1x4x8xbf16> to vector<4x8xbf16>
    %cst_91 = arith.constant dense<0.000000e+00> : vector<24x8xf32>
    %104 = tpu.matmul %101, %103, %cst_91 {dimension_numbers = #tpu.dot_dimension_numbers<[1], [0], [0], [1], [0, 0, 1, 1], [], []>} : vector<24x4xbf16>, vector<4x8xbf16>, vector<24x8xf32> -> vector<24x8xf32>
    %105 = arith.addf %99, %104 : vector<24x8xf32>
    %c0_92 = arith.constant 0 : index
    %c0_93 = arith.constant 0 : index
    %c8_94 = arith.constant 8 : index
    %c0_95 = arith.constant 0 : index
    %106 = vector.load %arg2[%c0_92, %c0_93, %c8_94, %c0_95] : memref<1x1x40x4xbf16, #tpu.memory_space<vmem>>, vector<1x1x24x4xbf16>
    %107 = vector.shape_cast %106 : vector<1x1x24x4xbf16> to vector<24x4xbf16>
    %c11 = arith.constant 11 : index
    %c0_96 = arith.constant 0 : index
    %c0_97 = arith.constant 0 : index
    %108 = vector.load %arg5[%c11, %c0_96, %c0_97] : memref<64x4x8xbf16, #tpu.memory_space<vmem>>, vector<1x4x8xbf16>
    %109 = vector.shape_cast %108 : vector<1x4x8xbf16> to vector<4x8xbf16>
    %cst_98 = arith.constant dense<0.000000e+00> : vector<24x8xf32>
    %110 = tpu.matmul %107, %109, %cst_98 {dimension_numbers = #tpu.dot_dimension_numbers<[1], [0], [0], [1], [0, 0, 1, 1], [], []>} : vector<24x4xbf16>, vector<4x8xbf16>, vector<24x8xf32> -> vector<24x8xf32>
    %111 = arith.addf %105, %110 : vector<24x8xf32>
    %c0_99 = arith.constant 0 : index
    %c0_100 = arith.constant 0 : index
    %c1_101 = arith.constant 1 : index
    %c0_102 = arith.constant 0 : index
    %112 = vector.load %arg3[%c0_99, %c0_100, %c1_101, %c0_102] : memref<1x1x40x4xbf16, #tpu.memory_space<vmem>>, vector<1x1x24x4xbf16>
    %113 = vector.shape_cast %112 : vector<1x1x24x4xbf16> to vector<24x4xbf16>
    %c12 = arith.constant 12 : index
    %c0_103 = arith.constant 0 : index
    %c0_104 = arith.constant 0 : index
    %114 = vector.load %arg5[%c12, %c0_103, %c0_104] : memref<64x4x8xbf16, #tpu.memory_space<vmem>>, vector<1x4x8xbf16>
    %115 = vector.shape_cast %114 : vector<1x4x8xbf16> to vector<4x8xbf16>
    %cst_105 = arith.constant dense<0.000000e+00> : vector<24x8xf32>
    %116 = tpu.matmul %113, %115, %cst_105 {dimension_numbers = #tpu.dot_dimension_numbers<[1], [0], [0], [1], [0, 0, 1, 1], [], []>} : vector<24x4xbf16>, vector<4x8xbf16>, vector<24x8xf32> -> vector<24x8xf32>
    %117 = arith.addf %111, %116 : vector<24x8xf32>
    %c0_106 = arith.constant 0 : index
    %c0_107 = arith.constant 0 : index
    %c2_108 = arith.constant 2 : index
    %c0_109 = arith.constant 0 : index
    %118 = vector.load %arg3[%c0_106, %c0_107, %c2_108, %c0_109] : memref<1x1x40x4xbf16, #tpu.memory_space<vmem>>, vector<1x1x24x4xbf16>
    %119 = vector.shape_cast %118 : vector<1x1x24x4xbf16> to vector<24x4xbf16>
    %c13 = arith.constant 13 : index
    %c0_110 = arith.constant 0 : index
    %c0_111 = arith.constant 0 : index
    %120 = vector.load %arg5[%c13, %c0_110, %c0_111] : memref<64x4x8xbf16, #tpu.memory_space<vmem>>, vector<1x4x8xbf16>
    %121 = vector.shape_cast %120 : vector<1x4x8xbf16> to vector<4x8xbf16>
    %cst_112 = arith.constant dense<0.000000e+00> : vector<24x8xf32>
    %122 = tpu.matmul %119, %121, %cst_112 {dimension_numbers = #tpu.dot_dimension_numbers<[1], [0], [0], [1], [0, 0, 1, 1], [], []>} : vector<24x4xbf16>, vector<4x8xbf16>, vector<24x8xf32> -> vector<24x8xf32>
    %123 = arith.addf %117, %122 : vector<24x8xf32>
    %c0_113 = arith.constant 0 : index
    %c0_114 = arith.constant 0 : index
    %c7_115 = arith.constant 7 : index
    %c0_116 = arith.constant 0 : index
    %124 = vector.load %arg3[%c0_113, %c0_114, %c7_115, %c0_116] : memref<1x1x40x4xbf16, #tpu.memory_space<vmem>>, vector<1x1x24x4xbf16>
    %125 = vector.shape_cast %124 : vector<1x1x24x4xbf16> to vector<24x4xbf16>
    %c14 = arith.constant 14 : index
    %c0_117 = arith.constant 0 : index
    %c0_118 = arith.constant 0 : index
    %126 = vector.load %arg5[%c14, %c0_117, %c0_118] : memref<64x4x8xbf16, #tpu.memory_space<vmem>>, vector<1x4x8xbf16>
    %127 = vector.shape_cast %126 : vector<1x4x8xbf16> to vector<4x8xbf16>
    %cst_119 = arith.constant dense<0.000000e+00> : vector<24x8xf32>
    %128 = tpu.matmul %125, %127, %cst_119 {dimension_numbers = #tpu.dot_dimension_numbers<[1], [0], [0], [1], [0, 0, 1, 1], [], []>} : vector<24x4xbf16>, vector<4x8xbf16>, vector<24x8xf32> -> vector<24x8xf32>
    %129 = arith.addf %123, %128 : vector<24x8xf32>
    %c0_120 = arith.constant 0 : index
    %c0_121 = arith.constant 0 : index
    %c8_122 = arith.constant 8 : index
    %c0_123 = arith.constant 0 : index
    %130 = vector.load %arg3[%c0_120, %c0_121, %c8_122, %c0_123] : memref<1x1x40x4xbf16, #tpu.memory_space<vmem>>, vector<1x1x24x4xbf16>
    %131 = vector.shape_cast %130 : vector<1x1x24x4xbf16> to vector<24x4xbf16>
    %c15 = arith.constant 15 : index
    %c0_124 = arith.constant 0 : index
    %c0_125 = arith.constant 0 : index
    %132 = vector.load %arg5[%c15, %c0_124, %c0_125] : memref<64x4x8xbf16, #tpu.memory_space<vmem>>, vector<1x4x8xbf16>
    %133 = vector.shape_cast %132 : vector<1x4x8xbf16> to vector<4x8xbf16>
    %cst_126 = arith.constant dense<0.000000e+00> : vector<24x8xf32>
    %134 = tpu.matmul %131, %133, %cst_126 {dimension_numbers = #tpu.dot_dimension_numbers<[1], [0], [0], [1], [0, 0, 1, 1], [], []>} : vector<24x4xbf16>, vector<4x8xbf16>, vector<24x8xf32> -> vector<24x8xf32>
    %135 = arith.addf %129, %134 : vector<24x8xf32>
    %cst_127 = arith.constant 0.000000e+00 : f32
    %136 = vector.shape_cast %18 : vector<24x1xi1> to vector<24x1xi1>
    %137 = vector.broadcast %136 : vector<24x1xi1> to vector<24x8xi1>
    %138 = vector.broadcast %cst_127 : f32 to vector<24x8xf32>
    %139 = arith.select %137, %135, %138 : vector<24x8xi1>, vector<24x8xf32>
    %cst_128 = arith.constant dense<0.000000e+00> : vector<8xf32>
    %140 = vector.multi_reduction <add>, %139, %cst_128 [0] : vector<24x8xf32> to vector<8xf32>
    %141 = vector.shape_cast %140 : vector<8xf32> to vector<1x8xf32>
    %142 = arith.addf %76, %141 : vector<1x8xf32>
    %143 = arith.mulf %139, %135 : vector<24x8xf32>
    %cst_129 = arith.constant dense<0.000000e+00> : vector<8xf32>
    %144 = vector.multi_reduction <add>, %143, %cst_129 [0] : vector<24x8xf32> to vector<8xf32>
    %145 = vector.shape_cast %144 : vector<8xf32> to vector<1x8xf32>
    %146 = arith.addf %80, %145 : vector<1x8xf32>
    %147 = vector.shape_cast %135 : vector<24x8xf32> to vector<4x6x8xf32>
    %148 = vector.extract_strided_slice %147 {offsets = [0, 0, 0], sizes = [4, 4, 8], strides = [1, 1, 1]} : vector<4x6x8xf32> to vector<4x4x8xf32>
    %149 = arith.truncf %148 : vector<4x4x8xf32> to vector<4x4x8xbf16>
    %c0_130 = arith.constant 0 : index
    %c0_131 = arith.constant 0 : index
    %c1_132 = arith.constant 1 : index
    %c0_133 = arith.constant 0 : index
    %c0_134 = arith.constant 0 : index
    %c0_135 = arith.constant 0 : index
    %150 = vector.load %arg6[%c0_130, %c0_131, %c1_132, %c0_133, %c0_134, %c0_135] : memref<1x1x8x4x4x8xbf16, #tpu.memory_space<vmem>>, vector<1x1x1x4x4x8xbf16>
    %151 = vector.shape_cast %150 : vector<1x1x1x4x4x8xbf16> to vector<4x4x8xbf16>
    %152 = vector.shape_cast %149 : vector<4x4x8xbf16> to vector<1x1x1x4x4x8xbf16>
    tpu.vector_store %arg6[%c0_130, %c0_131, %c1_132, %c0_133, %c0_134, %c0_135], %152 {strides = array<i32>} : memref<1x1x8x4x4x8xbf16, #tpu.memory_space<vmem>>, vector<1x1x1x4x4x8xbf16>,
    %cst_136 = arith.constant 0.000000e+00 : f32
    %153 = vector.broadcast %cst_136 : f32 to vector<24x8xf32>
    %c0_137 = arith.constant 0 : index
    %c0_138 = arith.constant 0 : index
    %c6_139 = arith.constant 6 : index
    %c0_140 = arith.constant 0 : index
    %154 = vector.load %arg2[%c0_137, %c0_138, %c6_139, %c0_140] : memref<1x1x40x4xbf16, #tpu.memory_space<vmem>>, vector<1x1x24x4xbf16>
    %155 = vector.shape_cast %154 : vector<1x1x24x4xbf16> to vector<24x4xbf16>
    %c16 = arith.constant 16 : index
    %c0_141 = arith.constant 0 : index
    %c0_142 = arith.constant 0 : index
    %156 = vector.load %arg5[%c16, %c0_141, %c0_142] : memref<64x4x8xbf16, #tpu.memory_space<vmem>>, vector<1x4x8xbf16>
    %157 = vector.shape_cast %156 : vector<1x4x8xbf16> to vector<4x8xbf16>
    %cst_143 = arith.constant dense<0.000000e+00> : vector<24x8xf32>
    %158 = tpu.matmul %155, %157, %cst_143 {dimension_numbers = #tpu.dot_dimension_numbers<[1], [0], [0], [1], [0, 0, 1, 1], [], []>} : vector<24x4xbf16>, vector<4x8xbf16>, vector<24x8xf32> -> vector<24x8xf32>
    %159 = arith.addf %153, %158 : vector<24x8xf32>
    %c0_144 = arith.constant 0 : index
    %c0_145 = arith.constant 0 : index
    %c7_146 = arith.constant 7 : index
    %c0_147 = arith.constant 0 : index
    %160 = vector.load %arg2[%c0_144, %c0_145, %c7_146, %c0_147] : memref<1x1x40x4xbf16, #tpu.memory_space<vmem>>, vector<1x1x24x4xbf16>
    %161 = vector.shape_cast %160 : vector<1x1x24x4xbf16> to vector<24x4xbf16>
    %c17 = arith.constant 17 : index
    %c0_148 = arith.constant 0 : index
    %c0_149 = arith.constant 0 : index
    %162 = vector.load %arg5[%c17, %c0_148, %c0_149] : memref<64x4x8xbf16, #tpu.memory_space<vmem>>, vector<1x4x8xbf16>
    %163 = vector.shape_cast %162 : vector<1x4x8xbf16> to vector<4x8xbf16>
    %cst_150 = arith.constant dense<0.000000e+00> : vector<24x8xf32>
    %164 = tpu.matmul %161, %163, %cst_150 {dimension_numbers = #tpu.dot_dimension_numbers<[1], [0], [0], [1], [0, 0, 1, 1], [], []>} : vector<24x4xbf16>, vector<4x8xbf16>, vector<24x8xf32> -> vector<24x8xf32>
    %165 = arith.addf %159, %164 : vector<24x8xf32>
    %c0_151 = arith.constant 0 : index
    %c0_152 = arith.constant 0 : index
    %c12_153 = arith.constant 12 : index
    %c0_154 = arith.constant 0 : index
    %166 = vector.load %arg2[%c0_151, %c0_152, %c12_153, %c0_154] : memref<1x1x40x4xbf16, #tpu.memory_space<vmem>>, vector<1x1x24x4xbf16>
    %167 = vector.shape_cast %166 : vector<1x1x24x4xbf16> to vector<24x4xbf16>
    %c18 = arith.constant 18 : index
    %c0_155 = arith.constant 0 : index
    %c0_156 = arith.constant 0 : index
    %168 = vector.load %arg5[%c18, %c0_155, %c0_156] : memref<64x4x8xbf16, #tpu.memory_space<vmem>>, vector<1x4x8xbf16>
    %169 = vector.shape_cast %168 : vector<1x4x8xbf16> to vector<4x8xbf16>
    %cst_157 = arith.constant dense<0.000000e+00> : vector<24x8xf32>
    %170 = tpu.matmul %167, %169, %cst_157 {dimension_numbers = #tpu.dot_dimension_numbers<[1], [0], [0], [1], [0, 0, 1, 1], [], []>} : vector<24x4xbf16>, vector<4x8xbf16>, vector<24x8xf32> -> vector<24x8xf32>
    %171 = arith.addf %165, %170 : vector<24x8xf32>
    %c0_158 = arith.constant 0 : index
    %c0_159 = arith.constant 0 : index
    %c13_160 = arith.constant 13 : index
    %c0_161 = arith.constant 0 : index
    %172 = vector.load %arg2[%c0_158, %c0_159, %c13_160, %c0_161] : memref<1x1x40x4xbf16, #tpu.memory_space<vmem>>, vector<1x1x24x4xbf16>
    %173 = vector.shape_cast %172 : vector<1x1x24x4xbf16> to vector<24x4xbf16>
    %c19 = arith.constant 19 : index
    %c0_162 = arith.constant 0 : index
    %c0_163 = arith.constant 0 : index
    %174 = vector.load %arg5[%c19, %c0_162, %c0_163] : memref<64x4x8xbf16, #tpu.memory_space<vmem>>, vector<1x4x8xbf16>
    %175 = vector.shape_cast %174 : vector<1x4x8xbf16> to vector<4x8xbf16>
    %cst_164 = arith.constant dense<0.000000e+00> : vector<24x8xf32>
    %176 = tpu.matmul %173, %175, %cst_164 {dimension_numbers = #tpu.dot_dimension_numbers<[1], [0], [0], [1], [0, 0, 1, 1], [], []>} : vector<24x4xbf16>, vector<4x8xbf16>, vector<24x8xf32> -> vector<24x8xf32>
    %177 = arith.addf %171, %176 : vector<24x8xf32>
    %c0_165 = arith.constant 0 : index
    %c0_166 = arith.constant 0 : index
    %c6_167 = arith.constant 6 : index
    %c0_168 = arith.constant 0 : index
    %178 = vector.load %arg3[%c0_165, %c0_166, %c6_167, %c0_168] : memref<1x1x40x4xbf16, #tpu.memory_space<vmem>>, vector<1x1x24x4xbf16>
    %179 = vector.shape_cast %178 : vector<1x1x24x4xbf16> to vector<24x4xbf16>
    %c20 = arith.constant 20 : index
    %c0_169 = arith.constant 0 : index
    %c0_170 = arith.constant 0 : index
    %180 = vector.load %arg5[%c20, %c0_169, %c0_170] : memref<64x4x8xbf16, #tpu.memory_space<vmem>>, vector<1x4x8xbf16>
    %181 = vector.shape_cast %180 : vector<1x4x8xbf16> to vector<4x8xbf16>
    %cst_171 = arith.constant dense<0.000000e+00> : vector<24x8xf32>
    %182 = tpu.matmul %179, %181, %cst_171 {dimension_numbers = #tpu.dot_dimension_numbers<[1], [0], [0], [1], [0, 0, 1, 1], [], []>} : vector<24x4xbf16>, vector<4x8xbf16>, vector<24x8xf32> -> vector<24x8xf32>
    %183 = arith.addf %177, %182 : vector<24x8xf32>
    %c0_172 = arith.constant 0 : index
    %c0_173 = arith.constant 0 : index
    %c7_174 = arith.constant 7 : index
    %c0_175 = arith.constant 0 : index
    %184 = vector.load %arg3[%c0_172, %c0_173, %c7_174, %c0_175] : memref<1x1x40x4xbf16, #tpu.memory_space<vmem>>, vector<1x1x24x4xbf16>
    %185 = vector.shape_cast %184 : vector<1x1x24x4xbf16> to vector<24x4xbf16>
    %c21 = arith.constant 21 : index
    %c0_176 = arith.constant 0 : index
    %c0_177 = arith.constant 0 : index
    %186 = vector.load %arg5[%c21, %c0_176, %c0_177] : memref<64x4x8xbf16, #tpu.memory_space<vmem>>, vector<1x4x8xbf16>
    %187 = vector.shape_cast %186 : vector<1x4x8xbf16> to vector<4x8xbf16>
    %cst_178 = arith.constant dense<0.000000e+00> : vector<24x8xf32>
    %188 = tpu.matmul %185, %187, %cst_178 {dimension_numbers = #tpu.dot_dimension_numbers<[1], [0], [0], [1], [0, 0, 1, 1], [], []>} : vector<24x4xbf16>, vector<4x8xbf16>, vector<24x8xf32> -> vector<24x8xf32>
    %189 = arith.addf %183, %188 : vector<24x8xf32>
    %c0_179 = arith.constant 0 : index
    %c0_180 = arith.constant 0 : index
    %c12_181 = arith.constant 12 : index
    %c0_182 = arith.constant 0 : index
    %190 = vector.load %arg3[%c0_179, %c0_180, %c12_181, %c0_182] : memref<1x1x40x4xbf16, #tpu.memory_space<vmem>>, vector<1x1x24x4xbf16>
    %191 = vector.shape_cast %190 : vector<1x1x24x4xbf16> to vector<24x4xbf16>
    %c22 = arith.constant 22 : index
    %c0_183 = arith.constant 0 : index
    %c0_184 = arith.constant 0 : index
    %192 = vector.load %arg5[%c22, %c0_183, %c0_184] : memref<64x4x8xbf16, #tpu.memory_space<vmem>>, vector<1x4x8xbf16>
    %193 = vector.shape_cast %192 : vector<1x4x8xbf16> to vector<4x8xbf16>
    %cst_185 = arith.constant dense<0.000000e+00> : vector<24x8xf32>
    %194 = tpu.matmul %191, %193, %cst_185 {dimension_numbers = #tpu.dot_dimension_numbers<[1], [0], [0], [1], [0, 0, 1, 1], [], []>} : vector<24x4xbf16>, vector<4x8xbf16>, vector<24x8xf32> -> vector<24x8xf32>
    %195 = arith.addf %189, %194 : vector<24x8xf32>
    %c0_186 = arith.constant 0 : index
    %c0_187 = arith.constant 0 : index
    %c13_188 = arith.constant 13 : index
    %c0_189 = arith.constant 0 : index
    %196 = vector.load %arg3[%c0_186, %c0_187, %c13_188, %c0_189] : memref<1x1x40x4xbf16, #tpu.memory_space<vmem>>, vector<1x1x24x4xbf16>
    %197 = vector.shape_cast %196 : vector<1x1x24x4xbf16> to vector<24x4xbf16>
    %c23 = arith.constant 23 : index
    %c0_190 = arith.constant 0 : index
    %c0_191 = arith.constant 0 : index
    %198 = vector.load %arg5[%c23, %c0_190, %c0_191] : memref<64x4x8xbf16, #tpu.memory_space<vmem>>, vector<1x4x8xbf16>
    %199 = vector.shape_cast %198 : vector<1x4x8xbf16> to vector<4x8xbf16>
    %cst_192 = arith.constant dense<0.000000e+00> : vector<24x8xf32>
    %200 = tpu.matmul %197, %199, %cst_192 {dimension_numbers = #tpu.dot_dimension_numbers<[1], [0], [0], [1], [0, 0, 1, 1], [], []>} : vector<24x4xbf16>, vector<4x8xbf16>, vector<24x8xf32> -> vector<24x8xf32>
    %201 = arith.addf %195, %200 : vector<24x8xf32>
    %cst_193 = arith.constant 0.000000e+00 : f32
    %202 = vector.shape_cast %18 : vector<24x1xi1> to vector<24x1xi1>
    %203 = vector.broadcast %202 : vector<24x1xi1> to vector<24x8xi1>
    %204 = vector.broadcast %cst_193 : f32 to vector<24x8xf32>
    %205 = arith.select %203, %201, %204 : vector<24x8xi1>, vector<24x8xf32>
    %cst_194 = arith.constant dense<0.000000e+00> : vector<8xf32>
    %206 = vector.multi_reduction <add>, %205, %cst_194 [0] : vector<24x8xf32> to vector<8xf32>
    %207 = vector.shape_cast %206 : vector<8xf32> to vector<1x8xf32>
    %208 = arith.addf %142, %207 : vector<1x8xf32>
    %209 = arith.mulf %205, %201 : vector<24x8xf32>
    %cst_195 = arith.constant dense<0.000000e+00> : vector<8xf32>
    %210 = vector.multi_reduction <add>, %209, %cst_195 [0] : vector<24x8xf32> to vector<8xf32>
    %211 = vector.shape_cast %210 : vector<8xf32> to vector<1x8xf32>
    %212 = arith.addf %146, %211 : vector<1x8xf32>
    %213 = vector.shape_cast %201 : vector<24x8xf32> to vector<4x6x8xf32>
    %214 = vector.extract_strided_slice %213 {offsets = [0, 0, 0], sizes = [4, 4, 8], strides = [1, 1, 1]} : vector<4x6x8xf32> to vector<4x4x8xf32>
    %215 = arith.truncf %214 : vector<4x4x8xf32> to vector<4x4x8xbf16>
    %c0_196 = arith.constant 0 : index
    %c0_197 = arith.constant 0 : index
    %c2_198 = arith.constant 2 : index
    %c0_199 = arith.constant 0 : index
    %c0_200 = arith.constant 0 : index
    %c0_201 = arith.constant 0 : index
    %216 = vector.load %arg6[%c0_196, %c0_197, %c2_198, %c0_199, %c0_200, %c0_201] : memref<1x1x8x4x4x8xbf16, #tpu.memory_space<vmem>>, vector<1x1x1x4x4x8xbf16>
    %217 = vector.shape_cast %216 : vector<1x1x1x4x4x8xbf16> to vector<4x4x8xbf16>
    %218 = vector.shape_cast %215 : vector<4x4x8xbf16> to vector<1x1x1x4x4x8xbf16>
    tpu.vector_store %arg6[%c0_196, %c0_197, %c2_198, %c0_199, %c0_200, %c0_201], %218 {strides = array<i32>} : memref<1x1x8x4x4x8xbf16, #tpu.memory_space<vmem>>, vector<1x1x1x4x4x8xbf16>,
    %cst_202 = arith.constant 0.000000e+00 : f32
    %219 = vector.broadcast %cst_202 : f32 to vector<24x8xf32>
    %c0_203 = arith.constant 0 : index
    %c0_204 = arith.constant 0 : index
    %c7_205 = arith.constant 7 : index
    %c0_206 = arith.constant 0 : index
    %220 = vector.load %arg2[%c0_203, %c0_204, %c7_205, %c0_206] : memref<1x1x40x4xbf16, #tpu.memory_space<vmem>>, vector<1x1x24x4xbf16>
    %221 = vector.shape_cast %220 : vector<1x1x24x4xbf16> to vector<24x4xbf16>
    %c24 = arith.constant 24 : index
    %c0_207 = arith.constant 0 : index
    %c0_208 = arith.constant 0 : index
    %222 = vector.load %arg5[%c24, %c0_207, %c0_208] : memref<64x4x8xbf16, #tpu.memory_space<vmem>>, vector<1x4x8xbf16>
    %223 = vector.shape_cast %222 : vector<1x4x8xbf16> to vector<4x8xbf16>
    %cst_209 = arith.constant dense<0.000000e+00> : vector<24x8xf32>
    %224 = tpu.matmul %221, %223, %cst_209 {dimension_numbers = #tpu.dot_dimension_numbers<[1], [0], [0], [1], [0, 0, 1, 1], [], []>} : vector<24x4xbf16>, vector<4x8xbf16>, vector<24x8xf32> -> vector<24x8xf32>
    %225 = arith.addf %219, %224 : vector<24x8xf32>
    %c0_210 = arith.constant 0 : index
    %c0_211 = arith.constant 0 : index
    %c8_212 = arith.constant 8 : index
    %c0_213 = arith.constant 0 : index
    %226 = vector.load %arg2[%c0_210, %c0_211, %c8_212, %c0_213] : memref<1x1x40x4xbf16, #tpu.memory_space<vmem>>, vector<1x1x24x4xbf16>
    %227 = vector.shape_cast %226 : vector<1x1x24x4xbf16> to vector<24x4xbf16>
    %c25 = arith.constant 25 : index
    %c0_214 = arith.constant 0 : index
    %c0_215 = arith.constant 0 : index
    %228 = vector.load %arg5[%c25, %c0_214, %c0_215] : memref<64x4x8xbf16, #tpu.memory_space<vmem>>, vector<1x4x8xbf16>
    %229 = vector.shape_cast %228 : vector<1x4x8xbf16> to vector<4x8xbf16>
    %cst_216 = arith.constant dense<0.000000e+00> : vector<24x8xf32>
    %230 = tpu.matmul %227, %229, %cst_216 {dimension_numbers = #tpu.dot_dimension_numbers<[1], [0], [0], [1], [0, 0, 1, 1], [], []>} : vector<24x4xbf16>, vector<4x8xbf16>, vector<24x8xf32> -> vector<24x8xf32>
    %231 = arith.addf %225, %230 : vector<24x8xf32>
    %c0_217 = arith.constant 0 : index
    %c0_218 = arith.constant 0 : index
    %c13_219 = arith.constant 13 : index
    %c0_220 = arith.constant 0 : index
    %232 = vector.load %arg2[%c0_217, %c0_218, %c13_219, %c0_220] : memref<1x1x40x4xbf16, #tpu.memory_space<vmem>>, vector<1x1x24x4xbf16>
    %233 = vector.shape_cast %232 : vector<1x1x24x4xbf16> to vector<24x4xbf16>
    %c26 = arith.constant 26 : index
    %c0_221 = arith.constant 0 : index
    %c0_222 = arith.constant 0 : index
    %234 = vector.load %arg5[%c26, %c0_221, %c0_222] : memref<64x4x8xbf16, #tpu.memory_space<vmem>>, vector<1x4x8xbf16>
    %235 = vector.shape_cast %234 : vector<1x4x8xbf16> to vector<4x8xbf16>
    %cst_223 = arith.constant dense<0.000000e+00> : vector<24x8xf32>
    %236 = tpu.matmul %233, %235, %cst_223 {dimension_numbers = #tpu.dot_dimension_numbers<[1], [0], [0], [1], [0, 0, 1, 1], [], []>} : vector<24x4xbf16>, vector<4x8xbf16>, vector<24x8xf32> -> vector<24x8xf32>
    %237 = arith.addf %231, %236 : vector<24x8xf32>
    %c0_224 = arith.constant 0 : index
    %c0_225 = arith.constant 0 : index
    %c14_226 = arith.constant 14 : index
    %c0_227 = arith.constant 0 : index
    %238 = vector.load %arg2[%c0_224, %c0_225, %c14_226, %c0_227] : memref<1x1x40x4xbf16, #tpu.memory_space<vmem>>, vector<1x1x24x4xbf16>
    %239 = vector.shape_cast %238 : vector<1x1x24x4xbf16> to vector<24x4xbf16>
    %c27 = arith.constant 27 : index
    %c0_228 = arith.constant 0 : index
    %c0_229 = arith.constant 0 : index
    %240 = vector.load %arg5[%c27, %c0_228, %c0_229] : memref<64x4x8xbf16, #tpu.memory_space<vmem>>, vector<1x4x8xbf16>
    %241 = vector.shape_cast %240 : vector<1x4x8xbf16> to vector<4x8xbf16>
    %cst_230 = arith.constant dense<0.000000e+00> : vector<24x8xf32>
    %242 = tpu.matmul %239, %241, %cst_230 {dimension_numbers = #tpu.dot_dimension_numbers<[1], [0], [0], [1], [0, 0, 1, 1], [], []>} : vector<24x4xbf16>, vector<4x8xbf16>, vector<24x8xf32> -> vector<24x8xf32>
    %243 = arith.addf %237, %242 : vector<24x8xf32>
    %c0_231 = arith.constant 0 : index
    %c0_232 = arith.constant 0 : index
    %c7_233 = arith.constant 7 : index
    %c0_234 = arith.constant 0 : index
    %244 = vector.load %arg3[%c0_231, %c0_232, %c7_233, %c0_234] : memref<1x1x40x4xbf16, #tpu.memory_space<vmem>>, vector<1x1x24x4xbf16>
    %245 = vector.shape_cast %244 : vector<1x1x24x4xbf16> to vector<24x4xbf16>
    %c28 = arith.constant 28 : index
    %c0_235 = arith.constant 0 : index
    %c0_236 = arith.constant 0 : index
    %246 = vector.load %arg5[%c28, %c0_235, %c0_236] : memref<64x4x8xbf16, #tpu.memory_space<vmem>>, vector<1x4x8xbf16>
    %247 = vector.shape_cast %246 : vector<1x4x8xbf16> to vector<4x8xbf16>
    %cst_237 = arith.constant dense<0.000000e+00> : vector<24x8xf32>
    %248 = tpu.matmul %245, %247, %cst_237 {dimension_numbers = #tpu.dot_dimension_numbers<[1], [0], [0], [1], [0, 0, 1, 1], [], []>} : vector<24x4xbf16>, vector<4x8xbf16>, vector<24x8xf32> -> vector<24x8xf32>
    %249 = arith.addf %243, %248 : vector<24x8xf32>
    %c0_238 = arith.constant 0 : index
    %c0_239 = arith.constant 0 : index
    %c8_240 = arith.constant 8 : index
    %c0_241 = arith.constant 0 : index
    %250 = vector.load %arg3[%c0_238, %c0_239, %c8_240, %c0_241] : memref<1x1x40x4xbf16, #tpu.memory_space<vmem>>, vector<1x1x24x4xbf16>
    %251 = vector.shape_cast %250 : vector<1x1x24x4xbf16> to vector<24x4xbf16>
    %c29 = arith.constant 29 : index
    %c0_242 = arith.constant 0 : index
    %c0_243 = arith.constant 0 : index
    %252 = vector.load %arg5[%c29, %c0_242, %c0_243] : memref<64x4x8xbf16, #tpu.memory_space<vmem>>, vector<1x4x8xbf16>
    %253 = vector.shape_cast %252 : vector<1x4x8xbf16> to vector<4x8xbf16>
    %cst_244 = arith.constant dense<0.000000e+00> : vector<24x8xf32>
    %254 = tpu.matmul %251, %253, %cst_244 {dimension_numbers = #tpu.dot_dimension_numbers<[1], [0], [0], [1], [0, 0, 1, 1], [], []>} : vector<24x4xbf16>, vector<4x8xbf16>, vector<24x8xf32> -> vector<24x8xf32>
    %255 = arith.addf %249, %254 : vector<24x8xf32>
    %c0_245 = arith.constant 0 : index
    %c0_246 = arith.constant 0 : index
    %c13_247 = arith.constant 13 : index
    %c0_248 = arith.constant 0 : index
    %256 = vector.load %arg3[%c0_245, %c0_246, %c13_247, %c0_248] : memref<1x1x40x4xbf16, #tpu.memory_space<vmem>>, vector<1x1x24x4xbf16>
    %257 = vector.shape_cast %256 : vector<1x1x24x4xbf16> to vector<24x4xbf16>
    %c30 = arith.constant 30 : index
    %c0_249 = arith.constant 0 : index
    %c0_250 = arith.constant 0 : index
    %258 = vector.load %arg5[%c30, %c0_249, %c0_250] : memref<64x4x8xbf16, #tpu.memory_space<vmem>>, vector<1x4x8xbf16>
    %259 = vector.shape_cast %258 : vector<1x4x8xbf16> to vector<4x8xbf16>
    %cst_251 = arith.constant dense<0.000000e+00> : vector<24x8xf32>
    %260 = tpu.matmul %257, %259, %cst_251 {dimension_numbers = #tpu.dot_dimension_numbers<[1], [0], [0], [1], [0, 0, 1, 1], [], []>} : vector<24x4xbf16>, vector<4x8xbf16>, vector<24x8xf32> -> vector<24x8xf32>
    %261 = arith.addf %255, %260 : vector<24x8xf32>
    %c0_252 = arith.constant 0 : index
    %c0_253 = arith.constant 0 : index
    %c14_254 = arith.constant 14 : index
    %c0_255 = arith.constant 0 : index
    %262 = vector.load %arg3[%c0_252, %c0_253, %c14_254, %c0_255] : memref<1x1x40x4xbf16, #tpu.memory_space<vmem>>, vector<1x1x24x4xbf16>
    %263 = vector.shape_cast %262 : vector<1x1x24x4xbf16> to vector<24x4xbf16>
    %c31 = arith.constant 31 : index
    %c0_256 = arith.constant 0 : index
    %c0_257 = arith.constant 0 : index
    %264 = vector.load %arg5[%c31, %c0_256, %c0_257] : memref<64x4x8xbf16, #tpu.memory_space<vmem>>, vector<1x4x8xbf16>
    %265 = vector.shape_cast %264 : vector<1x4x8xbf16> to vector<4x8xbf16>
    %cst_258 = arith.constant dense<0.000000e+00> : vector<24x8xf32>
    %266 = tpu.matmul %263, %265, %cst_258 {dimension_numbers = #tpu.dot_dimension_numbers<[1], [0], [0], [1], [0, 0, 1, 1], [], []>} : vector<24x4xbf16>, vector<4x8xbf16>, vector<24x8xf32> -> vector<24x8xf32>
    %267 = arith.addf %261, %266 : vector<24x8xf32>
    %cst_259 = arith.constant 0.000000e+00 : f32
    %268 = vector.shape_cast %18 : vector<24x1xi1> to vector<24x1xi1>
    %269 = vector.broadcast %268 : vector<24x1xi1> to vector<24x8xi1>
    %270 = vector.broadcast %cst_259 : f32 to vector<24x8xf32>
    %271 = arith.select %269, %267, %270 : vector<24x8xi1>, vector<24x8xf32>
    %cst_260 = arith.constant dense<0.000000e+00> : vector<8xf32>
    %272 = vector.multi_reduction <add>, %271, %cst_260 [0] : vector<24x8xf32> to vector<8xf32>
    %273 = vector.shape_cast %272 : vector<8xf32> to vector<1x8xf32>
    %274 = arith.addf %208, %273 : vector<1x8xf32>
    %275 = arith.mulf %271, %267 : vector<24x8xf32>
    %cst_261 = arith.constant dense<0.000000e+00> : vector<8xf32>
    %276 = vector.multi_reduction <add>, %275, %cst_261 [0] : vector<24x8xf32> to vector<8xf32>
    %277 = vector.shape_cast %276 : vector<8xf32> to vector<1x8xf32>
    %278 = arith.addf %212, %277 : vector<1x8xf32>
    %279 = vector.shape_cast %267 : vector<24x8xf32> to vector<4x6x8xf32>
    %280 = vector.extract_strided_slice %279 {offsets = [0, 0, 0], sizes = [4, 4, 8], strides = [1, 1, 1]} : vector<4x6x8xf32> to vector<4x4x8xf32>
    %281 = arith.truncf %280 : vector<4x4x8xf32> to vector<4x4x8xbf16>
    %c0_262 = arith.constant 0 : index
    %c0_263 = arith.constant 0 : index
    %c3_264 = arith.constant 3 : index
    %c0_265 = arith.constant 0 : index
    %c0_266 = arith.constant 0 : index
    %c0_267 = arith.constant 0 : index
    %282 = vector.load %arg6[%c0_262, %c0_263, %c3_264, %c0_265, %c0_266, %c0_267] : memref<1x1x8x4x4x8xbf16, #tpu.memory_space<vmem>>, vector<1x1x1x4x4x8xbf16>
    %283 = vector.shape_cast %282 : vector<1x1x1x4x4x8xbf16> to vector<4x4x8xbf16>
    %284 = vector.shape_cast %281 : vector<4x4x8xbf16> to vector<1x1x1x4x4x8xbf16>
    tpu.vector_store %arg6[%c0_262, %c0_263, %c3_264, %c0_265, %c0_266, %c0_267], %284 {strides = array<i32>} : memref<1x1x8x4x4x8xbf16, #tpu.memory_space<vmem>>, vector<1x1x1x4x4x8xbf16>,
    %cst_268 = arith.constant 0.000000e+00 : f32
    %285 = vector.broadcast %cst_268 : f32 to vector<24x8xf32>
    %c0_269 = arith.constant 0 : index
    %c0_270 = arith.constant 0 : index
    %c0_271 = arith.constant 0 : index
    %c0_272 = arith.constant 0 : index
    %286 = vector.load %arg3[%c0_269, %c0_270, %c0_271, %c0_272] : memref<1x1x40x4xbf16, #tpu.memory_space<vmem>>, vector<1x1x24x4xbf16>
    %287 = vector.shape_cast %286 : vector<1x1x24x4xbf16> to vector<24x4xbf16>
    %c32 = arith.constant 32 : index
    %c0_273 = arith.constant 0 : index
    %c0_274 = arith.constant 0 : index
    %288 = vector.load %arg5[%c32, %c0_273, %c0_274] : memref<64x4x8xbf16, #tpu.memory_space<vmem>>, vector<1x4x8xbf16>
    %289 = vector.shape_cast %288 : vector<1x4x8xbf16> to vector<4x8xbf16>
    %cst_275 = arith.constant dense<0.000000e+00> : vector<24x8xf32>
    %290 = tpu.matmul %287, %289, %cst_275 {dimension_numbers = #tpu.dot_dimension_numbers<[1], [0], [0], [1], [0, 0, 1, 1], [], []>} : vector<24x4xbf16>, vector<4x8xbf16>, vector<24x8xf32> -> vector<24x8xf32>
    %291 = arith.addf %285, %290 : vector<24x8xf32>
    %c0_276 = arith.constant 0 : index
    %c0_277 = arith.constant 0 : index
    %c1_278 = arith.constant 1 : index
    %c0_279 = arith.constant 0 : index
    %292 = vector.load %arg3[%c0_276, %c0_277, %c1_278, %c0_279] : memref<1x1x40x4xbf16, #tpu.memory_space<vmem>>, vector<1x1x24x4xbf16>
    %293 = vector.shape_cast %292 : vector<1x1x24x4xbf16> to vector<24x4xbf16>
    %c33 = arith.constant 33 : index
    %c0_280 = arith.constant 0 : index
    %c0_281 = arith.constant 0 : index
    %294 = vector.load %arg5[%c33, %c0_280, %c0_281] : memref<64x4x8xbf16, #tpu.memory_space<vmem>>, vector<1x4x8xbf16>
    %295 = vector.shape_cast %294 : vector<1x4x8xbf16> to vector<4x8xbf16>
    %cst_282 = arith.constant dense<0.000000e+00> : vector<24x8xf32>
    %296 = tpu.matmul %293, %295, %cst_282 {dimension_numbers = #tpu.dot_dimension_numbers<[1], [0], [0], [1], [0, 0, 1, 1], [], []>} : vector<24x4xbf16>, vector<4x8xbf16>, vector<24x8xf32> -> vector<24x8xf32>
    %297 = arith.addf %291, %296 : vector<24x8xf32>
    %c0_283 = arith.constant 0 : index
    %c0_284 = arith.constant 0 : index
    %c6_285 = arith.constant 6 : index
    %c0_286 = arith.constant 0 : index
    %298 = vector.load %arg3[%c0_283, %c0_284, %c6_285, %c0_286] : memref<1x1x40x4xbf16, #tpu.memory_space<vmem>>, vector<1x1x24x4xbf16>
    %299 = vector.shape_cast %298 : vector<1x1x24x4xbf16> to vector<24x4xbf16>
    %c34 = arith.constant 34 : index
    %c0_287 = arith.constant 0 : index
    %c0_288 = arith.constant 0 : index
    %300 = vector.load %arg5[%c34, %c0_287, %c0_288] : memref<64x4x8xbf16, #tpu.memory_space<vmem>>, vector<1x4x8xbf16>
    %301 = vector.shape_cast %300 : vector<1x4x8xbf16> to vector<4x8xbf16>
    %cst_289 = arith.constant dense<0.000000e+00> : vector<24x8xf32>
    %302 = tpu.matmul %299, %301, %cst_289 {dimension_numbers = #tpu.dot_dimension_numbers<[1], [0], [0], [1], [0, 0, 1, 1], [], []>} : vector<24x4xbf16>, vector<4x8xbf16>, vector<24x8xf32> -> vector<24x8xf32>
    %303 = arith.addf %297, %302 : vector<24x8xf32>
    %c0_290 = arith.constant 0 : index
    %c0_291 = arith.constant 0 : index
    %c7_292 = arith.constant 7 : index
    %c0_293 = arith.constant 0 : index
    %304 = vector.load %arg3[%c0_290, %c0_291, %c7_292, %c0_293] : memref<1x1x40x4xbf16, #tpu.memory_space<vmem>>, vector<1x1x24x4xbf16>
    %305 = vector.shape_cast %304 : vector<1x1x24x4xbf16> to vector<24x4xbf16>
    %c35 = arith.constant 35 : index
    %c0_294 = arith.constant 0 : index
    %c0_295 = arith.constant 0 : index
    %306 = vector.load %arg5[%c35, %c0_294, %c0_295] : memref<64x4x8xbf16, #tpu.memory_space<vmem>>, vector<1x4x8xbf16>
    %307 = vector.shape_cast %306 : vector<1x4x8xbf16> to vector<4x8xbf16>
    %cst_296 = arith.constant dense<0.000000e+00> : vector<24x8xf32>
    %308 = tpu.matmul %305, %307, %cst_296 {dimension_numbers = #tpu.dot_dimension_numbers<[1], [0], [0], [1], [0, 0, 1, 1], [], []>} : vector<24x4xbf16>, vector<4x8xbf16>, vector<24x8xf32> -> vector<24x8xf32>
    %309 = arith.addf %303, %308 : vector<24x8xf32>
    %c0_297 = arith.constant 0 : index
    %c0_298 = arith.constant 0 : index
    %c0_299 = arith.constant 0 : index
    %c0_300 = arith.constant 0 : index
    %310 = vector.load %arg4[%c0_297, %c0_298, %c0_299, %c0_300] : memref<1x1x40x4xbf16, #tpu.memory_space<vmem>>, vector<1x1x24x4xbf16>
    %311 = vector.shape_cast %310 : vector<1x1x24x4xbf16> to vector<24x4xbf16>
    %c36 = arith.constant 36 : index
    %c0_301 = arith.constant 0 : index
    %c0_302 = arith.constant 0 : index
    %312 = vector.load %arg5[%c36, %c0_301, %c0_302] : memref<64x4x8xbf16, #tpu.memory_space<vmem>>, vector<1x4x8xbf16>
    %313 = vector.shape_cast %312 : vector<1x4x8xbf16> to vector<4x8xbf16>
    %cst_303 = arith.constant dense<0.000000e+00> : vector<24x8xf32>
    %314 = tpu.matmul %311, %313, %cst_303 {dimension_numbers = #tpu.dot_dimension_numbers<[1], [0], [0], [1], [0, 0, 1, 1], [], []>} : vector<24x4xbf16>, vector<4x8xbf16>, vector<24x8xf32> -> vector<24x8xf32>
    %315 = arith.addf %309, %314 : vector<24x8xf32>
    %c0_304 = arith.constant 0 : index
    %c0_305 = arith.constant 0 : index
    %c1_306 = arith.constant 1 : index
    %c0_307 = arith.constant 0 : index
    %316 = vector.load %arg4[%c0_304, %c0_305, %c1_306, %c0_307] : memref<1x1x40x4xbf16, #tpu.memory_space<vmem>>, vector<1x1x24x4xbf16>
    %317 = vector.shape_cast %316 : vector<1x1x24x4xbf16> to vector<24x4xbf16>
    %c37 = arith.constant 37 : index
    %c0_308 = arith.constant 0 : index
    %c0_309 = arith.constant 0 : index
    %318 = vector.load %arg5[%c37, %c0_308, %c0_309] : memref<64x4x8xbf16, #tpu.memory_space<vmem>>, vector<1x4x8xbf16>
    %319 = vector.shape_cast %318 : vector<1x4x8xbf16> to vector<4x8xbf16>
    %cst_310 = arith.constant dense<0.000000e+00> : vector<24x8xf32>
    %320 = tpu.matmul %317, %319, %cst_310 {dimension_numbers = #tpu.dot_dimension_numbers<[1], [0], [0], [1], [0, 0, 1, 1], [], []>} : vector<24x4xbf16>, vector<4x8xbf16>, vector<24x8xf32> -> vector<24x8xf32>
    %321 = arith.addf %315, %320 : vector<24x8xf32>
    %c0_311 = arith.constant 0 : index
    %c0_312 = arith.constant 0 : index
    %c6_313 = arith.constant 6 : index
    %c0_314 = arith.constant 0 : index
    %322 = vector.load %arg4[%c0_311, %c0_312, %c6_313, %c0_314] : memref<1x1x40x4xbf16, #tpu.memory_space<vmem>>, vector<1x1x24x4xbf16>
    %323 = vector.shape_cast %322 : vector<1x1x24x4xbf16> to vector<24x4xbf16>
    %c38 = arith.constant 38 : index
    %c0_315 = arith.constant 0 : index
    %c0_316 = arith.constant 0 : index
    %324 = vector.load %arg5[%c38, %c0_315, %c0_316] : memref<64x4x8xbf16, #tpu.memory_space<vmem>>, vector<1x4x8xbf16>
    %325 = vector.shape_cast %324 : vector<1x4x8xbf16> to vector<4x8xbf16>
    %cst_317 = arith.constant dense<0.000000e+00> : vector<24x8xf32>
    %326 = tpu.matmul %323, %325, %cst_317 {dimension_numbers = #tpu.dot_dimension_numbers<[1], [0], [0], [1], [0, 0, 1, 1], [], []>} : vector<24x4xbf16>, vector<4x8xbf16>, vector<24x8xf32> -> vector<24x8xf32>
    %327 = arith.addf %321, %326 : vector<24x8xf32>
    %c0_318 = arith.constant 0 : index
    %c0_319 = arith.constant 0 : index
    %c7_320 = arith.constant 7 : index
    %c0_321 = arith.constant 0 : index
    %328 = vector.load %arg4[%c0_318, %c0_319, %c7_320, %c0_321] : memref<1x1x40x4xbf16, #tpu.memory_space<vmem>>, vector<1x1x24x4xbf16>
    %329 = vector.shape_cast %328 : vector<1x1x24x4xbf16> to vector<24x4xbf16>
    %c39 = arith.constant 39 : index
    %c0_322 = arith.constant 0 : index
    %c0_323 = arith.constant 0 : index
    %330 = vector.load %arg5[%c39, %c0_322, %c0_323] : memref<64x4x8xbf16, #tpu.memory_space<vmem>>, vector<1x4x8xbf16>
    %331 = vector.shape_cast %330 : vector<1x4x8xbf16> to vector<4x8xbf16>
    %cst_324 = arith.constant dense<0.000000e+00> : vector<24x8xf32>
    %332 = tpu.matmul %329, %331, %cst_324 {dimension_numbers = #tpu.dot_dimension_numbers<[1], [0], [0], [1], [0, 0, 1, 1], [], []>} : vector<24x4xbf16>, vector<4x8xbf16>, vector<24x8xf32> -> vector<24x8xf32>
    %333 = arith.addf %327, %332 : vector<24x8xf32>
    %cst_325 = arith.constant 0.000000e+00 : f32
    %334 = vector.shape_cast %18 : vector<24x1xi1> to vector<24x1xi1>
    %335 = vector.broadcast %334 : vector<24x1xi1> to vector<24x8xi1>
    %336 = vector.broadcast %cst_325 : f32 to vector<24x8xf32>
    %337 = arith.select %335, %333, %336 : vector<24x8xi1>, vector<24x8xf32>
    %cst_326 = arith.constant dense<0.000000e+00> : vector<8xf32>
    %338 = vector.multi_reduction <add>, %337, %cst_326 [0] : vector<24x8xf32> to vector<8xf32>
    %339 = vector.shape_cast %338 : vector<8xf32> to vector<1x8xf32>
    %340 = arith.addf %274, %339 : vector<1x8xf32>
    %341 = arith.mulf %337, %333 : vector<24x8xf32>
    %cst_327 = arith.constant dense<0.000000e+00> : vector<8xf32>
    %342 = vector.multi_reduction <add>, %341, %cst_327 [0] : vector<24x8xf32> to vector<8xf32>
    %343 = vector.shape_cast %342 : vector<8xf32> to vector<1x8xf32>
    %344 = arith.addf %278, %343 : vector<1x8xf32>
    %345 = vector.shape_cast %333 : vector<24x8xf32> to vector<4x6x8xf32>
    %346 = vector.extract_strided_slice %345 {offsets = [0, 0, 0], sizes = [4, 4, 8], strides = [1, 1, 1]} : vector<4x6x8xf32> to vector<4x4x8xf32>
    %347 = arith.truncf %346 : vector<4x4x8xf32> to vector<4x4x8xbf16>
    %c0_328 = arith.constant 0 : index
    %c0_329 = arith.constant 0 : index
    %c4_330 = arith.constant 4 : index
    %c0_331 = arith.constant 0 : index
    %c0_332 = arith.constant 0 : index
    %c0_333 = arith.constant 0 : index
    %348 = vector.load %arg6[%c0_328, %c0_329, %c4_330, %c0_331, %c0_332, %c0_333] : memref<1x1x8x4x4x8xbf16, #tpu.memory_space<vmem>>, vector<1x1x1x4x4x8xbf16>
    %349 = vector.shape_cast %348 : vector<1x1x1x4x4x8xbf16> to vector<4x4x8xbf16>
    %350 = vector.shape_cast %347 : vector<4x4x8xbf16> to vector<1x1x1x4x4x8xbf16>
    tpu.vector_store %arg6[%c0_328, %c0_329, %c4_330, %c0_331, %c0_332, %c0_333], %350 {strides = array<i32>} : memref<1x1x8x4x4x8xbf16, #tpu.memory_space<vmem>>, vector<1x1x1x4x4x8xbf16>,
    %cst_334 = arith.constant 0.000000e+00 : f32
    %351 = vector.broadcast %cst_334 : f32 to vector<24x8xf32>
    %c0_335 = arith.constant 0 : index
    %c0_336 = arith.constant 0 : index
    %c1_337 = arith.constant 1 : index
    %c0_338 = arith.constant 0 : index
    %352 = vector.load %arg3[%c0_335, %c0_336, %c1_337, %c0_338] : memref<1x1x40x4xbf16, #tpu.memory_space<vmem>>, vector<1x1x24x4xbf16>
    %353 = vector.shape_cast %352 : vector<1x1x24x4xbf16> to vector<24x4xbf16>
    %c40 = arith.constant 40 : index
    %c0_339 = arith.constant 0 : index
    %c0_340 = arith.constant 0 : index
    %354 = vector.load %arg5[%c40, %c0_339, %c0_340] : memref<64x4x8xbf16, #tpu.memory_space<vmem>>, vector<1x4x8xbf16>
    %355 = vector.shape_cast %354 : vector<1x4x8xbf16> to vector<4x8xbf16>
    %cst_341 = arith.constant dense<0.000000e+00> : vector<24x8xf32>
    %356 = tpu.matmul %353, %355, %cst_341 {dimension_numbers = #tpu.dot_dimension_numbers<[1], [0], [0], [1], [0, 0, 1, 1], [], []>} : vector<24x4xbf16>, vector<4x8xbf16>, vector<24x8xf32> -> vector<24x8xf32>
    %357 = arith.addf %351, %356 : vector<24x8xf32>
    %c0_342 = arith.constant 0 : index
    %c0_343 = arith.constant 0 : index
    %c2_344 = arith.constant 2 : index
    %c0_345 = arith.constant 0 : index
    %358 = vector.load %arg3[%c0_342, %c0_343, %c2_344, %c0_345] : memref<1x1x40x4xbf16, #tpu.memory_space<vmem>>, vector<1x1x24x4xbf16>
    %359 = vector.shape_cast %358 : vector<1x1x24x4xbf16> to vector<24x4xbf16>
    %c41 = arith.constant 41 : index
    %c0_346 = arith.constant 0 : index
    %c0_347 = arith.constant 0 : index
    %360 = vector.load %arg5[%c41, %c0_346, %c0_347] : memref<64x4x8xbf16, #tpu.memory_space<vmem>>, vector<1x4x8xbf16>
    %361 = vector.shape_cast %360 : vector<1x4x8xbf16> to vector<4x8xbf16>
    %cst_348 = arith.constant dense<0.000000e+00> : vector<24x8xf32>
    %362 = tpu.matmul %359, %361, %cst_348 {dimension_numbers = #tpu.dot_dimension_numbers<[1], [0], [0], [1], [0, 0, 1, 1], [], []>} : vector<24x4xbf16>, vector<4x8xbf16>, vector<24x8xf32> -> vector<24x8xf32>
    %363 = arith.addf %357, %362 : vector<24x8xf32>
    %c0_349 = arith.constant 0 : index
    %c0_350 = arith.constant 0 : index
    %c7_351 = arith.constant 7 : index
    %c0_352 = arith.constant 0 : index
    %364 = vector.load %arg3[%c0_349, %c0_350, %c7_351, %c0_352] : memref<1x1x40x4xbf16, #tpu.memory_space<vmem>>, vector<1x1x24x4xbf16>
    %365 = vector.shape_cast %364 : vector<1x1x24x4xbf16> to vector<24x4xbf16>
    %c42 = arith.constant 42 : index
    %c0_353 = arith.constant 0 : index
    %c0_354 = arith.constant 0 : index
    %366 = vector.load %arg5[%c42, %c0_353, %c0_354] : memref<64x4x8xbf16, #tpu.memory_space<vmem>>, vector<1x4x8xbf16>
    %367 = vector.shape_cast %366 : vector<1x4x8xbf16> to vector<4x8xbf16>
    %cst_355 = arith.constant dense<0.000000e+00> : vector<24x8xf32>
    %368 = tpu.matmul %365, %367, %cst_355 {dimension_numbers = #tpu.dot_dimension_numbers<[1], [0], [0], [1], [0, 0, 1, 1], [], []>} : vector<24x4xbf16>, vector<4x8xbf16>, vector<24x8xf32> -> vector<24x8xf32>
    %369 = arith.addf %363, %368 : vector<24x8xf32>
    %c0_356 = arith.constant 0 : index
    %c0_357 = arith.constant 0 : index
    %c8_358 = arith.constant 8 : index
    %c0_359 = arith.constant 0 : index
    %370 = vector.load %arg3[%c0_356, %c0_357, %c8_358, %c0_359] : memref<1x1x40x4xbf16, #tpu.memory_space<vmem>>, vector<1x1x24x4xbf16>
    %371 = vector.shape_cast %370 : vector<1x1x24x4xbf16> to vector<24x4xbf16>
    %c43 = arith.constant 43 : index
    %c0_360 = arith.constant 0 : index
    %c0_361 = arith.constant 0 : index
    %372 = vector.load %arg5[%c43, %c0_360, %c0_361] : memref<64x4x8xbf16, #tpu.memory_space<vmem>>, vector<1x4x8xbf16>
    %373 = vector.shape_cast %372 : vector<1x4x8xbf16> to vector<4x8xbf16>
    %cst_362 = arith.constant dense<0.000000e+00> : vector<24x8xf32>
    %374 = tpu.matmul %371, %373, %cst_362 {dimension_numbers = #tpu.dot_dimension_numbers<[1], [0], [0], [1], [0, 0, 1, 1], [], []>} : vector<24x4xbf16>, vector<4x8xbf16>, vector<24x8xf32> -> vector<24x8xf32>
    %375 = arith.addf %369, %374 : vector<24x8xf32>
    %c0_363 = arith.constant 0 : index
    %c0_364 = arith.constant 0 : index
    %c1_365 = arith.constant 1 : index
    %c0_366 = arith.constant 0 : index
    %376 = vector.load %arg4[%c0_363, %c0_364, %c1_365, %c0_366] : memref<1x1x40x4xbf16, #tpu.memory_space<vmem>>, vector<1x1x24x4xbf16>
    %377 = vector.shape_cast %376 : vector<1x1x24x4xbf16> to vector<24x4xbf16>
    %c44 = arith.constant 44 : index
    %c0_367 = arith.constant 0 : index
    %c0_368 = arith.constant 0 : index
    %378 = vector.load %arg5[%c44, %c0_367, %c0_368] : memref<64x4x8xbf16, #tpu.memory_space<vmem>>, vector<1x4x8xbf16>
    %379 = vector.shape_cast %378 : vector<1x4x8xbf16> to vector<4x8xbf16>
    %cst_369 = arith.constant dense<0.000000e+00> : vector<24x8xf32>
    %380 = tpu.matmul %377, %379, %cst_369 {dimension_numbers = #tpu.dot_dimension_numbers<[1], [0], [0], [1], [0, 0, 1, 1], [], []>} : vector<24x4xbf16>, vector<4x8xbf16>, vector<24x8xf32> -> vector<24x8xf32>
    %381 = arith.addf %375, %380 : vector<24x8xf32>
    %c0_370 = arith.constant 0 : index
    %c0_371 = arith.constant 0 : index
    %c2_372 = arith.constant 2 : index
    %c0_373 = arith.constant 0 : index
    %382 = vector.load %arg4[%c0_370, %c0_371, %c2_372, %c0_373] : memref<1x1x40x4xbf16, #tpu.memory_space<vmem>>, vector<1x1x24x4xbf16>
    %383 = vector.shape_cast %382 : vector<1x1x24x4xbf16> to vector<24x4xbf16>
    %c45 = arith.constant 45 : index
    %c0_374 = arith.constant 0 : index
    %c0_375 = arith.constant 0 : index
    %384 = vector.load %arg5[%c45, %c0_374, %c0_375] : memref<64x4x8xbf16, #tpu.memory_space<vmem>>, vector<1x4x8xbf16>
    %385 = vector.shape_cast %384 : vector<1x4x8xbf16> to vector<4x8xbf16>
    %cst_376 = arith.constant dense<0.000000e+00> : vector<24x8xf32>
    %386 = tpu.matmul %383, %385, %cst_376 {dimension_numbers = #tpu.dot_dimension_numbers<[1], [0], [0], [1], [0, 0, 1, 1], [], []>} : vector<24x4xbf16>, vector<4x8xbf16>, vector<24x8xf32> -> vector<24x8xf32>
    %387 = arith.addf %381, %386 : vector<24x8xf32>
    %c0_377 = arith.constant 0 : index
    %c0_378 = arith.constant 0 : index
    %c7_379 = arith.constant 7 : index
    %c0_380 = arith.constant 0 : index
    %388 = vector.load %arg4[%c0_377, %c0_378, %c7_379, %c0_380] : memref<1x1x40x4xbf16, #tpu.memory_space<vmem>>, vector<1x1x24x4xbf16>
    %389 = vector.shape_cast %388 : vector<1x1x24x4xbf16> to vector<24x4xbf16>
    %c46 = arith.constant 46 : index
    %c0_381 = arith.constant 0 : index
    %c0_382 = arith.constant 0 : index
    %390 = vector.load %arg5[%c46, %c0_381, %c0_382] : memref<64x4x8xbf16, #tpu.memory_space<vmem>>, vector<1x4x8xbf16>
    %391 = vector.shape_cast %390 : vector<1x4x8xbf16> to vector<4x8xbf16>
    %cst_383 = arith.constant dense<0.000000e+00> : vector<24x8xf32>
    %392 = tpu.matmul %389, %391, %cst_383 {dimension_numbers = #tpu.dot_dimension_numbers<[1], [0], [0], [1], [0, 0, 1, 1], [], []>} : vector<24x4xbf16>, vector<4x8xbf16>, vector<24x8xf32> -> vector<24x8xf32>
    %393 = arith.addf %387, %392 : vector<24x8xf32>
    %c0_384 = arith.constant 0 : index
    %c0_385 = arith.constant 0 : index
    %c8_386 = arith.constant 8 : index
    %c0_387 = arith.constant 0 : index
    %394 = vector.load %arg4[%c0_384, %c0_385, %c8_386, %c0_387] : memref<1x1x40x4xbf16, #tpu.memory_space<vmem>>, vector<1x1x24x4xbf16>
    %395 = vector.shape_cast %394 : vector<1x1x24x4xbf16> to vector<24x4xbf16>
    %c47 = arith.constant 47 : index
    %c0_388 = arith.constant 0 : index
    %c0_389 = arith.constant 0 : index
    %396 = vector.load %arg5[%c47, %c0_388, %c0_389] : memref<64x4x8xbf16, #tpu.memory_space<vmem>>, vector<1x4x8xbf16>
    %397 = vector.shape_cast %396 : vector<1x4x8xbf16> to vector<4x8xbf16>
    %cst_390 = arith.constant dense<0.000000e+00> : vector<24x8xf32>
    %398 = tpu.matmul %395, %397, %cst_390 {dimension_numbers = #tpu.dot_dimension_numbers<[1], [0], [0], [1], [0, 0, 1, 1], [], []>} : vector<24x4xbf16>, vector<4x8xbf16>, vector<24x8xf32> -> vector<24x8xf32>
    %399 = arith.addf %393, %398 : vector<24x8xf32>
    %cst_391 = arith.constant 0.000000e+00 : f32
    %400 = vector.shape_cast %18 : vector<24x1xi1> to vector<24x1xi1>
    %401 = vector.broadcast %400 : vector<24x1xi1> to vector<24x8xi1>
    %402 = vector.broadcast %cst_391 : f32 to vector<24x8xf32>
    %403 = arith.select %401, %399, %402 : vector<24x8xi1>, vector<24x8xf32>
    %cst_392 = arith.constant dense<0.000000e+00> : vector<8xf32>
    %404 = vector.multi_reduction <add>, %403, %cst_392 [0] : vector<24x8xf32> to vector<8xf32>
    %405 = vector.shape_cast %404 : vector<8xf32> to vector<1x8xf32>
    %406 = arith.addf %340, %405 : vector<1x8xf32>
    %407 = arith.mulf %403, %399 : vector<24x8xf32>
    %cst_393 = arith.constant dense<0.000000e+00> : vector<8xf32>
    %408 = vector.multi_reduction <add>, %407, %cst_393 [0] : vector<24x8xf32> to vector<8xf32>
    %409 = vector.shape_cast %408 : vector<8xf32> to vector<1x8xf32>
    %410 = arith.addf %344, %409 : vector<1x8xf32>
    %411 = vector.shape_cast %399 : vector<24x8xf32> to vector<4x6x8xf32>
    %412 = vector.extract_strided_slice %411 {offsets = [0, 0, 0], sizes = [4, 4, 8], strides = [1, 1, 1]} : vector<4x6x8xf32> to vector<4x4x8xf32>
    %413 = arith.truncf %412 : vector<4x4x8xf32> to vector<4x4x8xbf16>
    %c0_394 = arith.constant 0 : index
    %c0_395 = arith.constant 0 : index
    %c5_396 = arith.constant 5 : index
    %c0_397 = arith.constant 0 : index
    %c0_398 = arith.constant 0 : index
    %c0_399 = arith.constant 0 : index
    %414 = vector.load %arg6[%c0_394, %c0_395, %c5_396, %c0_397, %c0_398, %c0_399] : memref<1x1x8x4x4x8xbf16, #tpu.memory_space<vmem>>, vector<1x1x1x4x4x8xbf16>
    %415 = vector.shape_cast %414 : vector<1x1x1x4x4x8xbf16> to vector<4x4x8xbf16>
    %416 = vector.shape_cast %413 : vector<4x4x8xbf16> to vector<1x1x1x4x4x8xbf16>
    tpu.vector_store %arg6[%c0_394, %c0_395, %c5_396, %c0_397, %c0_398, %c0_399], %416 {strides = array<i32>} : memref<1x1x8x4x4x8xbf16, #tpu.memory_space<vmem>>, vector<1x1x1x4x4x8xbf16>,
    %cst_400 = arith.constant 0.000000e+00 : f32
    %417 = vector.broadcast %cst_400 : f32 to vector<24x8xf32>
    %c0_401 = arith.constant 0 : index
    %c0_402 = arith.constant 0 : index
    %c6_403 = arith.constant 6 : index
    %c0_404 = arith.constant 0 : index
    %418 = vector.load %arg3[%c0_401, %c0_402, %c6_403, %c0_404] : memref<1x1x40x4xbf16, #tpu.memory_space<vmem>>, vector<1x1x24x4xbf16>
    %419 = vector.shape_cast %418 : vector<1x1x24x4xbf16> to vector<24x4xbf16>
    %c48 = arith.constant 48 : index
    %c0_405 = arith.constant 0 : index
    %c0_406 = arith.constant 0 : index
    %420 = vector.load %arg5[%c48, %c0_405, %c0_406] : memref<64x4x8xbf16, #tpu.memory_space<vmem>>, vector<1x4x8xbf16>
    %421 = vector.shape_cast %420 : vector<1x4x8xbf16> to vector<4x8xbf16>
    %cst_407 = arith.constant dense<0.000000e+00> : vector<24x8xf32>
    %422 = tpu.matmul %419, %421, %cst_407 {dimension_numbers = #tpu.dot_dimension_numbers<[1], [0], [0], [1], [0, 0, 1, 1], [], []>} : vector<24x4xbf16>, vector<4x8xbf16>, vector<24x8xf32> -> vector<24x8xf32>
    %423 = arith.addf %417, %422 : vector<24x8xf32>
    %c0_408 = arith.constant 0 : index
    %c0_409 = arith.constant 0 : index
    %c7_410 = arith.constant 7 : index
    %c0_411 = arith.constant 0 : index
    %424 = vector.load %arg3[%c0_408, %c0_409, %c7_410, %c0_411] : memref<1x1x40x4xbf16, #tpu.memory_space<vmem>>, vector<1x1x24x4xbf16>
    %425 = vector.shape_cast %424 : vector<1x1x24x4xbf16> to vector<24x4xbf16>
    %c49 = arith.constant 49 : index
    %c0_412 = arith.constant 0 : index
    %c0_413 = arith.constant 0 : index
    %426 = vector.load %arg5[%c49, %c0_412, %c0_413] : memref<64x4x8xbf16, #tpu.memory_space<vmem>>, vector<1x4x8xbf16>
    %427 = vector.shape_cast %426 : vector<1x4x8xbf16> to vector<4x8xbf16>
    %cst_414 = arith.constant dense<0.000000e+00> : vector<24x8xf32>
    %428 = tpu.matmul %425, %427, %cst_414 {dimension_numbers = #tpu.dot_dimension_numbers<[1], [0], [0], [1], [0, 0, 1, 1], [], []>} : vector<24x4xbf16>, vector<4x8xbf16>, vector<24x8xf32> -> vector<24x8xf32>
    %429 = arith.addf %423, %428 : vector<24x8xf32>
    %c0_415 = arith.constant 0 : index
    %c0_416 = arith.constant 0 : index
    %c12_417 = arith.constant 12 : index
    %c0_418 = arith.constant 0 : index
    %430 = vector.load %arg3[%c0_415, %c0_416, %c12_417, %c0_418] : memref<1x1x40x4xbf16, #tpu.memory_space<vmem>>, vector<1x1x24x4xbf16>
    %431 = vector.shape_cast %430 : vector<1x1x24x4xbf16> to vector<24x4xbf16>
    %c50 = arith.constant 50 : index
    %c0_419 = arith.constant 0 : index
    %c0_420 = arith.constant 0 : index
    %432 = vector.load %arg5[%c50, %c0_419, %c0_420] : memref<64x4x8xbf16, #tpu.memory_space<vmem>>, vector<1x4x8xbf16>
    %433 = vector.shape_cast %432 : vector<1x4x8xbf16> to vector<4x8xbf16>
    %cst_421 = arith.constant dense<0.000000e+00> : vector<24x8xf32>
    %434 = tpu.matmul %431, %433, %cst_421 {dimension_numbers = #tpu.dot_dimension_numbers<[1], [0], [0], [1], [0, 0, 1, 1], [], []>} : vector<24x4xbf16>, vector<4x8xbf16>, vector<24x8xf32> -> vector<24x8xf32>
    %435 = arith.addf %429, %434 : vector<24x8xf32>
    %c0_422 = arith.constant 0 : index
    %c0_423 = arith.constant 0 : index
    %c13_424 = arith.constant 13 : index
    %c0_425 = arith.constant 0 : index
    %436 = vector.load %arg3[%c0_422, %c0_423, %c13_424, %c0_425] : memref<1x1x40x4xbf16, #tpu.memory_space<vmem>>, vector<1x1x24x4xbf16>
    %437 = vector.shape_cast %436 : vector<1x1x24x4xbf16> to vector<24x4xbf16>
    %c51 = arith.constant 51 : index
    %c0_426 = arith.constant 0 : index
    %c0_427 = arith.constant 0 : index
    %438 = vector.load %arg5[%c51, %c0_426, %c0_427] : memref<64x4x8xbf16, #tpu.memory_space<vmem>>, vector<1x4x8xbf16>
    %439 = vector.shape_cast %438 : vector<1x4x8xbf16> to vector<4x8xbf16>
    %cst_428 = arith.constant dense<0.000000e+00> : vector<24x8xf32>
    %440 = tpu.matmul %437, %439, %cst_428 {dimension_numbers = #tpu.dot_dimension_numbers<[1], [0], [0], [1], [0, 0, 1, 1], [], []>} : vector<24x4xbf16>, vector<4x8xbf16>, vector<24x8xf32> -> vector<24x8xf32>
    %441 = arith.addf %435, %440 : vector<24x8xf32>
    %c0_429 = arith.constant 0 : index
    %c0_430 = arith.constant 0 : index
    %c6_431 = arith.constant 6 : index
    %c0_432 = arith.constant 0 : index
    %442 = vector.load %arg4[%c0_429, %c0_430, %c6_431, %c0_432] : memref<1x1x40x4xbf16, #tpu.memory_space<vmem>>, vector<1x1x24x4xbf16>
    %443 = vector.shape_cast %442 : vector<1x1x24x4xbf16> to vector<24x4xbf16>
    %c52 = arith.constant 52 : index
    %c0_433 = arith.constant 0 : index
    %c0_434 = arith.constant 0 : index
    %444 = vector.load %arg5[%c52, %c0_433, %c0_434] : memref<64x4x8xbf16, #tpu.memory_space<vmem>>, vector<1x4x8xbf16>
    %445 = vector.shape_cast %444 : vector<1x4x8xbf16> to vector<4x8xbf16>
    %cst_435 = arith.constant dense<0.000000e+00> : vector<24x8xf32>
    %446 = tpu.matmul %443, %445, %cst_435 {dimension_numbers = #tpu.dot_dimension_numbers<[1], [0], [0], [1], [0, 0, 1, 1], [], []>} : vector<24x4xbf16>, vector<4x8xbf16>, vector<24x8xf32> -> vector<24x8xf32>
    %447 = arith.addf %441, %446 : vector<24x8xf32>
    %c0_436 = arith.constant 0 : index
    %c0_437 = arith.constant 0 : index
    %c7_438 = arith.constant 7 : index
    %c0_439 = arith.constant 0 : index
    %448 = vector.load %arg4[%c0_436, %c0_437, %c7_438, %c0_439] : memref<1x1x40x4xbf16, #tpu.memory_space<vmem>>, vector<1x1x24x4xbf16>
    %449 = vector.shape_cast %448 : vector<1x1x24x4xbf16> to vector<24x4xbf16>
    %c53 = arith.constant 53 : index
    %c0_440 = arith.constant 0 : index
    %c0_441 = arith.constant 0 : index
    %450 = vector.load %arg5[%c53, %c0_440, %c0_441] : memref<64x4x8xbf16, #tpu.memory_space<vmem>>, vector<1x4x8xbf16>
    %451 = vector.shape_cast %450 : vector<1x4x8xbf16> to vector<4x8xbf16>
    %cst_442 = arith.constant dense<0.000000e+00> : vector<24x8xf32>
    %452 = tpu.matmul %449, %451, %cst_442 {dimension_numbers = #tpu.dot_dimension_numbers<[1], [0], [0], [1], [0, 0, 1, 1], [], []>} : vector<24x4xbf16>, vector<4x8xbf16>, vector<24x8xf32> -> vector<24x8xf32>
    %453 = arith.addf %447, %452 : vector<24x8xf32>
    %c0_443 = arith.constant 0 : index
    %c0_444 = arith.constant 0 : index
    %c12_445 = arith.constant 12 : index
    %c0_446 = arith.constant 0 : index
    %454 = vector.load %arg4[%c0_443, %c0_444, %c12_445, %c0_446] : memref<1x1x40x4xbf16, #tpu.memory_space<vmem>>, vector<1x1x24x4xbf16>
    %455 = vector.shape_cast %454 : vector<1x1x24x4xbf16> to vector<24x4xbf16>
    %c54 = arith.constant 54 : index
    %c0_447 = arith.constant 0 : index
    %c0_448 = arith.constant 0 : index
    %456 = vector.load %arg5[%c54, %c0_447, %c0_448] : memref<64x4x8xbf16, #tpu.memory_space<vmem>>, vector<1x4x8xbf16>
    %457 = vector.shape_cast %456 : vector<1x4x8xbf16> to vector<4x8xbf16>
    %cst_449 = arith.constant dense<0.000000e+00> : vector<24x8xf32>
    %458 = tpu.matmul %455, %457, %cst_449 {dimension_numbers = #tpu.dot_dimension_numbers<[1], [0], [0], [1], [0, 0, 1, 1], [], []>} : vector<24x4xbf16>, vector<4x8xbf16>, vector<24x8xf32> -> vector<24x8xf32>
    %459 = arith.addf %453, %458 : vector<24x8xf32>
    %c0_450 = arith.constant 0 : index
    %c0_451 = arith.constant 0 : index
    %c13_452 = arith.constant 13 : index
    %c0_453 = arith.constant 0 : index
    %460 = vector.load %arg4[%c0_450, %c0_451, %c13_452, %c0_453] : memref<1x1x40x4xbf16, #tpu.memory_space<vmem>>, vector<1x1x24x4xbf16>
    %461 = vector.shape_cast %460 : vector<1x1x24x4xbf16> to vector<24x4xbf16>
    %c55 = arith.constant 55 : index
    %c0_454 = arith.constant 0 : index
    %c0_455 = arith.constant 0 : index
    %462 = vector.load %arg5[%c55, %c0_454, %c0_455] : memref<64x4x8xbf16, #tpu.memory_space<vmem>>, vector<1x4x8xbf16>
    %463 = vector.shape_cast %462 : vector<1x4x8xbf16> to vector<4x8xbf16>
    %cst_456 = arith.constant dense<0.000000e+00> : vector<24x8xf32>
    %464 = tpu.matmul %461, %463, %cst_456 {dimension_numbers = #tpu.dot_dimension_numbers<[1], [0], [0], [1], [0, 0, 1, 1], [], []>} : vector<24x4xbf16>, vector<4x8xbf16>, vector<24x8xf32> -> vector<24x8xf32>
    %465 = arith.addf %459, %464 : vector<24x8xf32>
    %cst_457 = arith.constant 0.000000e+00 : f32
    %466 = vector.shape_cast %18 : vector<24x1xi1> to vector<24x1xi1>
    %467 = vector.broadcast %466 : vector<24x1xi1> to vector<24x8xi1>
    %468 = vector.broadcast %cst_457 : f32 to vector<24x8xf32>
    %469 = arith.select %467, %465, %468 : vector<24x8xi1>, vector<24x8xf32>
    %cst_458 = arith.constant dense<0.000000e+00> : vector<8xf32>
    %470 = vector.multi_reduction <add>, %469, %cst_458 [0] : vector<24x8xf32> to vector<8xf32>
    %471 = vector.shape_cast %470 : vector<8xf32> to vector<1x8xf32>
    %472 = arith.addf %406, %471 : vector<1x8xf32>
    %473 = arith.mulf %469, %465 : vector<24x8xf32>
    %cst_459 = arith.constant dense<0.000000e+00> : vector<8xf32>
    %474 = vector.multi_reduction <add>, %473, %cst_459 [0] : vector<24x8xf32> to vector<8xf32>
    %475 = vector.shape_cast %474 : vector<8xf32> to vector<1x8xf32>
    %476 = arith.addf %410, %475 : vector<1x8xf32>
    %477 = vector.shape_cast %465 : vector<24x8xf32> to vector<4x6x8xf32>
    %478 = vector.extract_strided_slice %477 {offsets = [0, 0, 0], sizes = [4, 4, 8], strides = [1, 1, 1]} : vector<4x6x8xf32> to vector<4x4x8xf32>
    %479 = arith.truncf %478 : vector<4x4x8xf32> to vector<4x4x8xbf16>
    %c0_460 = arith.constant 0 : index
    %c0_461 = arith.constant 0 : index
    %c6_462 = arith.constant 6 : index
    %c0_463 = arith.constant 0 : index
    %c0_464 = arith.constant 0 : index
    %c0_465 = arith.constant 0 : index
    %480 = vector.load %arg6[%c0_460, %c0_461, %c6_462, %c0_463, %c0_464, %c0_465] : memref<1x1x8x4x4x8xbf16, #tpu.memory_space<vmem>>, vector<1x1x1x4x4x8xbf16>
    %481 = vector.shape_cast %480 : vector<1x1x1x4x4x8xbf16> to vector<4x4x8xbf16>
    %482 = vector.shape_cast %479 : vector<4x4x8xbf16> to vector<1x1x1x4x4x8xbf16>
    tpu.vector_store %arg6[%c0_460, %c0_461, %c6_462, %c0_463, %c0_464, %c0_465], %482 {strides = array<i32>} : memref<1x1x8x4x4x8xbf16, #tpu.memory_space<vmem>>, vector<1x1x1x4x4x8xbf16>,
    %cst_466 = arith.constant 0.000000e+00 : f32
    %483 = vector.broadcast %cst_466 : f32 to vector<24x8xf32>
    %c0_467 = arith.constant 0 : index
    %c0_468 = arith.constant 0 : index
    %c7_469 = arith.constant 7 : index
    %c0_470 = arith.constant 0 : index
    %484 = vector.load %arg3[%c0_467, %c0_468, %c7_469, %c0_470] : memref<1x1x40x4xbf16, #tpu.memory_space<vmem>>, vector<1x1x24x4xbf16>
    %485 = vector.shape_cast %484 : vector<1x1x24x4xbf16> to vector<24x4xbf16>
    %c56 = arith.constant 56 : index
    %c0_471 = arith.constant 0 : index
    %c0_472 = arith.constant 0 : index
    %486 = vector.load %arg5[%c56, %c0_471, %c0_472] : memref<64x4x8xbf16, #tpu.memory_space<vmem>>, vector<1x4x8xbf16>
    %487 = vector.shape_cast %486 : vector<1x4x8xbf16> to vector<4x8xbf16>
    %cst_473 = arith.constant dense<0.000000e+00> : vector<24x8xf32>
    %488 = tpu.matmul %485, %487, %cst_473 {dimension_numbers = #tpu.dot_dimension_numbers<[1], [0], [0], [1], [0, 0, 1, 1], [], []>} : vector<24x4xbf16>, vector<4x8xbf16>, vector<24x8xf32> -> vector<24x8xf32>
    %489 = arith.addf %483, %488 : vector<24x8xf32>
    %c0_474 = arith.constant 0 : index
    %c0_475 = arith.constant 0 : index
    %c8_476 = arith.constant 8 : index
    %c0_477 = arith.constant 0 : index
    %490 = vector.load %arg3[%c0_474, %c0_475, %c8_476, %c0_477] : memref<1x1x40x4xbf16, #tpu.memory_space<vmem>>, vector<1x1x24x4xbf16>
    %491 = vector.shape_cast %490 : vector<1x1x24x4xbf16> to vector<24x4xbf16>
    %c57 = arith.constant 57 : index
    %c0_478 = arith.constant 0 : index
    %c0_479 = arith.constant 0 : index
    %492 = vector.load %arg5[%c57, %c0_478, %c0_479] : memref<64x4x8xbf16, #tpu.memory_space<vmem>>, vector<1x4x8xbf16>
    %493 = vector.shape_cast %492 : vector<1x4x8xbf16> to vector<4x8xbf16>
    %cst_480 = arith.constant dense<0.000000e+00> : vector<24x8xf32>
    %494 = tpu.matmul %491, %493, %cst_480 {dimension_numbers = #tpu.dot_dimension_numbers<[1], [0], [0], [1], [0, 0, 1, 1], [], []>} : vector<24x4xbf16>, vector<4x8xbf16>, vector<24x8xf32> -> vector<24x8xf32>
    %495 = arith.addf %489, %494 : vector<24x8xf32>
    %c0_481 = arith.constant 0 : index
    %c0_482 = arith.constant 0 : index
    %c13_483 = arith.constant 13 : index
    %c0_484 = arith.constant 0 : index
    %496 = vector.load %arg3[%c0_481, %c0_482, %c13_483, %c0_484] : memref<1x1x40x4xbf16, #tpu.memory_space<vmem>>, vector<1x1x24x4xbf16>
    %497 = vector.shape_cast %496 : vector<1x1x24x4xbf16> to vector<24x4xbf16>
    %c58 = arith.constant 58 : index
    %c0_485 = arith.constant 0 : index
    %c0_486 = arith.constant 0 : index
    %498 = vector.load %arg5[%c58, %c0_485, %c0_486] : memref<64x4x8xbf16, #tpu.memory_space<vmem>>, vector<1x4x8xbf16>
    %499 = vector.shape_cast %498 : vector<1x4x8xbf16> to vector<4x8xbf16>
    %cst_487 = arith.constant dense<0.000000e+00> : vector<24x8xf32>
    %500 = tpu.matmul %497, %499, %cst_487 {dimension_numbers = #tpu.dot_dimension_numbers<[1], [0], [0], [1], [0, 0, 1, 1], [], []>} : vector<24x4xbf16>, vector<4x8xbf16>, vector<24x8xf32> -> vector<24x8xf32>
    %501 = arith.addf %495, %500 : vector<24x8xf32>
    %c0_488 = arith.constant 0 : index
    %c0_489 = arith.constant 0 : index
    %c14_490 = arith.constant 14 : index
    %c0_491 = arith.constant 0 : index
    %502 = vector.load %arg3[%c0_488, %c0_489, %c14_490, %c0_491] : memref<1x1x40x4xbf16, #tpu.memory_space<vmem>>, vector<1x1x24x4xbf16>
    %503 = vector.shape_cast %502 : vector<1x1x24x4xbf16> to vector<24x4xbf16>
    %c59 = arith.constant 59 : index
    %c0_492 = arith.constant 0 : index
    %c0_493 = arith.constant 0 : index
    %504 = vector.load %arg5[%c59, %c0_492, %c0_493] : memref<64x4x8xbf16, #tpu.memory_space<vmem>>, vector<1x4x8xbf16>
    %505 = vector.shape_cast %504 : vector<1x4x8xbf16> to vector<4x8xbf16>
    %cst_494 = arith.constant dense<0.000000e+00> : vector<24x8xf32>
    %506 = tpu.matmul %503, %505, %cst_494 {dimension_numbers = #tpu.dot_dimension_numbers<[1], [0], [0], [1], [0, 0, 1, 1], [], []>} : vector<24x4xbf16>, vector<4x8xbf16>, vector<24x8xf32> -> vector<24x8xf32>
    %507 = arith.addf %501, %506 : vector<24x8xf32>
    %c0_495 = arith.constant 0 : index
    %c0_496 = arith.constant 0 : index
    %c7_497 = arith.constant 7 : index
    %c0_498 = arith.constant 0 : index
    %508 = vector.load %arg4[%c0_495, %c0_496, %c7_497, %c0_498] : memref<1x1x40x4xbf16, #tpu.memory_space<vmem>>, vector<1x1x24x4xbf16>
    %509 = vector.shape_cast %508 : vector<1x1x24x4xbf16> to vector<24x4xbf16>
    %c60 = arith.constant 60 : index
    %c0_499 = arith.constant 0 : index
    %c0_500 = arith.constant 0 : index
    %510 = vector.load %arg5[%c60, %c0_499, %c0_500] : memref<64x4x8xbf16, #tpu.memory_space<vmem>>, vector<1x4x8xbf16>
    %511 = vector.shape_cast %510 : vector<1x4x8xbf16> to vector<4x8xbf16>
    %cst_501 = arith.constant dense<0.000000e+00> : vector<24x8xf32>
    %512 = tpu.matmul %509, %511, %cst_501 {dimension_numbers = #tpu.dot_dimension_numbers<[1], [0], [0], [1], [0, 0, 1, 1], [], []>} : vector<24x4xbf16>, vector<4x8xbf16>, vector<24x8xf32> -> vector<24x8xf32>
    %513 = arith.addf %507, %512 : vector<24x8xf32>
    %c0_502 = arith.constant 0 : index
    %c0_503 = arith.constant 0 : index
    %c8_504 = arith.constant 8 : index
    %c0_505 = arith.constant 0 : index
    %514 = vector.load %arg4[%c0_502, %c0_503, %c8_504, %c0_505] : memref<1x1x40x4xbf16, #tpu.memory_space<vmem>>, vector<1x1x24x4xbf16>
    %515 = vector.shape_cast %514 : vector<1x1x24x4xbf16> to vector<24x4xbf16>
    %c61 = arith.constant 61 : index
    %c0_506 = arith.constant 0 : index
    %c0_507 = arith.constant 0 : index
    %516 = vector.load %arg5[%c61, %c0_506, %c0_507] : memref<64x4x8xbf16, #tpu.memory_space<vmem>>, vector<1x4x8xbf16>
    %517 = vector.shape_cast %516 : vector<1x4x8xbf16> to vector<4x8xbf16>
    %cst_508 = arith.constant dense<0.000000e+00> : vector<24x8xf32>
    %518 = tpu.matmul %515, %517, %cst_508 {dimension_numbers = #tpu.dot_dimension_numbers<[1], [0], [0], [1], [0, 0, 1, 1], [], []>} : vector<24x4xbf16>, vector<4x8xbf16>, vector<24x8xf32> -> vector<24x8xf32>
    %519 = arith.addf %513, %518 : vector<24x8xf32>
    %c0_509 = arith.constant 0 : index
    %c0_510 = arith.constant 0 : index
    %c13_511 = arith.constant 13 : index
    %c0_512 = arith.constant 0 : index
    %520 = vector.load %arg4[%c0_509, %c0_510, %c13_511, %c0_512] : memref<1x1x40x4xbf16, #tpu.memory_space<vmem>>, vector<1x1x24x4xbf16>
    %521 = vector.shape_cast %520 : vector<1x1x24x4xbf16> to vector<24x4xbf16>
    %c62 = arith.constant 62 : index
    %c0_513 = arith.constant 0 : index
    %c0_514 = arith.constant 0 : index
    %522 = vector.load %arg5[%c62, %c0_513, %c0_514] : memref<64x4x8xbf16, #tpu.memory_space<vmem>>, vector<1x4x8xbf16>
    %523 = vector.shape_cast %522 : vector<1x4x8xbf16> to vector<4x8xbf16>
    %cst_515 = arith.constant dense<0.000000e+00> : vector<24x8xf32>
    %524 = tpu.matmul %521, %523, %cst_515 {dimension_numbers = #tpu.dot_dimension_numbers<[1], [0], [0], [1], [0, 0, 1, 1], [], []>} : vector<24x4xbf16>, vector<4x8xbf16>, vector<24x8xf32> -> vector<24x8xf32>
    %525 = arith.addf %519, %524 : vector<24x8xf32>
    %c0_516 = arith.constant 0 : index
    %c0_517 = arith.constant 0 : index
    %c14_518 = arith.constant 14 : index
    %c0_519 = arith.constant 0 : index
    %526 = vector.load %arg4[%c0_516, %c0_517, %c14_518, %c0_519] : memref<1x1x40x4xbf16, #tpu.memory_space<vmem>>, vector<1x1x24x4xbf16>
    %527 = vector.shape_cast %526 : vector<1x1x24x4xbf16> to vector<24x4xbf16>
    %c63 = arith.constant 63 : index
    %c0_520 = arith.constant 0 : index
    %c0_521 = arith.constant 0 : index
    %528 = vector.load %arg5[%c63, %c0_520, %c0_521] : memref<64x4x8xbf16, #tpu.memory_space<vmem>>, vector<1x4x8xbf16>
    %529 = vector.shape_cast %528 : vector<1x4x8xbf16> to vector<4x8xbf16>
    %cst_522 = arith.constant dense<0.000000e+00> : vector<24x8xf32>
    %530 = tpu.matmul %527, %529, %cst_522 {dimension_numbers = #tpu.dot_dimension_numbers<[1], [0], [0], [1], [0, 0, 1, 1], [], []>} : vector<24x4xbf16>, vector<4x8xbf16>, vector<24x8xf32> -> vector<24x8xf32>
    %531 = arith.addf %525, %530 : vector<24x8xf32>
    %cst_523 = arith.constant 0.000000e+00 : f32
    %532 = vector.shape_cast %18 : vector<24x1xi1> to vector<24x1xi1>
    %533 = vector.broadcast %532 : vector<24x1xi1> to vector<24x8xi1>
    %534 = vector.broadcast %cst_523 : f32 to vector<24x8xf32>
    %535 = arith.select %533, %531, %534 : vector<24x8xi1>, vector<24x8xf32>
    %cst_524 = arith.constant dense<0.000000e+00> : vector<8xf32>
    %536 = vector.multi_reduction <add>, %535, %cst_524 [0] : vector<24x8xf32> to vector<8xf32>
    %537 = vector.shape_cast %536 : vector<8xf32> to vector<1x8xf32>
    %538 = arith.addf %472, %537 : vector<1x8xf32>
    %539 = arith.mulf %535, %531 : vector<24x8xf32>
    %cst_525 = arith.constant dense<0.000000e+00> : vector<8xf32>
    %540 = vector.multi_reduction <add>, %539, %cst_525 [0] : vector<24x8xf32> to vector<8xf32>
    %541 = vector.shape_cast %540 : vector<8xf32> to vector<1x8xf32>
    %542 = arith.addf %476, %541 : vector<1x8xf32>
    %543 = vector.shape_cast %531 : vector<24x8xf32> to vector<4x6x8xf32>
    %544 = vector.extract_strided_slice %543 {offsets = [0, 0, 0], sizes = [4, 4, 8], strides = [1, 1, 1]} : vector<4x6x8xf32> to vector<4x4x8xf32>
    %545 = arith.truncf %544 : vector<4x4x8xf32> to vector<4x4x8xbf16>
    %c0_526 = arith.constant 0 : index
    %c0_527 = arith.constant 0 : index
    %c7_528 = arith.constant 7 : index
    %c0_529 = arith.constant 0 : index
    %c0_530 = arith.constant 0 : index
    %c0_531 = arith.constant 0 : index
    %546 = vector.load %arg6[%c0_526, %c0_527, %c7_528, %c0_529, %c0_530, %c0_531] : memref<1x1x8x4x4x8xbf16, #tpu.memory_space<vmem>>, vector<1x1x1x4x4x8xbf16>
    %547 = vector.shape_cast %546 : vector<1x1x1x4x4x8xbf16> to vector<4x4x8xbf16>
    %548 = vector.shape_cast %545 : vector<4x4x8xbf16> to vector<1x1x1x4x4x8xbf16>
    tpu.vector_store %arg6[%c0_526, %c0_527, %c7_528, %c0_529, %c0_530, %c0_531], %548 {strides = array<i32>} : memref<1x1x8x4x4x8xbf16, #tpu.memory_space<vmem>>, vector<1x1x1x4x4x8xbf16>,
    %549 = tpu.concatenate %538, %542 in 0 : vector<1x8xf32>, vector<1x8xf32> -> vector<2x8xf32>
    %c0_532 = arith.constant 0 : index
    %c0_533 = arith.constant 0 : index
    %c0_534 = arith.constant 0 : index
    %c0_535 = arith.constant 0 : index
    %550 = vector.load %arg7[%c0_532, %c0_533, %c0_534, %c0_535] : memref<1x1x2x8xf32, #tpu.memory_space<vmem>>, vector<1x1x2x8xf32>
    %551 = vector.shape_cast %550 : vector<1x1x2x8xf32> to vector<2x8xf32>
    %552 = vector.shape_cast %549 : vector<2x8xf32> to vector<1x1x2x8xf32>
    tpu.vector_store %arg7[%c0_532, %c0_533, %c0_534, %c0_535], %552 {strides = array<i32>} : memref<1x1x2x8xf32, #tpu.memory_space<vmem>>, vector<1x1x2x8xf32>,
    return
  }
  func.func @transform_0(%arg0: i32, %arg1: i32) -> (i32, i32, i32, i32) {
    %c0_i32 = arith.constant 0 : i32
    %c0_i32_0 = arith.constant 0 : i32
    %c0_i32_1 = arith.constant 0 : i32
    return %arg0, %arg1, %c0_i32, %c0_i32_0 : i32, i32, i32, i32
  }
  func.func @transform_1(%arg0: i32, %arg1: i32) -> (i32, i32, i32, i32) {
    %c1_i32 = arith.constant 1 : i32
    %0 = arith.addi %arg1, %c1_i32 : i32
    %c0_i32 = arith.constant 0 : i32
    %c0_i32_0 = arith.constant 0 : i32
    %c0_i32_1 = arith.constant 0 : i32
    return %arg0, %0, %c0_i32, %c0_i32_0 : i32, i32, i32, i32
  }
  func.func @transform_2(%arg0: i32, %arg1: i32) -> (i32, i32, i32, i32) {
    %c2_i32 = arith.constant 2 : i32
    %0 = arith.addi %arg1, %c2_i32 : i32
    %c0_i32 = arith.constant 0 : i32
    %c0_i32_0 = arith.constant 0 : i32
    %c0_i32_1 = arith.constant 0 : i32
    return %arg0, %0, %c0_i32, %c0_i32_0 : i32, i32, i32, i32
  }
  func.func @transform_3(%arg0: i32, %arg1: i32) -> (i32, i32, i32) {
    %c0_i32 = arith.constant 0 : i32
    %c0_i32_0 = arith.constant 0 : i32
    %c0_i32_1 = arith.constant 0 : i32
    %c0_i32_2 = arith.constant 0 : i32
    return %c0_i32, %c0_i32_0, %c0_i32_1 : i32, i32, i32
  }
  func.func @transform_4(%arg0: i32, %arg1: i32) -> (i32, i32, i32, i32, i32, i32) {
    %c0_i32 = arith.constant 0 : i32
    %c0_i32_0 = arith.constant 0 : i32
    %c0_i32_1 = arith.constant 0 : i32
    %c0_i32_2 = arith.constant 0 : i32
    %c0_i32_3 = arith.constant 0 : i32
    return %arg0, %arg1, %c0_i32, %c0_i32_0, %c0_i32_1, %c0_i32_2 : i32, i32, i32, i32, i32, i32
  }
  func.func @transform_5(%arg0: i32, %arg1: i32) -> (i32, i32, i32, i32) {
    %c0_i32 = arith.constant 0 : i32
    %c0_i32_0 = arith.constant 0 : i32
    %c0_i32_1 = arith.constant 0 : i32
    return %arg0, %arg1, %c0_i32, %c0_i32_0 : i32, i32, i32, i32
  }
}

</mosaic_0001>

<bundles_post_ra>
// kernel: up_conv_forward.3
= control target key start
LH: loop header
LB: loop body
LE: loop exit
PB: predicated region body
PF: predicated region fallthrough
CT: control target
= control target key end

     0   :  { %s618_s12 = smov 0   ;;  %s620_s13 = smov 0   ;;  %s847_s0 = inlined_call_operand.vmem [shape: bf16[2,4,8,4,4,8], index: 0, kind: input, shape index: {}]   ;;  %s848_s1 = inlined_call_operand.vmem [shape: f32[1,8], index: 1, kind: input, shape index: {}]   ;;  %s849_s2 = inlined_call_operand.vmem [shape: f32[1,8], index: 2, kind: input, shape index: {}]   ;;  %s850_s3 = inlined_call_operand.vmem [shape: f32[2,4,8,4,4,8], index: 3, kind: output, shape index: {}]  }
   0x1   :  { %s622_s14 = smov 0   ;;  %s624_s15 = smov 0  }
   0x2   :  { %s626_s16 = smov 0  }
   0x3 LB: > { %s22_s17 = sadd.s32 1, %s588_s14  ;;  %s25_s18 = sadd.s32 1, %s592_s15  ;;  %s596_s16 = sphi %s626_s16, %s13_s16   ;;  %s592_s15 = sphi %s624_s15, %s854_s15   ;;  %s588_s14 = sphi %s622_s14, %s853_s14   ;;  %s584_s13 = sphi %s620_s13, %s852_s13   ;;  %s580_s12 = sphi %s618_s12, %s851_s12  }
   0x4   : > { %p23_p0 = scmp.ge.s32.totalorder %s22_s17, 4  ;;  %p507_p1 = scmp.ge.s32.totalorder %s596_s16, 1 }
   0x5   : > { %p157_p2 = scmp.lt.s32.totalorder %s596_s16, 9 }
   0x6   : > { %s856_s17 = smov (%p23_p0, %s22_s17), 0  ;;  %s858_s18 = smov (!%p23_p0, %s25_s18), %s592_s15 }
   0x7   : > { %p158_p3 = pnand %p507_p1, %p157_p2  ;;  %p27_p4 = scmp.ge.s32.totalorder %s858_s18, 2 }
   0x8   : > { %p189_p5 = scmp.lt.s32.totalorder (!%p158_p3), %s584_s13, 1  ;;  %p191_p6 = scmp.lt.s32.totalorder (!%p158_p3), %s580_s12, 3 }
   0x9   : > { %s860_s18 = smov (%p27_p4, %s858_s18), 0  ;;  %161 = sbr.rel (%p158_p3) target bundleno = 60 (0x3c), region = 32 }
   0xe   : > { %s862_s13 = smov (!%p189_p5, %s584_s13), 1  ;;  %s864_s12 = smov (!%p191_p6, %s580_s12), 3  ;;  %v659_v0 = vld [vmem:[%s848_s1] ss:$0 sm:$0xff]  ;;  %vm375_vm0 = vcmask 60416  }
   0xf   : > { %s509_s19 = sshll.u32 %s862_s13, 7  ;;  %s508_s20 = sshll.u32 %s864_s12, 5  ;;  %v664_v1 = vld [vmem:[%s849_s2] ss:$0 sm:$0xff] }
  0x10   : > { %s648_s21 = sadd.s32 %s509_s19, %s508_s20 }
  0x11   : > { %s510_s22 = sshll.u32 %s648_s21, 1  ;;  %s513_s30 = sshll.u32 %s648_s21, 2 }
  0x12   : > { %s654_s25 = scalar_lea.vmem %s847_s0, %s510_s22  ;;  %s690_s6 = scalar_lea.vmem %s850_s3, %s513_s30 }
  0x13   : > { %v207_v2 = vld [vmem:[%s654_s25] sm:$0x3]  ;;  %v208_v3 = vld [vmem:[%s654_s25 + $0x2] sm:$0x3]  ;;  %v209_v4 = vld [vmem:[%s654_s25 + $0x4] sm:$0x3] }
  0x14   : > { %v239_v5 = vunpack.c.l.bf16 %v207_v2  ;;  %v240_v6 = vunpack.c.l.bf16 %v208_v3  ;;  %v241_v7 = vunpack.c.l.bf16 %v209_v4  ;;  %v210_v8 = vld [vmem:[%s654_s25 + $0x6] sm:$0x3]  ;;  %v211_v9 = vld [vmem:[%s654_s25 + $0x8] sm:$0x3]  ;;  %v212_v10 = vld [vmem:[%s654_s25 + $0xa] sm:$0x3] }
  0x15   : > { %v242_v11 = vunpack.c.l.bf16 %v210_v8  ;;  %v243_v12 = vunpack.c.l.bf16 %v211_v9  ;;  %v244_v13 = vunpack.c.l.bf16 %v212_v10  ;;  %v213_v14 = vld [vmem:[%s654_s25 + $0xc] sm:$0x3]  ;;  %v214_v15 = vld [vmem:[%s654_s25 + $0xe] sm:$0x3]  ;;  %v215_v28 = vld [vmem:[%s654_s25 + $0x10] sm:$0x3] }
  0x16   : > { %v275_v16 = vmul.f32 %v659_v0, %v239_v5  ;;  %v276_v17 = vmul.f32 %v659_v0, %v240_v6  ;;  %v277_v18 = vmul.f32 %v659_v0, %v241_v7  ;;  %v245_v19 = vunpack.c.l.bf16 %v213_v14  ;;  %v216_v29 = vld [vmem:[%s654_s25 + $0x12] sm:$0x3]  ;;  %v217_v34 = vld [vmem:[%s654_s25 + $0x14] sm:$0x3]  ;;  %v218_v35 = vld [vmem:[%s654_s25 + $0x16] sm:$0x3] }
  0x17   : > { %v278_v20 = vmul.f32 %v659_v0, %v242_v11  ;;  %v279_v21 = vmul.f32 %v659_v0, %v243_v12  ;;  %v280_v22 = vmul.f32 %v659_v0, %v244_v13  ;;  %v246_v23 = vunpack.c.l.bf16 %v214_v15  ;;  %v219_v36 = vld [vmem:[%s654_s25 + $0x18] sm:$0x3]  ;;  %v220_v41 = vld [vmem:[%s654_s25 + $0x1a] sm:$0x3]  ;;  %v221_v46 = vld [vmem:[%s654_s25 + $0x1c] sm:$0x3] }
  0x18   : > { %v311_v24 = vadd.f32 %v664_v1, %v275_v16  ;;  %v312_v25 = vadd.f32 %v664_v1, %v276_v17  ;;  %v313_v26 = vadd.f32 %v664_v1, %v277_v18  ;;  %v281_v27 = vmul.f32 %v659_v0, %v245_v19  ;;  %v222_v51 = vld [vmem:[%s654_s25 + $0x1e] sm:$0x3]  ;;  %v223_v2 = vld [vmem:[%s654_s25 + $0x20] sm:$0x3]  ;;  %v224_v3 = vld [vmem:[%s654_s25 + $0x22] sm:$0x3] }
  0x19   : > { %v314_v30 = vadd.f32 %v664_v1, %v278_v20  ;;  %v315_v31 = vadd.f32 %v664_v1, %v279_v21  ;;  %v316_v32 = vadd.f32 %v664_v1, %v280_v22  ;;  %v282_v33 = vmul.f32 %v659_v0, %v246_v23  ;;  %v225_v4 = vld [vmem:[%s654_s25 + $0x24] sm:$0x3]  ;;  %v226_v9 = vld [vmem:[%s654_s25 + $0x26] sm:$0x3]  ;;  %v227_v10 = vld [vmem:[%s654_s25 + $0x28] sm:$0x3] }
  0x1a   : > { %v343_v37 = vmax.f32 %v311_v24, 0.0  ;;  %v344_v38 = vmax.f32 %v312_v25, 0.0  ;;  %v345_v39 = vmax.f32 %v313_v26, 0.0  ;;  %v317_v40 = vadd.f32 %v664_v1, %v281_v27  ;;  %v228_v15 = vld [vmem:[%s654_s25 + $0x2a] sm:$0x3] }
  0x1b   : > { %v346_v42 = vmax.f32 %v314_v30, 0.0  ;;  %v347_v43 = vmax.f32 %v315_v31, 0.0  ;;  %v348_v44 = vmax.f32 %v316_v32, 0.0  ;;  %v318_v45 = vadd.f32 %v664_v1, %v282_v33  ;;  %v229_v16 = vld [vmem:[%s654_s25 + $0x2c] sm:$0x3] }
  0x1c   : > { %376 = vst.msk [vmem:[%s690_s6] sm:$0xf] %vm375_vm0, %v343_v37  ;;  %v349_v47 = vmax.f32 %v317_v40, 0.0  ;;  %v247_v48 = vunpack.c.l.bf16 %v215_v28  ;;  %v248_v49 = vunpack.c.l.bf16 %v216_v29  ;;  %v249_v50 = vunpack.c.l.bf16 %v217_v34  ;;  %v230_v29 = vld [vmem:[%s654_s25 + $0x2e] sm:$0x3] }
  0x1d   : > { %377 = vst.msk [vmem:[%s690_s6 + $0x4] sm:$0xf] %vm375_vm0, %v344_v38  ;;  %v350_v52 = vmax.f32 %v318_v45, 0.0  ;;  %v250_v53 = vunpack.c.l.bf16 %v218_v35  ;;  %v251_v54 = vunpack.c.l.bf16 %v219_v36  ;;  %v252_v55 = vunpack.c.l.bf16 %v220_v41 }
  0x1e   : > { %378 = vst.msk [vmem:[%s690_s6 + $0x8] sm:$0xf] %vm375_vm0, %v345_v39  ;;  %v283_v56 = vmul.f32 %v659_v0, %v247_v48  ;;  %v284_v57 = vmul.f32 %v659_v0, %v248_v49  ;;  %v285_v58 = vmul.f32 %v659_v0, %v249_v50  ;;  %v253_v59 = vunpack.c.l.bf16 %v221_v46  ;;  %v234_v49 = vld [vmem:[%s654_s25 + $0x36] sm:$0x3]  ;;  %v235_v50 = vld [vmem:[%s654_s25 + $0x38] sm:$0x3] }
  0x1f   : > { %379 = vst.msk [vmem:[%s690_s6 + $0xc] sm:$0xf] %vm375_vm0, %v346_v42  ;;  %v286_v60 = vmul.f32 %v659_v0, %v250_v53  ;;  %v287_v61 = vmul.f32 %v659_v0, %v251_v54  ;;  %v288_v62 = vmul.f32 %v659_v0, %v252_v55  ;;  %v254_v63 = vunpack.c.l.bf16 %v222_v51  ;;  %v231_v42 = vld [vmem:[%s654_s25 + $0x30] sm:$0x3]  ;;  %v236_v55 = vld [vmem:[%s654_s25 + $0x3a] sm:$0x3] }
  0x20   : > { %380 = vst.msk [vmem:[%s690_s6 + $0x10] sm:$0xf] %vm375_vm0, %v347_v43  ;;  %v319_v5 = vadd.f32 %v664_v1, %v283_v56  ;;  %v320_v6 = vadd.f32 %v664_v1, %v284_v57  ;;  %v321_v7 = vadd.f32 %v664_v1, %v285_v58  ;;  %v289_v8 = vmul.f32 %v659_v0, %v253_v59  ;;  %v232_v43 = vld [vmem:[%s654_s25 + $0x32] sm:$0x3]  ;;  %v237_v56 = vld [vmem:[%s654_s25 + $0x3c] sm:$0x3] }
  0x21   : > { %381 = vst.msk [vmem:[%s690_s6 + $0x14] sm:$0xf] %vm375_vm0, %v348_v44  ;;  %v322_v11 = vadd.f32 %v664_v1, %v286_v60  ;;  %v323_v12 = vadd.f32 %v664_v1, %v287_v61  ;;  %v324_v13 = vadd.f32 %v664_v1, %v288_v62  ;;  %v290_v14 = vmul.f32 %v659_v0, %v254_v63  ;;  %v233_v44 = vld [vmem:[%s654_s25 + $0x34] sm:$0x3] }
  0x22   : > { %382 = vst.msk [vmem:[%s690_s6 + $0x18] sm:$0xf] %vm375_vm0, %v349_v47  ;;  %v351_v17 = vmax.f32 %v319_v5, 0.0  ;;  %v352_v18 = vmax.f32 %v320_v6, 0.0  ;;  %v353_v19 = vmax.f32 %v321_v7, 0.0  ;;  %v325_v20 = vadd.f32 %v664_v1, %v289_v8 }
  0x23   : > { %383 = vst.msk [vmem:[%s690_s6 + $0x1c] sm:$0xf] %vm375_vm0, %v350_v52  ;;  %v354_v21 = vmax.f32 %v322_v11, 0.0  ;;  %v355_v22 = vmax.f32 %v323_v12, 0.0  ;;  %v356_v23 = vmax.f32 %v324_v13, 0.0  ;;  %v326_v24 = vadd.f32 %v664_v1, %v290_v14 }
  0x24   : > { %384 = vst.msk [vmem:[%s690_s6 + $0x20] sm:$0xf] %vm375_vm0, %v351_v17  ;;  %v357_v25 = vmax.f32 %v325_v20, 0.0  ;;  %v255_v26 = vunpack.c.l.bf16 %v223_v2  ;;  %v256_v27 = vunpack.c.l.bf16 %v224_v3  ;;  %v257_v28 = vunpack.c.l.bf16 %v225_v4  ;;  %v238_v7 = vld [vmem:[%s654_s25 + $0x3e] sm:$0x3] }
  0x25   : > { %385 = vst.msk [vmem:[%s690_s6 + $0x24] sm:$0xf] %vm375_vm0, %v352_v18  ;;  %v358_v30 = vmax.f32 %v326_v24, 0.0  ;;  %v258_v31 = vunpack.c.l.bf16 %v226_v9  ;;  %v259_v32 = vunpack.c.l.bf16 %v227_v10  ;;  %v260_v33 = vunpack.c.l.bf16 %v228_v15 }
  0x26   : > { %386 = vst.msk [vmem:[%s690_s6 + $0x28] sm:$0xf] %vm375_vm0, %v353_v19  ;;  %v291_v34 = vmul.f32 %v659_v0, %v255_v26  ;;  %v292_v35 = vmul.f32 %v659_v0, %v256_v27  ;;  %v293_v36 = vmul.f32 %v659_v0, %v257_v28  ;;  %v261_v37 = vunpack.c.l.bf16 %v229_v16 }
  0x27   : > { %387 = vst.msk [vmem:[%s690_s6 + $0x2c] sm:$0xf] %vm375_vm0, %v354_v21  ;;  %v294_v38 = vmul.f32 %v659_v0, %v258_v31  ;;  %v295_v39 = vmul.f32 %v659_v0, %v259_v32  ;;  %v296_v40 = vmul.f32 %v659_v0, %v260_v33  ;;  %v262_v41 = vunpack.c.l.bf16 %v230_v29 }
  0x28   : > { %388 = vst.msk [vmem:[%s690_s6 + $0x30] sm:$0xf] %vm375_vm0, %v355_v22  ;;  %v327_v45 = vadd.f32 %v664_v1, %v291_v34  ;;  %v328_v46 = vadd.f32 %v664_v1, %v292_v35  ;;  %v329_v47 = vadd.f32 %v664_v1, %v293_v36  ;;  %v297_v48 = vmul.f32 %v659_v0, %v261_v37 }
  0x29   : > { %389 = vst.msk [vmem:[%s690_s6 + $0x34] sm:$0xf] %vm375_vm0, %v356_v23  ;;  %v330_v51 = vadd.f32 %v664_v1, %v294_v38  ;;  %v331_v52 = vadd.f32 %v664_v1, %v295_v39  ;;  %v332_v53 = vadd.f32 %v664_v1, %v296_v40  ;;  %v298_v54 = vmul.f32 %v659_v0, %v262_v41 }
  0x2a   : > { %390 = vst.msk [vmem:[%s690_s6 + $0x38] sm:$0xf] %vm375_vm0, %v357_v25  ;;  %v359_v57 = vmax.f32 %v327_v45, 0.0  ;;  %v360_v58 = vmax.f32 %v328_v46, 0.0  ;;  %v361_v59 = vmax.f32 %v329_v47, 0.0  ;;  %v333_v60 = vadd.f32 %v664_v1, %v297_v48 }
  0x2b   : > { %391 = vst.msk [vmem:[%s690_s6 + $0x3c] sm:$0xf] %vm375_vm0, %v358_v30  ;;  %v362_v61 = vmax.f32 %v330_v51, 0.0  ;;  %v363_v62 = vmax.f32 %v331_v52, 0.0  ;;  %v364_v63 = vmax.f32 %v332_v53, 0.0  ;;  %v334_v2 = vadd.f32 %v664_v1, %v298_v54 }
  0x2c   : > { %392 = vst.msk [vmem:[%s690_s6 + $0x40] sm:$0xf] %vm375_vm0, %v359_v57  ;;  %v365_v3 = vmax.f32 %v333_v60, 0.0  ;;  %v263_v4 = vunpack.c.l.bf16 %v231_v42  ;;  %v264_v5 = vunpack.c.l.bf16 %v232_v43  ;;  %v265_v6 = vunpack.c.l.bf16 %v233_v44 }
  0x2d   : > { %393 = vst.msk [vmem:[%s690_s6 + $0x44] sm:$0xf] %vm375_vm0, %v360_v58  ;;  %v366_v8 = vmax.f32 %v334_v2, 0.0  ;;  %v266_v9 = vunpack.c.l.bf16 %v234_v49  ;;  %v267_v10 = vunpack.c.l.bf16 %v235_v50  ;;  %v268_v11 = vunpack.c.l.bf16 %v236_v55 }
  0x2e   : > { %394 = vst.msk [vmem:[%s690_s6 + $0x48] sm:$0xf] %vm375_vm0, %v361_v59  ;;  %v299_v12 = vmul.f32 %v659_v0, %v263_v4  ;;  %v300_v13 = vmul.f32 %v659_v0, %v264_v5  ;;  %v301_v14 = vmul.f32 %v659_v0, %v265_v6  ;;  %v269_v15 = vunpack.c.l.bf16 %v237_v56 }
  0x2f   : > { %395 = vst.msk [vmem:[%s690_s6 + $0x4c] sm:$0xf] %vm375_vm0, %v362_v61  ;;  %v302_v16 = vmul.f32 %v659_v0, %v266_v9  ;;  %v303_v17 = vmul.f32 %v659_v0, %v267_v10  ;;  %v304_v18 = vmul.f32 %v659_v0, %v268_v11  ;;  %v270_v19 = vunpack.c.l.bf16 %v238_v7 }
  0x30   : > { %396 = vst.msk [vmem:[%s690_s6 + $0x50] sm:$0xf] %vm375_vm0, %v363_v62  ;;  %v335_v20 = vadd.f32 %v664_v1, %v299_v12  ;;  %v336_v21 = vadd.f32 %v664_v1, %v300_v13  ;;  %v337_v22 = vadd.f32 %v664_v1, %v301_v14  ;;  %v305_v23 = vmul.f32 %v659_v0, %v269_v15 }
  0x31   : > { %397 = vst.msk [vmem:[%s690_s6 + $0x54] sm:$0xf] %vm375_vm0, %v364_v63  ;;  %v338_v24 = vadd.f32 %v664_v1, %v302_v16  ;;  %v339_v25 = vadd.f32 %v664_v1, %v303_v17  ;;  %v340_v26 = vadd.f32 %v664_v1, %v304_v18  ;;  %v306_v27 = vmul.f32 %v659_v0, %v270_v19 }
  0x32   : > { %398 = vst.msk [vmem:[%s690_s6 + $0x58] sm:$0xf] %vm375_vm0, %v365_v3  ;;  %v367_v28 = vmax.f32 %v335_v20, 0.0  ;;  %v368_v29 = vmax.f32 %v336_v21, 0.0  ;;  %v369_v30 = vmax.f32 %v337_v22, 0.0  ;;  %v341_v31 = vadd.f32 %v664_v1, %v305_v23 }
  0x33   : > { %399 = vst.msk [vmem:[%s690_s6 + $0x5c] sm:$0xf] %vm375_vm0, %v366_v8  ;;  %v370_v32 = vmax.f32 %v338_v24, 0.0  ;;  %v342_v33 = vadd.f32 %v664_v1, %v306_v27  ;;  %v371_v34 = vmax.f32 %v339_v25, 0.0  ;;  %v372_v0 = vmax.f32 %v340_v26, 0.0 }
  0x34   : > { %400 = vst.msk [vmem:[%s690_s6 + $0x60] sm:$0xf] %vm375_vm0, %v367_v28  ;;  %v373_v35 = vmax.f32 %v341_v31, 0.0 }
  0x35   : > { %401 = vst.msk [vmem:[%s690_s6 + $0x64] sm:$0xf] %vm375_vm0, %v368_v29  ;;  %v374_v36 = vmax.f32 %v342_v33, 0.0 }
  0x36   : > { %402 = vst.msk [vmem:[%s690_s6 + $0x68] sm:$0xf] %vm375_vm0, %v369_v30 }
  0x37   : > { %403 = vst.msk [vmem:[%s690_s6 + $0x6c] sm:$0xf] %vm375_vm0, %v370_v32 }
  0x38   : > { %404 = vst.msk [vmem:[%s690_s6 + $0x70] sm:$0xf] %vm375_vm0, %v371_v34 }
  0x39   : > { %405 = vst.msk [vmem:[%s690_s6 + $0x74] sm:$0xf] %vm375_vm0, %v372_v0 }
  0x3a   : > { %406 = vst.msk [vmem:[%s690_s6 + $0x78] sm:$0xf] %vm375_vm0, %v373_v35 }
  0x3b   : > { %407 = vst.msk [vmem:[%s690_s6 + $0x7c] sm:$0xf] %vm375_vm0, %v374_v36 }
  0x3c PF: > { %s13_s16 = sadd.s32 1, %s596_s16   ;;  %s851_s12 = smov %s588_s14 }
  0x3d   : > { %p10_p7 = scmp.ge.s32.totalorder %s13_s16, 10   ;;  %s852_s13 = smov %s592_s15 }
  0x3e   : > { %s853_s14 = smov %s856_s17  ;;  %s854_s15 = smov %s860_s18 }
  0x3f   :  { %12 = sbr.rel (!%p10_p7) target bundleno = 3 (0x3), region = 62 }

// kernel: up_conv_forward.2
= control target key start
LH: loop header
LB: loop body
LE: loop exit
PB: predicated region body
PF: predicated region fallthrough
CT: control target
= control target key end

     0   :  { %s4821_s18 = smov 0   ;;  %s4823_s19 = smov 0   ;;  %s6369_s0 = inlined_call_operand.vmem [shape: bf16[2,6,40,4], index: 0, kind: input, shape index: {}, may-alias: {0,1,2}]   ;;  %s6370_s1 = inlined_call_operand.vmem [shape: bf16[2,6,40,4], index: 1, kind: input, shape index: {}, may-alias: {0,1,2}]   ;;  %s6371_s2 = inlined_call_operand.vmem [shape: bf16[2,6,40,4], index: 2, kind: input, shape index: {}, may-alias: {0,1,2}]   ;;  %s6372_s3 = inlined_call_operand.vmem [shape: bf16[64,4,8], index: 3, kind: input, shape index: {}]   ;;  %s6373_s4 = inlined_call_operand.vmem [shape: bf16[2,4,8,4,4,8], index: 4, kind: output, shape index: {0}]   ;;  %s6374_s5 = inlined_call_operand.vmem [shape: f32[2,4,2,8], index: 5, kind: output, shape index: {1}]  }
   0x1   :  { %s4825_s20 = smov 0   ;;  %s4827_s21 = smov 0  }
   0x2   :  { %s4829_s22 = smov 0  }
   0x3 LB: > { %s25_s23 = sadd.s32 1, %s4780_s20  ;;  %s28_s24 = sadd.s32 1, %s4784_s21  ;;  %s4788_s22 = sphi %s4829_s22, %s16_s22   ;;  %s4784_s21 = sphi %s4827_s21, %s6391_s21   ;;  %s4780_s20 = sphi %s4825_s20, %s6390_s20   ;;  %s4776_s19 = sphi %s4823_s19, %s6389_s19   ;;  %s4772_s18 = sphi %s4821_s18, %s6388_s18  }
   0x4   : > { %p26_p0 = scmp.ge.s32.totalorder %s25_s23, 4  ;;  %p4321_p1 = scmp.ge.s32.totalorder %s4788_s22, 1 }
   0x5   : > { %p252_p2 = scmp.lt.s32.totalorder %s4788_s22, 9 }
   0x6   : > { %s6393_s23 = smov (%p26_p0, %s25_s23), 0  ;;  %s6395_s24 = smov (!%p26_p0, %s28_s24), %s4784_s21 }
   0x7   : > { %p253_p3 = pnand %p4321_p1, %p252_p2  ;;  %p30_p4 = scmp.ge.s32.totalorder %s6395_s24, 2 }
   0x8   : > { %p316_p5 = scmp.lt.s32.totalorder (!%p253_p3), %s4776_s19, 1  ;;  %p318_p6 = scmp.lt.s32.totalorder (!%p253_p3), %s4772_s18, 5 }
   0x9   : > { %s6397_s24 = smov (%p30_p4, %s6395_s24), 0  ;;  %256 = sbr.rel (%p253_p3) target bundleno = 688 (0x2b0), region = 36 }
   0xa   : > { %s325_s29 = sadd.s32 (!%p253_p3), 1, %s4772_s18  ;;  %p349_p8 = scmp.lt.s32.totalorder (!%p253_p3), %s4772_s18, 3 }
   0xb   : > { %p328_p7 = scmp.lt.s32.totalorder (!%p253_p3), %s325_s29, 5  ;;  %s336_s25 = sadd.s32 (!%p253_p3), 2, %s4772_s18 }
   0xc   : > { %p5527_p9 = scmp.lt.s32.totalorder (!%p253_p3), %s336_s25, 5 }
   0xe   : > { %v477_v0 = vld [vmem:[%s6372_s3] sm:$0x3]  ;;  %vm514_vm0 = vcmask 1041408   ;;  %v4335_v1 = vld [vmem:[%s6372_s3 + $0x4] sm:$0x3]  ;;  %s6399_s19 = smov (!%p316_p5, %s4776_s19), 1 }
   0xf   : > { %v543_v2 = vsel %vm514_vm0, %v477_v0, 0  ;;  %v584_v3 = vsel %vm514_vm0, %v4335_v1, 0  ;;  %v4330_v4 = vld [vmem:[%s6372_s3 + $0x2] sm:$0x3]  ;;  %v4338_v5 = vld [vmem:[%s6372_s3 + $0x6] sm:$0x3] }
  0x10   : > { %552 = vmatpush.bf16.msra.mxu1 %v543_v2  ;;  %593 = vmatpush.bf16.msra.mxu2 %v584_v3  ;;  %s319_s9 = scalar_select %p318_p6, %s4772_s18, 5  ;;  %v516_v6 = vsel %vm514_vm0, %v4330_v4, 0  ;;  %v638_v7 = vsel %vm514_vm0, %v4338_v5, 0  ;;  %v4351_v8 = vld [vmem:[%s6372_s3 + $0xc] sm:$0x3]  ;;  %vm507_vm1 = vcmask 31744  }
  0x11   : > { %s4875_s10 = smul.u32 30, %s6399_s19  ;;  %525 = vmatpush.bf16.msra.mxu0 %v516_v6  ;;  %647 = vmatpush.bf16.msra.mxu3 %v638_v7  ;;  %v785_v9 = vsel %vm514_vm0, %v4351_v8, 0  ;;  %v4341_v10 = vld [vmem:[%s6372_s3 + $0x8] sm:$0x3]  ;;  %s6401_s29 = smov (!%p328_p7, %s325_s29), 5  ;;  %vm573_vm2 = vcmask 1044480  }
  0x12   : > { %s4705_s13 = smul.u32 5, %s319_s9  ;;  %v681_v11 = vsel %vm514_vm0, %v4341_v10, 0  ;;  %v4354_v12 = vld [vmem:[%s6372_s3 + $0xe] sm:$0x3]  ;;  %v4348_v13 = vld [vmem:[%s6372_s3 + $0xa] sm:$0x3] }
  0x13   : > { %v838_v14 = vsel %vm514_vm0, %v4354_v12, 0  ;;  %v742_v15 = vsel %vm514_vm0, %v4348_v13, 0  ;;  %s4707_s30 = smul.u32 5, %s6401_s29  ;;  %vm491_vm3 = vsmask.f32 7424  ;;  %vm954_vm5 = vcmask 1046528  }
  0x14   : > { %794 = vmatpush.bf16.msrb.mxu2 %v785_v9  ;;  %s322_s27 = sadd.s32 %s4875_s10, %s4705_s13  ;;  %751 = vmatpush.bf16.msrb.mxu1 %v742_v15  ;;  %vm613_vm4 = vsmask.f32 4352  ;;  %v4363_v51 = vld [vmem:[%s6372_s3 + $0x14] sm:$0x3]  ;;  %v4358_v54 = vld [vmem:[%s6372_s3 + $0x12] sm:$0x3] }
  0x15   : > { %690 = vmatpush.bf16.msrb.mxu0 %v681_v11  ;;  %s4322_s28 = sshll.u32 %s322_s27, 2  ;;  %847 = vmatpush.bf16.msrb.mxu3 %v838_v14  ;;  %s332_s29 = sadd.s32 %s4707_s30, %s4875_s10  ;;  %v1064_v53 = vsel %vm514_vm0, %v4363_v51, 0  ;;  %v4366_v57 = vld [vmem:[%s6372_s3 + $0x16] sm:$0x3]  ;;  %v965_v59 = vsel %vm514_vm0, %v4358_v54, 0  ;;  %vm1491_vm6 = vcmask 1045504  }
  0x16   : > { %s4897_s8 = scalar_lea.vmem %s6369_s0, %s4322_s28  ;;  %s4323_s9 = sshll.u32 %s332_s29, 2  ;;  %v1098_v60 = vsel %vm514_vm0, %v4366_v57, 0  ;;  %v4357_v61 = vld [vmem:[%s6372_s3 + $0x10] sm:$0x3]  ;;  %vm1531_vm7 = vsmask.f32 5376 }
  0x17   : > { %v4900_v16 = vld [vmem:[%s4897_s8] sm:$0xff]   ;;  %v476_v18 = vld [vmem:[%s4897_s8 + $0x8] sm:$0xff]   ;;  %s4917_s13 = scalar_lea.vmem %s6370_s1, %s4323_s9  ;;  %v1010_v62 = vsel %vm514_vm0, %v4357_v61, 0  ;;  %s4326_s9 = sshll.u32 %s6399_s19, 7 }
  0x18   : > { %v4677_v17 = vld [vmem:[%s4897_s8] sm:$0xf0]  ;;  %v495_v19 = vshll.u32 %v4900_v16, 16  ;;  %4333 = vmatmul.msk.bf16.vlgmr.msra.gmra.mxu1 %vm507_vm1, %v4900_v16  ;;  %v487_v20 = vunpack.c.l.b16 %v476_v18  ;;  %v4678_v21 = vld [vmem:[%s4897_s8] sm:$0x8]  ;;  %v493_v22 = vshrl.u32 %v4900_v16, 16 }
  0x19   : > { %v564_v23 = vld [vmem:[%s4897_s8 + $0xc] sm:$0x7]  ;;  %v4679_v24 = vor.u32 %v4678_v21, %v4677_v17  ;;  %v623_v34 = vshrl.u32 %v476_v18, 16  ;;  %v626_v37 = vshll.u32 %v476_v18, 16  ;;  %v4939_v58 = vld [vmem:[%s4917_s13] sm:$0xff]   ;;  %1019 = vmatpush.bf16.msra.mxu1 %v1010_v62  ;;  %s5284_s7 = scalar_select %p349_p8, %s4772_s18, 3 }
  0x1a   : > { %v478_v25 = vld [vmem:[%s4897_s8 + $0xc] sm:$0x1]  ;;  %v497_v26 = vrot.slane %v495_v19, 1  ;;  %v570_v27 = vunpack.c.l.b16 %v564_v23  ;;  %v536_v52 = vpack.c.b16 %v487_v20, %v487_v20  ;;  %v723_v0 = vshll.u32 %v4939_v58, 16  ;;  %v4680_v2 = vld [vmem:[%s4917_s13] sm:$0xf0] }
  0x1b   : > { %v488_v28 = vunpack.c.l.b16 %v478_v25  ;;  %v615_v29 = vshrl.u32 %v4679_v24, 16  ;;  %v618_v30 = vshll.u32 %v4679_v24, 16  ;;  %v574_v32 = vrot.slane %v4679_v24, 3  ;;  %v706_v48 = vld [vmem:[%s4917_s13 + $0x8] sm:$0xff]   ;;  %v4681_v6 = vld [vmem:[%s4917_s13] sm:$0x8] }
  0x1c   : > { %v572_v31 = vpack.c.b16 %v570_v27, %v487_v20  ;;  %v4912_v38 = vor.u32 %v497_v26, %v493_v22  ;;  %v625_v41 = vrot.slane %v623_v34, 3  ;;  %v628_v43 = vrot.slane %v626_v37, 4  ;;  %v707_v49 = vld [vmem:[%s4917_s13 + $0xc] sm:$0x1]  ;;  %v4375_v34 = vld [vmem:[%s6372_s3 + $0x1c] sm:$0x3] }
  0x1d   : > { %v490_v33 = vpack.c.b16 %v488_v28, %v487_v20  ;;  %v617_v35 = vrot.slane %v615_v29, 3  ;;  %v620_v36 = vrot.slane %v618_v30, 4  ;;  %v716_v55 = vunpack.c.l.b16 %v706_v48  ;;  %v766_v8 = vld [vmem:[%s4917_s13 + $0xc] sm:$0x7]  ;;  %v4607_v29 = vld [vmem:[%s4917_s13] sm:$0xff]  ;;  %s4325_s29 = sshll.u32 %s5284_s7, 5 }
  0x1e   : > { %v575_v39 = vrot.slane %v572_v31, 3  ;;  %v629_v46 = vor.u32 %v628_v43, %v625_v41  ;;  %v717_v56 = vunpack.c.l.b16 %v707_v49  ;;  %v721_v3 = vshrl.u32 %v4939_v58, 16  ;;  %v4369_v37 = vld [vmem:[%s6372_s3 + $0x18] sm:$0x3]  ;;  %v941_v57 = vld [vmem:[%s4897_s8] sm:$0xe]  ;;  %s5342_s27 = sadd.s32 %s4326_s9, %s4325_s29 }
  0x1f   : > { %v500_v40 = vshll.u32 %v490_v33, 16  ;;  %v621_v42 = vor.u32 %v620_v36, %v617_v35  ;;  %v504_v1 = vshrl.u32 %v490_v33, 16  ;;  %v725_v4 = vrot.slane %v723_v0, 1  ;;  %v938_v33 = vld [vmem:[%s4897_s8 + $0xc] sm:$0x1]  ;;  %s4327_s28 = sshll.u32 %s5342_s27, 1 }
  0x20   : > { %v576_v44 = vsel %vm573_vm2, %v574_v32, %v575_v39  ;;  %v719_v63 = vpack.c.b16 %v717_v56, %v716_v55  ;;  %v4682_v9 = vor.u32 %v4681_v6, %v4680_v2  ;;  %v772_v12 = vunpack.c.l.b16 %v766_v8  ;;  %v4966_v32 = vld [vmem:[%s4897_s8 + $0x8] sm:$0xff]   ;;  %s5383_s6 = scalar_lea.vmem %s6373_s4, %s4327_s28  ;;  %s6403_s25 = smov (!%p5527_p9, %s336_s25), 5 }
  0x21   : > { %v502_v45 = vrot.slane %v500_v40, 1  ;;  %4336 = vmatmul.msk.bf16.vlgmr.msra.gmra.mxu2 %vm507_vm1, %v576_v44  ;;  %v630_v50 = vsel %vm613_vm4, %v621_v42, %v629_v46  ;;  %v4954_v10 = vor.u32 %v725_v4, %v721_v3  ;;  %v823_v17 = vshrl.u32 %v706_v48, 16  ;;  %v4372_v44 = vld [vmem:[%s6372_s3 + $0x1a] sm:$0x3]  ;;  %s4708_s18 = smul.u32 5, %s6403_s25 }
  0x22   : > { %4339 = vmatmul.msk.bf16.vlgmr.msra.gmra.mxu3 %vm507_vm1, %v630_v50  ;;  %1073 = vmatpush.bf16.msra.mxu2 %v1064_v53  ;;  %v728_v5 = vshll.u32 %v719_v63, 16  ;;  %v815_v13 = vshrl.u32 %v4682_v9, 16  ;;  %v818_v15 = vshll.u32 %v4682_v9, 16  ;;  %v826_v18 = vshll.u32 %v706_v48, 16 }
  0x23   : > { %v503_v47 = vsel %vm491_vm3, %v4912_v38, %v502_v45  ;;  %1107 = vmatpush.bf16.msra.mxu3 %v1098_v60  ;;  %v506_v7 = vor.u32 %v504_v1, %v502_v45  ;;  %v774_v19 = vpack.c.b16 %v772_v12, %v716_v55  ;;  %v825_v22 = vrot.slane %v823_v17, 3  ;;  %v4386_v17 = vld [vmem:[%s6372_s3 + $0x22] sm:$0x3]  ;;  %s5604_s14 = sadd.s32 %s4708_s18, %s4875_s10 }
  0x24   : > { %4331 = vmatmul.msk.bf16.vlgmr.msra.gmra.mxu0 %vm507_vm1, %v503_v47  ;;  %v730_v11 = vrot.slane %v728_v5, 1  ;;  %v817_v20 = vrot.slane %v815_v13, 3  ;;  %v820_v21 = vrot.slane %v818_v15, 4  ;;  %v828_v23 = vrot.slane %v826_v18, 4  ;;  %v663_v47 = vld [vmem:[%s4917_s13 + $0x8] sm:$0xff]   ;;  %s4324_s10 = sshll.u32 %s5604_s14, 2 }
  0x25   : > { %974 = vmatpush.bf16.msra.mxu0 %v965_v59  ;;  %v775_v24 = vrot.slane %v4682_v9, 3  ;;  %v776_v25 = vrot.slane %v774_v19, 3  ;;  %v732_v30 = vshrl.u32 %v719_v63, 16  ;;  %v1255_v36 = vsel %vm514_vm0, %v4375_v34, 0  ;;  %v4395_v13 = vld [vmem:[%s6372_s3 + $0x24] sm:$0x3]  ;;  %s5627_s17 = scalar_lea.vmem %s6371_s2, %s4324_s10 }
  0x26   : > { %v731_v14 = vsel %vm491_vm3, %v4954_v10, %v730_v11  ;;  %v821_v26 = vor.u32 %v820_v21, %v817_v20  ;;  %v829_v27 = vor.u32 %v828_v23, %v825_v22  ;;  %v950_v40 = vunpack.c.l.b16 %v4966_v32  ;;  %v4402_v18 = vld [vmem:[%s6372_s3 + $0x26] sm:$0x3]  ;;  %v4385_v21 = vld [vmem:[%s6372_s3 + $0x20] sm:$0x3]  ;;  %v1124_v22 = vld [vmem:[%s4917_s13 + $0xc] sm:$0x1] }
  0x27   : > { %v777_v28 = vsel %vm573_vm2, %v775_v24, %v776_v25  ;;  %v734_v35 = vor.u32 %v732_v30, %v730_v11  ;;  %v951_v41 = vunpack.c.l.b16 %v938_v33  ;;  %v1159_v42 = vsel %vm514_vm0, %v4369_v37, 0  ;;  %v1182_v23 = vld [vmem:[%s4917_s13] sm:$0xe] }
  0x28   : > { %4334 = vmatmul.msk.bf16.gmra.mxu1 %vm507_vm1, %v536_v52  ;;  %v830_v31 = vsel %vm613_vm4, %v821_v26, %v829_v27  ;;  %v1198_v45 = vsel %vm514_vm0, %v4372_v44, 0  ;;  %v4632_v49 = vunpack.c.h.b16 %v4900_v16  ;;  %v1037_v51 = vunpack.c.h.b16 %v4966_v32  ;;  %v1221_v26 = vld [vmem:[%s4917_s13] sm:$0x8] }
  0x29   : > { %v4991_v48 = vpack.c.b16 %v951_v41, %v950_v40  ;;  %v671_v52 = vunpack.c.l.b16 %v663_v47  ;;  %v1049_v61 = vshrl.u32 %v4966_v32, 16  ;;  %v1052_v62 = vshll.u32 %v4966_v32, 16 }
  0x2a   : > { %v948_v16 = vunpack.c.l.b16 %v941_v57  ;;  %v1502_v15 = vsel %vm514_vm0, %v4395_v13, 0  ;;  %v1422_v19 = vsel %vm514_vm0, %v4386_v17, 0  ;;  %v1556_v20 = vsel %vm514_vm0, %v4402_v18, 0 }
  0x2b   : > { %v996_v53 = vshll.u32 %v4991_v48, 16  ;;  %v673_v55 = vpack.c.b16 %v671_v52, %v671_v52  ;;  %v1051_v2 = vrot.slane %v1049_v61, 3  ;;  %v1054_v3 = vrot.slane %v1052_v62, 4 }
  0x2c   : > { %v952_v4 = vpack.c.b16 %v4632_v49, %v948_v16  ;;  %v956_v8 = vrot.slane %v4991_v48, 1  ;;  %v1000_v12 = vshrl.u32 %v4991_v48, 16  ;;  %v1455_v24 = vsel %vm514_vm0, %v4385_v21, 0 }
  0x2d   : > { %v998_v56 = vrot.slane %v996_v53, 1  ;;  %v1055_v6 = vor.u32 %v1054_v3, %v1051_v2  ;;  %v5037_v32 = vunpack.c.h.b16 %v663_v47  ;;  %v1090_v37 = vpack.c.b16 %v1037_v51, %v1037_v51  ;;  %v4608_v2 = vld [vmem:[%s4897_s8] sm:$0xf0]  ;;  %v4686_v3 = vld [vmem:[%s4897_s8 + $0x8] sm:$0xf]  }
  0x2f   : > { %v999_v63 = vsel %vm491_vm3, %v4912_v38, %v998_v56  ;;  %v1089_v38 = vpack.c.b16 %v950_v40, %v4632_v49  ;;  %v1281_v17 = vpack.c.b16 %v5037_v32, %v5037_v32 }
  0x31   : > { %4337 = vmatmul.msk.bf16.gmra.mxu2 %vm507_vm1, %v575_v39  ;;  %v4378_v39 = vld [vmem:[%s6372_s3 + $0x1e] sm:$0x3] }
  0x32   : > { %4340 = vmatmul.msk.bf16.gmra.mxu3 %vm507_vm1, %v629_v46  ;;  %v1289_v43 = vsel %vm514_vm0, %v4378_v39, 0  ;;  %v1030_v46 = vld [vmem:[%s4897_s8] sm:$0x8] }
  0x33   : > { %v1036_v50 = vunpack.c.l.b16 %v1030_v46 }
  0x34   : > { %4332 = vmatmul.msk.bf16.gmra.mxu0 %vm507_vm1, %v506_v7  ;;  %v955_v7 = vrot.slane %v952_v4, 1  ;;  %v4703_v4 = vld [vmem:[%s4897_s8 + $0x8] sm:$0x70] }
  0x35   : > { %v1038_v54 = vpack.c.b16 %v4632_v49, %v1036_v50 }
  0x36   : > { %v957_v11 = vsel %vm954_vm5, %v955_v7, %v956_v8 }
  0x37   : > { %v1041_v59 = vshrl.u32 %v1038_v54, 16  ;;  %v1044_v60 = vshll.u32 %v1038_v54, 16 }
  0x38   : > { %4349 = vmatmul.msk.bf16.vlgmr.msrb.gmra.mxu1 %vm507_vm1, %v731_v14  ;;  %v1002_v14 = vor.u32 %v1000_v12, %v998_v56  ;;  %v4415_v56 = vld [vmem:[%s6372_s3 + $0x2c] sm:$0x3]  ;;  %v365_v12 = vlaneseq }
  0x39   : > { %1207 = vmatpush.bf16.msrb.mxu1 %v1198_v45  ;;  %v1043_v0 = vrot.slane %v1041_v59, 3  ;;  %v1046_v1 = vrot.slane %v1044_v60, 4  ;;  %v1707_v57 = vsel %vm514_vm0, %v4415_v56, 0  ;;  %v4422_v59 = vld [vmem:[%s6372_s3 + $0x2e] sm:$0x3] }
  0x3a   : > { %v4412_v60 = vld [vmem:[%s6372_s3 + $0x2a] sm:$0x3]  ;;  %v1760_v62 = vsel %vm514_vm0, %v4422_v59, 0 }
  0x3b   : > { %v1047_v5 = vor.u32 %v1046_v1, %v1043_v0  ;;  %v1658_v16 = vsel %vm514_vm0, %v4412_v60, 0  ;;  %v1477_v0 = vld [vmem:[%s4897_s8 + $0xc] sm:$0xf]  ;;  %v1525_v1 = vld [vmem:[%s4897_s8 + $0x10] sm:$0x7] }
  0x3c   : > { %v1529_v7 = vunpack.c.l.b16 %v1525_v1 }
  0x3d   : > { %v1056_v9 = vsel %vm613_vm4, %v1047_v5, %v1055_v6 }
  0x41   : > { %4352 = vmatmul.msk.bf16.vlgmr.msrb.gmra.mxu2 %vm507_vm1, %v777_v28  ;;  %v1186_v28 = vunpack.c.l.b16 %v1182_v23 }
  0x42   : > { %4355 = vmatmul.msk.bf16.vlgmr.msrb.gmra.mxu3 %vm507_vm1, %v830_v31  ;;  %1264 = vmatpush.bf16.msrb.mxu2 %v1255_v36  ;;  %v1227_v31 = vunpack.c.l.b16 %v1221_v26 }
  0x43   : > { %1298 = vmatpush.bf16.msrb.mxu3 %v1289_v43 }
  0x44   : > { %4346 = vmatmul.msk.bf16.vlgmr.msrb.gmra.mxu0 %vm507_vm1, %v4607_v29  ;;  %v4636_v29 = vunpack.c.h.b16 %v4939_v58 }
  0x45   : > { %1168 = vmatpush.bf16.msrb.mxu0 %v1159_v42 }
  0x46   : > { %v1187_v34 = vpack.c.b16 %v4636_v29, %v1186_v28 }
  0x48   : > { %4350 = vmatmul.msk.bf16.gmra.mxu1 %vm507_vm1, %v734_v35  ;;  %v1229_v35 = vpack.c.b16 %v4636_v29, %v1227_v31  ;;  %v1188_v39 = vrot.slane %v1187_v34, 1 }
  0x4a   : > { %v1232_v41 = vshrl.u32 %v1229_v35, 16  ;;  %v1235_v42 = vshll.u32 %v1229_v35, 16 }
  0x4c   : > { %v1234_v45 = vrot.slane %v1232_v41, 3  ;;  %v1237_v46 = vrot.slane %v1235_v42, 4 }
  0x4e   : > { %v1238_v50 = vor.u32 %v1237_v46, %v1234_v45  ;;  %v5103_v46 = vld [vmem:[%s4917_s13 + $0x8] sm:$0xff]  }
  0x51   : > { %4353 = vmatmul.msk.bf16.gmra.mxu2 %vm507_vm1, %v776_v25  ;;  %v5031_v25 = vld [vmem:[%s4917_s13 + $0x8] sm:$0xff]  }
  0x52   : > { %4356 = vmatmul.msk.bf16.gmra.mxu3 %vm507_vm1, %v829_v27  ;;  %v1134_v27 = vunpack.c.l.b16 %v1124_v22  ;;  %v1133_v30 = vunpack.c.l.b16 %v5031_v25  ;;  %v1632_v56 = vunpack.c.h.b16 %v5031_v25 }
  0x54   : > { %4347 = vmatmul.msk.bf16.gmra.mxu0 %vm507_vm1, %v673_v55  ;;  %v1136_v33 = vpack.c.b16 %v1134_v27, %v1133_v30  ;;  %v1230_v36 = vpack.c.b16 %v5037_v32, %v1133_v30  ;;  %v1280_v55 = vpack.c.b16 %v1133_v30, %v4636_v29 }
  0x56   : > { %v1189_v40 = vrot.slane %v1136_v33, 1  ;;  %v1240_v43 = vshrl.u32 %v1230_v36, 16  ;;  %v1243_v44 = vshll.u32 %v1230_v36, 16  ;;  %v1145_v49 = vshll.u32 %v1136_v33, 16 }
  0x57   : > { %v1149_v5 = vshrl.u32 %v1136_v33, 16 }
  0x58   : > { %4361 = vmatmul.msk.bf16.vlgmr.msra.gmra.mxu1 %vm507_vm1, %v999_v63  ;;  %v1190_v58 = vsel %vm954_vm5, %v1188_v39, %v1189_v40  ;;  %v1242_v47 = vrot.slane %v1240_v43, 3  ;;  %v1245_v48 = vrot.slane %v1243_v44, 4  ;;  %v1147_v52 = vrot.slane %v1145_v49, 1  ;;  %v4389_v63 = vld [vmem:[%s4897_s8] sm:$0x8] }
  0x59   : > { %1464 = vmatpush.bf16.msra.mxu1 %v1455_v24 }
  0x5a   : > { %v1246_v51 = vor.u32 %v1245_v48, %v1242_v47  ;;  %v1148_v54 = vsel %vm491_vm3, %v4954_v10, %v1147_v52  ;;  %v4405_v10 = vld [vmem:[%s6372_s3 + $0x28] sm:$0x3]  ;;  %v1151_v13 = vor.u32 %v1149_v5, %v1147_v52 }
  0x5b   : > { %v1605_v61 = vsel %vm514_vm0, %v4405_v10, 0 }
  0x5c   : > { %v1247_v53 = vsel %vm613_vm4, %v1238_v50, %v1246_v51 }
  0x61   : > { %4364 = vmatmul.msk.bf16.vlgmr.msra.gmra.mxu2 %vm507_vm1, %v1056_v9  ;;  %v4687_v9 = vor.u32 %v4703_v4, %v4686_v3 }
  0x62   : > { %4367 = vmatmul.msk.bf16.vlgmr.msra.gmra.mxu3 %vm507_vm1, %v1089_v38  ;;  %1511 = vmatpush.bf16.msra.mxu2 %v1502_v15  ;;  %v4609_v38 = vld [vmem:[%s4897_s8 + $0x4] sm:$0xf0]  ;;  %v5077_v15 = vshrl.u32 %v365_v12, 7  ;;  %v4435_v12 = vld [vmem:[%s6372_s3 + $0x34] sm:$0x3] }
  0x63   : > { %1565 = vmatpush.bf16.msra.mxu3 %v1556_v20  ;;  %v5085_v22 = vrot.slane %v4687_v9, 3 }
  0x64   : > { %4359 = vmatmul.msk.bf16.vlgmr.msra.gmra.mxu0 %vm507_vm1, %v957_v11  ;;  %v4398_v11 = vld [vmem:[%s4897_s8 + $0x4] sm:$0xc]  ;;  %v372_v23 = vand.u32 65535, %v5077_v15  ;;  %v373_v36 = vshrl.u32 %v5077_v15, 16 }
  0x65   : > { %1431 = vmatpush.bf16.msra.mxu0 %v1422_v19  ;;  %v4399_v18 = vor.u32 %v4609_v38, %v4398_v11  ;;  %v5082_v19 = vld [vmem:[%s4897_s8 + $0x8] sm:$0xff]  }
  0x66   : > { %v1407_v28 = vshrl.u32 %v5082_v19, 16  ;;  %v1410_v29 = vshll.u32 %v5082_v19, 16  ;;  %v375_v48 = vmul.u32 43691, %v372_v23  ;;  %v5105_v49 = vmul.u32 43691, %v373_v36 }
  0x67   : > { %v1533_v30 = vshrl.u32 %v4399_v18, 16  ;;  %v1536_v31 = vshll.u32 %v4399_v18, 16 }
  0x68   : > { %4362 = vmatmul.msk.bf16.gmra.mxu1 %vm507_vm1, %v1002_v14  ;;  %v1478_v14 = vld [vmem:[%s4897_s8 + $0x10] sm:$0x3]  ;;  %v1409_v42 = vrot.slane %v1407_v28, 3  ;;  %v1412_v43 = vrot.slane %v1410_v29, 4 }
  0x69   : > { %v1488_v24 = vunpack.c.l.b16 %v1478_v14  ;;  %v1535_v44 = vrot.slane %v1533_v30, 2  ;;  %v4429_v28 = vld [vmem:[%s6372_s3 + $0x30] sm:$0x3] }
  0x6a   : > { %v5116_v59 = vor.u32 %v1412_v43, %v1409_v42 }
  0x71   : > { %4365 = vmatmul.msk.bf16.gmra.mxu2 %vm507_vm1, %v1055_v6  ;;  %v1487_v6 = vunpack.c.l.b16 %v1477_v0 }
  0x72   : > { %4368 = vmatmul.msk.bf16.gmra.mxu3 %vm507_vm1, %v1090_v37  ;;  %v5097_v37 = vmul.u32 43690, %v372_v23  ;;  %v5154_v23 = vadd.s32 16, %v5077_v15 }
  0x73   : > { %v1530_v20 = vpack.c.b16 %v1529_v7, %v1487_v6  ;;  %v5099_v39 = vpack.c.b16 %v1488_v24, %v1487_v6  ;;  %v378_v6 = vmul.u32 43690, %v373_v36 }
  0x74   : > { %4360 = vmatmul.msk.bf16.gmra.mxu0 %vm507_vm1, %v956_v8  ;;  %v4390_v8 = vor.u32 %v4608_v2, %v4389_v63  ;;  %v379_v50 = vshll.u32 %v5097_v37, 16 }
  0x75   : > { %v1541_v32 = vshrl.u32 %v1530_v20, 16  ;;  %v1544_v35 = vshll.u32 %v1530_v20, 16  ;;  %v1493_v52 = vrot.slane %v5099_v39, 2  ;;  %v1981_v20 = vsel %vm514_vm0, %v4435_v12, 0 }
  0x76   : > { %v1445_v21 = vrot.slane %v4390_v8, 3  ;;  %v1399_v26 = vshrl.u32 %v4390_v8, 16  ;;  %v1402_v27 = vshll.u32 %v4390_v8, 16  ;;  %v385_v63 = vadd.s32 %v379_v50, %v375_v48 }
  0x77   : > { %v1543_v45 = vrot.slane %v1541_v32, 2  ;;  %v1546_v47 = vrot.slane %v1544_v35, 3  ;;  %vm383_vm8 = vc.u32 %v375_v48, %v379_v50  ;;  %v4790_v8 = vmov 0  }
  0x78   : > { %4373 = vmatmul.msk.bf16.vlgmr.msrb.gmra.mxu1 %vm507_vm1, %v1190_v58  ;;  %v1447_v34 = vsel %vm573_vm2, %v1445_v21, %v5085_v22  ;;  %v1404_v41 = vrot.slane %v1402_v27, 4  ;;  %v1538_v58 = vrot.slane %v1536_v31, 3  ;;  %v384_v9 = vsel %vm383_vm8, 1, %v4790_v8  ;;  %v4442_v27 = vld [vmem:[%s6372_s3 + $0x36] sm:$0x3] }
  0x79   : > { %1667 = vmatpush.bf16.msrb.mxu1 %v1658_v16  ;;  %v381_v16 = vshll.u32 %v5105_v49, 16  ;;  %v386_v29 = vadd.s32 %v384_v9, %v378_v6  ;;  %v2020_v31 = vsel %vm514_vm0, %v4442_v27, 0  ;;  %v1921_v32 = vsel %vm514_vm0, %v4429_v28, 0 }
  0x7a   : > { %v431_v48 = vshrl.u32 %v5154_v23, 16 }
  0x7b   : > { %vm387_vm9 = vc.u32 %v385_v63, %v381_v16 }
  0x7c   : > { %v388_v21 = vsel %vm387_vm9, 1, %v4790_v8 }
  0x81   : > { %4376 = vmatmul.msk.bf16.vlgmr.msrb.gmra.mxu2 %vm507_vm1, %v1247_v53  ;;  %v4408_v53 = vld [vmem:[%s4917_s13] sm:$0x8] }
  0x82   : > { %4379 = vmatmul.msk.bf16.vlgmr.msrb.gmra.mxu3 %vm507_vm1, %v1280_v55  ;;  %1716 = vmatpush.bf16.msrb.mxu2 %v1707_v57  ;;  %v1591_v55 = vunpack.c.l.b16 %v5103_v46  ;;  %v5114_v57 = vadd.s32 8, %v5077_v15 }
  0x83   : > { %1769 = vmatpush.bf16.msrb.mxu3 %v1760_v62  ;;  %v5120_v62 = vor.u32 %v1546_v47, %v1543_v45  ;;  %v430_v47 = vand.u32 65535, %v5154_v23 }
  0x84   : > { %4370 = vmatmul.msk.bf16.vlgmr.msrb.gmra.mxu0 %vm507_vm1, %v1148_v54  ;;  %v4610_v54 = vld [vmem:[%s4917_s13] sm:$0xf0]  ;;  %v1633_v1 = vpack.c.b16 %v1632_v56, %v1591_v55  ;;  %v401_v2 = vand.u32 65535, %v5114_v57 }
  0x85   : > { %1614 = vmatpush.bf16.msrb.mxu0 %v1605_v61  ;;  %v1539_v61 = vor.u32 %v1538_v58, %v1535_v44  ;;  %v5126_v25 = vor.u32 %v4610_v54, %v4408_v53  ;;  %v1730_v58 = vld [vmem:[%s4917_s13 + $0x10] sm:$0x7]  ;;  %v390_v53 = vadd.s32 %v388_v21, %v386_v29  ;;  %v1582_v29 = vld [vmem:[%s4917_s13 + $0xc] sm:$0x7] }
  0x86   : > { %v1643_v38 = vshrl.u32 %v1633_v1, 16  ;;  %v5146_v14 = vmul.u32 43690, %v401_v2  ;;  %v1734_v16 = vunpack.c.l.b16 %v1730_v58 }
  0x87   : > { %v1548_v5 = vsel %vm1531_vm7, %v1539_v61, %v5120_v62  ;;  %v1635_v7 = vshrl.u32 %v5126_v25, 16  ;;  %v1638_v11 = vshll.u32 %v5126_v25, 16  ;;  %v1693_v61 = vunpack.c.h.b16 %v5103_v46 }
  0x88   : > { %4374 = vmatmul.msk.bf16.gmra.mxu1 %vm507_vm1, %v1189_v40  ;;  %v1401_v40 = vrot.slane %v1399_v26, 3  ;;  %v4430_v26 = vld [vmem:[%s6372_s3 + $0x32] sm:$0x3]  ;;  %v408_v42 = vshll.u32 %v5146_v14, 16  ;;  %v1645_v44 = vrot.slane %v1643_v38, 3  ;;  %v436_v38 = vmul.u32 43690, %v431_v48 }
  0x89   : > { %v1873_v30 = vsel %vm514_vm0, %v4430_v26, 0  ;;  %v5172_v36 = vrot.slane %v1635_v7, 3  ;;  %v4611_v7 = vld [vmem:[%s4917_s13 + $0x4] sm:$0xf0] }
  0x8a   : > { %v1405_v10 = vor.u32 %v1404_v41, %v1401_v40  ;;  %v5174_v40 = vrot.slane %v1638_v11, 4 }
  0x8c   : > { %v1414_v4 = vsel %vm613_vm4, %v1405_v10, %v5116_v59  ;;  %v433_v10 = vmul.u32 43691, %v430_v47 }
  0x91   : > { %4377 = vmatmul.msk.bf16.gmra.mxu2 %vm507_vm1, %v1246_v51  ;;  %v1492_v51 = vrot.slane %v4399_v18, 2  ;;  %v1646_v18 = vshll.u32 %v1633_v1, 16 }
  0x92   : > { %4380 = vmatmul.msk.bf16.gmra.mxu3 %vm507_vm1, %v1281_v17 }
  0x93   : > { %v1494_v0 = vsel %vm1491_vm6, %v1492_v51, %v1493_v52  ;;  %v1648_v50 = vrot.slane %v1646_v18, 4  ;;  %v380_v51 = vshrl.u32 %v5097_v37, 16  ;;  %v382_v37 = vshrl.u32 %v5105_v49, 16  ;;  %v1684_v49 = vld [vmem:[%s4917_s13 + $0x10] sm:$0x3] }
  0x94   : > { %4371 = vmatmul.msk.bf16.gmra.mxu0 %vm507_vm1, %v1151_v13  ;;  %v402_v13 = vshrl.u32 %v5114_v57, 16 }
  0x95   : > { %v5092_v33 = vpop.f32.mrf.mxu1  ;;  %v391_v9 = vadd.s32 %v390_v53, %v380_v51 }
  0x96   : > { %v5176_v41 = vmul.u32 43691, %v402_v13  ;;  %v407_v45 = vmul.u32 43690, %v402_v13  ;;  %v409_v13 = vshrl.u32 %v5146_v14, 16  ;;  %v1641_v14 = vor.u32 %v5174_v40, %v5172_v36 }
  0x98   : > { %4393 = vmatmul.msk.bf16.vlgmr.msra.gmra.mxu1 %vm507_vm1, %v1447_v34  ;;  %v404_v34 = vmul.u32 43691, %v401_v2  ;;  %v410_v54 = vshll.u32 %v5176_v41, 16  ;;  %v4418_v2 = vld [vmem:[%s4917_s13 + $0x4] sm:$0xc]  ;;  %v411_v58 = vshrl.u32 %v5176_v41, 16 }
  0x99   : > { %1930 = vmatpush.bf16.msra.mxu1 %v1921_v32  ;;  %v4419_v28 = vor.u32 %v4611_v7, %v4418_v2  ;;  %v392_v32 = vadd.s32 %v391_v9, %v382_v37 }
  0x9a   : > { %vm412_vm10 = vc.u32 %v404_v34, %v408_v42  ;;  %v414_v56 = vadd.s32 %v408_v42, %v404_v34  ;;  %v1694_v42 = vunpack.c.l.b16 %v1684_v49 }
  0x9b   : > { %v413_v63 = vsel %vm412_vm10, 1, %v4790_v8  ;;  %v1740_v36 = vshll.u32 %v4419_v28, 16  ;;  %v393_v51 = vshrl.u32 %v392_v32, 2  ;;  %v1697_v7 = vrot.slane %v4419_v28, 2 }
  0x9c   : > { %vm416_vm11 = vc.u32 %v414_v56, %v410_v54  ;;  %v5228_v54 = vpack.c.b16 %v1694_v42, %v1693_v61 }
  0x9d   : > { %v5118_v60 = vpop.f32.mrf.mxu1  ;;  %v417_v11 = vsel %vm416_vm11, 1, %v4790_v8  ;;  %v1742_v2 = vrot.slane %v1740_v36, 3 }
  0x9e   : > { %v1698_v46 = vrot.slane %v5228_v54, 2 }
  0xa1   : > { %v5131_v3 = vpop.f32.mrf.mxu0  ;;  %4400 = vmatmul.msk.bf16.vlgmr.msra.gmra.mxu2 %vm507_vm1, %v1494_v0  ;;  %v5192_v0 = vmul.u32 43691, %v431_v48  ;;  %v1592_v48 = vunpack.c.l.b16 %v1582_v29 }
  0xa2   : > { %4403 = vmatmul.msk.bf16.vlgmr.msra.gmra.mxu3 %vm507_vm1, %v1548_v5  ;;  %1990 = vmatpush.bf16.msra.mxu2 %v1981_v20 }
  0xa3   : > { %2029 = vmatpush.bf16.msra.mxu3 %v2020_v31  ;;  %v439_v12 = vshll.u32 %v5192_v0, 16  ;;  %v5215_v31 = vor.u32 %v1648_v50, %v1645_v44 }
  0xa4   : > { %4391 = vmatmul.msk.bf16.vlgmr.msra.gmra.mxu0 %vm507_vm1, %v1414_v4  ;;  %v5148_v17 = vpop.f32.mrf.mxu2  ;;  %v415_v4 = vadd.s32 %v413_v63, %v407_v45 }
  0xa5   : > { %v5156_v24 = vpop.f32.mrf.mxu1  ;;  %v5170_v35 = vpop.f32.mrf.mxu3  ;;  %1882 = vmatpush.bf16.msra.mxu0 %v1873_v30  ;;  %v1735_v30 = vpack.c.b16 %v1734_v16, %v1693_v61  ;;  %v1650_v41 = vsel %vm613_vm4, %v1641_v14, %v5215_v31  ;;  %v394_v61 = vmul.u32 6, %v393_v51 }
  0xa6   : > { %v419_v18 = vadd.s32 %v417_v11, %v415_v4  ;;  %v5243_v11 = vld [vmem:[%s4897_s8 + $0x4] sm:$0xff]  }
  0xa7   : > { %v1745_v40 = vshrl.u32 %v1735_v30, 16  ;;  %v1748_v44 = vshll.u32 %v1735_v30, 16 }
  0xa8   : > { %4394 = vmatmul.msk.bf16.gmra.mxu1 %vm507_vm1, %v5085_v22  ;;  %v5188_v22 = vmul.u32 43690, %v430_v47  ;;  %v420_v45 = vadd.s32 %v419_v18, %v409_v13 }
  0xa9   : > { %v5179_v43 = vpop.f32.mrf.mxu0  ;;  %v1747_v37 = vrot.slane %v1745_v40, 2  ;;  %v1750_v4 = vrot.slane %v1748_v44, 3  ;;  %v1952_v40 = vunpack.c.h.b16 %v5243_v11 }
  0xaa   : > { %v437_v5 = vshll.u32 %v5188_v22, 16  ;;  %v421_v56 = vadd.s32 %v420_v45, %v411_v58 }
  0xac   : > { %v5194_v1 = vpop.f32.mrf.mxu2  ;;  %vm441_vm12 = vc.u32 %v433_v10, %v437_v5  ;;  %v443_v20 = vadd.s32 %v437_v5, %v433_v10  ;;  %v440_v5 = vshrl.u32 %v5192_v0, 16  ;;  %v422_v9 = vshrl.u32 %v421_v56, 2 }
  0xad   : > { %v561_v6 = vpop.f32.mrf.mxu1  ;;  %v5203_v21 = vpop.f32.mrf.mxu3  ;;  %v442_v26 = vsel %vm441_vm12, 1, %v4790_v8  ;;  %v395_v0 = vsub.s32 %v5077_v15, %v394_v61 }
  0xae   : > { %vm445_vm13 = vc.u32 %v443_v20, %v439_v12  ;;  %v444_v34 = vadd.s32 %v442_v26, %v436_v38  ;;  %v1595_v12 = vrot.slane %v5126_v25, 3  ;;  %v5247_v20 = vor.u32 %v1750_v4, %v1747_v37 }
  0xaf   : > { %v446_v47 = vsel %vm445_vm13, 1, %v4790_v8  ;;  %v438_v8 = vshrl.u32 %v5188_v22, 16  ;;  %v555_v22 = vadd.f32 %v5092_v33, %v5131_v3  ;;  %v1699_v26 = vsel %vm1491_vm6, %v1697_v7, %v1698_v46 }
  0xb0   : > { %v448_v53 = vadd.s32 %v446_v47, %v444_v34  ;;  %v1861_v25 = vunpack.c.l.b16 %v5243_v11  ;;  %v1941_v34 = vld [vmem:[%s4897_s8 + $0x4] sm:$0xc]  ;;  %vm456_vm14 = vcmp.ne.s32.totalorder %v395_v0, 0  ;;  %vm459_vm15 = vcmp.lt.s32.totalorder %v395_v0, 0  ;;  %v4471_v11 = vld [vmem:[%s6372_s3 + $0x44] sm:$0x3] }
  0xb1   : > { %v5207_v27 = vpop.f32.mrf.mxu0  ;;  %4401 = vmatmul.msk.bf16.gmra.mxu2 %vm507_vm1, %v1493_v52  ;;  %v1737_v52 = vshrl.u32 %v4419_v28, 16  ;;  %v604_v33 = vadd.f32 %v5148_v17, %v555_v22  ;;  %v423_v28 = vmul.u32 6, %v422_v9  ;;  %v1951_v36 = vunpack.c.l.b16 %v1941_v34  ;;  %vm5274_vm8 = vmand %vm459_vm15, %vm456_vm14 }
  0xb2   : > { %4404 = vmatmul.msk.bf16.gmra.mxu3 %vm507_vm1, %v5120_v62  ;;  %v5234_v62 = vpack.c.b16 %v1592_v48, %v1591_v55  ;;  %v449_v6 = vadd.s32 %v448_v53, %v438_v8  ;;  %v1850_v55 = vld [vmem:[%s4897_s8] sm:$0x8] }
  0xb3   : > { %v1739_v63 = vrot.slane %v1737_v52, 2  ;;  %v1894_v29 = vunpack.c.l.b16 %v1850_v55  ;;  %v658_v30 = vadd.f32 %v5170_v35, %v604_v33  ;;  %v557_v35 = vadd.f32 %v5118_v60, %v5179_v43 }
  0xb4   : > { %4392 = vmatmul.msk.bf16.gmra.mxu0 %vm507_vm1, %v5116_v59  ;;  %v5221_v39 = vpop.f32.mrf.mxu2  ;;  %v1596_v13 = vrot.slane %v5234_v62, 3  ;;  %v450_v49 = vadd.s32 %v449_v6, %v440_v5  ;;  %v5267_v45 = vsub.s32 %v5114_v57, %v423_v28  ;;  %v465_v52 = vadd.s32 6, %v395_v0  ;;  %v4438_v5 = vld [vmem:[%s4897_s8 + $0xc] sm:$0xf]  ;;  %v4612_v6 = vld [vmem:[%s4897_s8 + $0xc] sm:$0x70] }
  0xb5   : > { %v753_v50 = vpop.f32.mrf.mxu1  ;;  %v5230_v10 = vpop.f32.mrf.mxu3  ;;  %v1743_v18 = vor.u32 %v1742_v2, %v1739_v63  ;;  %v1895_v47 = vpack.c.b16 %v1861_v25, %v1894_v29  ;;  %v605_v57 = vadd.f32 %v5194_v1, %v557_v35 }
  0xb6   : > { %v1597_v17 = vsel %vm573_vm2, %v1595_v12, %v1596_v13  ;;  %v451_v58 = vshrl.u32 %v450_v49, 2  ;;  %vm457_vm9 = vcmp.ne.s32.totalorder %v5267_v45, 0  ;;  %vm460_vm10 = vcmp.lt.s32.totalorder %v5267_v45, 0  ;;  %v4445_v12 = vld [vmem:[%s6372_s3 + $0x38] sm:$0x3] }
  0xb7   : > { %v1752_v15 = vsel %vm1531_vm7, %v1743_v18, %v5247_v20  ;;  %v1898_v51 = vshrl.u32 %v1895_v47, 16  ;;  %v659_v8 = vadd.f32 %v5203_v21, %v605_v57  ;;  %v468_v1 = vsel %vm5274_vm8, %v465_v52, %v395_v0  ;;  %vm5300_vm11 = vmand %vm460_vm10, %vm457_vm9 }
  0xb8   : > { %4413 = vmatmul.msk.bf16.vlgmr.msrb.gmra.mxu1 %vm507_vm1, %v1650_v41  ;;  %v452_v43 = vmul.u32 6, %v451_v58  ;;  %v1901_v56 = vshll.u32 %v1895_v47, 16  ;;  %v466_v37 = vadd.s32 6, %v5267_v45  ;;  %v560_v21 = vadd.f32 %v5156_v24, %v5207_v27 }
  0xb9   : > { %v534_v16 = vpop.f32.mrf.mxu0  ;;  %vm5311_vm12 = vcmp.lt.s32.totalorder %v468_v1, 4  ;;  %v5315_v24 = vrot.slane %v1898_v51, 3  ;;  %v5329_v0 = vor.u32 %v4612_v6, %v4438_v5  ;;  %v2083_v49 = vsel %vm514_vm0, %v4445_v12, 0 }
  0xba   : > { %v5293_v16 = vpack.c.b16 %v1952_v40, %v1951_v36  ;;  %v5305_v61 = vsub.s32 %v5154_v23, %v452_v43  ;;  %v5317_v55 = vrot.slane %v1901_v56, 4  ;;  %v4451_v23 = vld [vmem:[%s6372_s3 + $0x3c] sm:$0x3]  ;;  %v469_v33 = vsel %vm5300_vm11, %v466_v37, %v5267_v45  ;;  %v2004_v43 = vld [vmem:[%s4897_s8 + $0x4] sm:$0x8] }
  0xbb   : > { %v606_v28 = vadd.f32 %v5221_v39, %v560_v21  ;;  %vm5349_vm15 = vcmp.lt.s32.totalorder %v469_v33, 4  ;;  %vm870_vm8 = vcmask 64512   ;;  %v1969_v52 = vshll.u32 %v5329_v0, 16 }
  0xbc   : > { %v602_v38 = vpop.f32.mrf.mxu2  ;;  %vm458_vm13 = vcmp.ne.s32.totalorder %v5305_v61, 0  ;;  %vm461_vm14 = vcmp.lt.s32.totalorder %v5305_v61, 0  ;;  %v1961_v58 = vshll.u32 %v5293_v16, 16  ;;  %v467_v47 = vadd.s32 6, %v5305_v61 }
  0xbd   : > { %v755_v3 = vpop.f32.mrf.mxu1  ;;  %v656_v14 = vpop.f32.mrf.mxu3  ;;  %v1958_v38 = vshrl.u32 %v5293_v16, 16  ;;  %vm5365_vm9 = vmand %vm461_vm14, %vm458_vm13  ;;  %v1904_v41 = vor.u32 %v5317_v55, %v5315_v24  ;;  %vm930_vm10 = vcmask 58368   ;;  %v2008_v22 = vunpack.c.l.b16 %v2004_v43  ;;  %v4465_v43 = vld [vmem:[%s6372_s3 + $0x40] sm:$0x3] }
  0xbe   : > { %v4448_v14 = vld [vmem:[%s6372_s3 + $0x3a] sm:$0x3]  ;;  %v470_v62 = vsel %vm5365_vm9, %v467_v47, %v5305_v61 }
  0xbf   : > { %v2117_v39 = vsel %vm514_vm0, %v4448_v14, 0  ;;  %v1960_v57 = vrot.slane %v1958_v38, 2  ;;  %vm5398_vm11 = vcmp.lt.s32.totalorder %v470_v62, 4 }
  0xc0   : > { %2126 = vmatpush.bf16.msrb.mxu1 %v2117_v39  ;;  %v2011_v39 = vrot.slane %v5329_v0, 3 }
  0xc1   : > { %v692_v32 = vpop.f32.mrf.mxu0  ;;  %4420 = vmatmul.msk.bf16.vlgmr.msrb.gmra.mxu2 %vm507_vm1, %v1699_v26  ;;  %v4458_v26 = vld [vmem:[%s6372_s3 + $0x3e] sm:$0x3] }
  0xc2   : > { %v701_v42 = vadd.f32 %v692_v32, %v658_v30  ;;  %4423 = vmatmul.msk.bf16.vlgmr.msrb.gmra.mxu3 %vm507_vm1, %v1752_v15  ;;  %v2219_v30 = vsel %vm514_vm0, %v4458_v26, 0  ;;  %v660_v15 = vadd.f32 %v5230_v10, %v606_v28 }
  0xc3   : > { %2228 = vmatpush.bf16.msrb.mxu3 %v2219_v30 }
  0xc4   : > { %4410 = vmatmul.msk.bf16.vlgmr.msrb.gmra.mxu0 %vm507_vm1, %v1597_v17  ;;  %v762_v48 = vadd.f32 %v753_v50, %v701_v42  ;;  %v796_v44 = vpop.f32.mrf.mxu2 }
  0xc5   : > { %v5279_v60 = vpop.f32.mrf.mxu1  ;;  %v849_v53 = vpop.f32.mrf.mxu3  ;;  %2092 = vmatpush.bf16.msrb.mxu0 %v2083_v49 }
  0xc6   : > { %v805_v50 = vadd.f32 %v796_v44, %v762_v48  ;;  %v1966_v48 = vshrl.u32 %v5329_v0, 16 }
  0xc8   : > { %v858_v2 = vadd.f32 %v849_v53, %v805_v50  ;;  %4414 = vmatmul.msk.bf16.gmra.mxu1 %vm507_vm1, %v5215_v31 }
  0xc9   : > { %v694_v63 = vpop.f32.mrf.mxu0 }
  0xca   : > { %v702_v4 = vadd.f32 %v694_v63, %v659_v8  ;;  %v901_v31 = vrot.slane %v858_v2, 2  ;;  %v902_v9 = vrot.slane %v858_v2, 6  ;;  %907 = vst [vmem:[#allocation1] ss:$4 sm:$0xff] %v858_v2  ;;  %v867_v32 = vsel %vm5311_vm12, %v858_v2, 0.0 }
  0xcb   : > { %v883_v10 = vmul.f32 %v867_v32, %v858_v2  ;;  %v871_v53 = vsel %vm870_vm8, %v867_v32, 0.0 }
  0xcc   : > { %v763_v27 = vadd.f32 %v755_v3, %v702_v4  ;;  %909 = vst [vmem:[#allocation1 + $0x1] ss:$4 sm:$0xff] %v901_v31  ;;  %v798_v18 = vpop.f32.mrf.mxu2  ;;  %v2180_v3 = vsel %vm514_vm0, %v4451_v23, 0  ;;  %v1913_v4 = vsel %vm613_vm4, %v1904_v41, %v5116_v59  ;;  %v1971_v31 = vrot.slane %v1969_v52, 3  ;;  %v4466_v41 = vld [vmem:[%s6372_s3 + $0x42] sm:$0x3] }
  0xcd   : > { %912 = vst [vmem:[#allocation1 + $0x20] ss:$4 sm:$0xff] %v902_v9  ;;  %v760_v29 = vpop.f32.mrf.mxu1  ;;  %2189 = vmatpush.bf16.msrb.mxu2 %v2180_v3  ;;  %v851_v42 = vpop.f32.mrf.mxu3  ;;  %v886_v2 = vsel %vm870_vm8, %v883_v10, 0.0  ;;  %v2009_v23 = vpack.c.b16 %v1952_v40, %v2008_v22  ;;  %v2416_v10 = vsel %vm514_vm0, %v4471_v11, 0 }
  0xce   : > { %v806_v17 = vadd.f32 %v798_v18, %v763_v27  ;;  %v4643_v29 = vunpack.c.l.b16 %v5082_v19 }
  0xd0   : > { %v859_v45 = vadd.f32 %v851_v42, %v806_v17  ;;  %v2010_v17 = vrot.slane %v2009_v23, 3 }
  0xd1   : > { %v697_v35 = vpop.f32.mrf.mxu0  ;;  %4421 = vmatmul.msk.bf16.gmra.mxu2 %vm507_vm1, %v1698_v46 }
  0xd2   : > { %v703_v36 = vadd.f32 %v697_v35, %v660_v15  ;;  %v868_v50 = vsel %vm5349_vm15, %v859_v45, 0.0  ;;  %v903_v51 = vrot.slane %v859_v45, 4  ;;  %v904_v54 = vrot.slane %v859_v45, 6  ;;  %914 = vst [vmem:[#allocation1 + $0x21] ss:$4 sm:$0xff] %v859_v45  ;;  %4424 = vmatmul.msk.bf16.gmra.mxu3 %vm507_vm1, %v5247_v20 }
  0xd3   : > { %v910_v46 = vld.sshfl [vmem:[#allocation1] sm:$0xff pattern:$0x73625140]  ;;  %v884_v8 = vmul.f32 %v868_v50, %v859_v45  ;;  %v872_v56 = vsel %vm870_vm8, %v868_v50, 0.0  ;;  %v1968_v20 = vrot.slane %v1966_v48, 2  ;;  %v1864_v35 = vpack.c.b16 %v4643_v29, %v1861_v25 }
  0xd4   : > { %4411 = vmatmul.msk.bf16.gmra.mxu0 %vm507_vm1, %v1596_v13  ;;  %v764_v1 = vadd.f32 %v5279_v60, %v703_v36  ;;  %v926_v16 = vpack.c.bf16 %v910_v46, %v910_v46  ;;  %917 = vst [vmem:[#allocation1 + $0x1] ss:$4 sm:$0xff] %v904_v54  ;;  %v801_v63 = vpop.f32.mrf.mxu2  ;;  %v873_v13 = vadd.f32 %v872_v56, %v871_v53  ;;  %v1963_v60 = vrot.slane %v1961_v58, 3 }
  0xd5   : > { %916 = vst [vmem:[#allocation1] ss:$4 sm:$0xff] %v903_v51  ;;  %v887_v37 = vsel %vm870_vm8, %v884_v8, 0.0  ;;  %v5392_v21 = vpop.f32.mrf.mxu1  ;;  %v854_v9 = vpop.f32.mrf.mxu3  ;;  %v5407_v3 = vor.u32 %v1971_v31, %v1968_v20  ;;  %v2012_v47 = vsel %vm573_vm2, %v2010_v17, %v2011_v39  ;;  %v2044_v51 = vld [vmem:[%s4917_s13 + $0x4] sm:$0xff]   ;;  %v2349_v54 = vsel %vm514_vm0, %v4466_v41, 0 }
  0xd6   : > { %v807_v5 = vadd.f32 %v801_v63, %v764_v1  ;;  %v888_v6 = vadd.f32 %v887_v37, %v886_v2  ;;  %931 = vst.msk [vmem:[%s5383_s6] sm:$0x3] %vm930_vm10, %v926_v16  ;;  %v1964_v38 = vor.u32 %v1963_v60, %v1960_v57  ;;  %v4474_v57 = vld [vmem:[%s6372_s3 + $0x46] sm:$0x3]  ;;  %v2376_v53 = vsel %vm514_vm0, %v4465_v43, 0 }
  0xd7   : > { %v2140_v8 = vld [vmem:[%s4917_s13 + $0x4] sm:$0xc]  ;;  %v2469_v1 = vsel %vm514_vm0, %v4474_v57, 0  ;;  %v2043_v16 = vld [vmem:[%s4917_s13] sm:$0x8]  ;;  %v2151_v62 = vunpack.c.h.b16 %v2044_v51  ;;  %v2054_v22 = vunpack.c.l.b16 %v2044_v51 }
  0xd8   : > { %v860_v27 = vadd.f32 %v854_v9, %v807_v5  ;;  %4433 = vmatmul.msk.bf16.vlgmr.msra.gmra.mxu1 %vm507_vm1, %v1913_v4  ;;  %v1973_v42 = vsel %vm1531_vm7, %v1964_v38, %v5407_v3  ;;  %v2150_v63 = vunpack.c.l.b16 %v2140_v8  ;;  %v4454_v60 = vld [vmem:[%s4917_s13 + $0xc] sm:$0xf]  ;;  %v4613_v2 = vld [vmem:[%s4917_s13 + $0xc] sm:$0x70]  ;;  %v2053_v5 = vunpack.c.l.b16 %v2043_v16 }
  0xd9   : > { %v699_v24 = vpop.f32.mrf.mxu0  ;;  %v915_v55 = vld.sshfl [vmem:[#allocation1 + $0x20] sm:$0xff pattern:$0x73625140]  ;;  %2385 = vmatpush.bf16.msra.mxu1 %v2376_v53  ;;  %v5472_v4 = vld [vmem:[%s4917_s13 + $0x8] sm:$0xff]   ;;  %v5474_v20 = vor.u32 %v4613_v2, %v4454_v60 }
  0xda   : > { %v869_v12 = vsel %vm5398_vm11, %v860_v27, 0.0  ;;  %v905_v18 = vrot.slane %v860_v27, 2  ;;  %v906_v33 = vrot.slane %v860_v27, 4  ;;  %v927_v49 = vpack.c.bf16 %v915_v55, %v915_v55 }
  0xdb   : > { %v874_v26 = vsel %vm870_vm8, %v869_v12, 0.0  ;;  %v885_v28 = vmul.f32 %v869_v12, %v860_v27  ;;  %v4647_v24 = vunpack.c.l.b16 %v5472_v4  ;;  %v2057_v55 = vpack.c.b16 %v2054_v22, %v2053_v5 }
  0xdc   : > { %v5411_v30 = vadd.f32 %v874_v26, %v873_v13  ;;  %919 = vst [vmem:[#allocation1 + $0x20] ss:$4 sm:$0xff] %v905_v18  ;;  %v803_v14 = vpop.f32.mrf.mxu2  ;;  %v918_v48 = vld.sshfl [vmem:[#allocation1] sm:$0xff pattern:$0x73625140]  ;;  %v4644_v13 = vunpack.c.h.b16 %v5082_v19  ;;  %v2165_v23 = vshrl.u32 %v5474_v20, 16 }
  0xdd   : > { %v889_v40 = vsel %vm870_vm8, %v885_v28, 0.0  ;;  %920 = vst [vmem:[#allocation1 + $0x21] ss:$4 sm:$0xff] %v906_v33  ;;  %v5414_v32 = vpop.f32.mrf.mxu1  ;;  %v856_v58 = vpop.f32.mrf.mxu3  ;;  %v928_v50 = vpack.c.bf16 %v918_v48, %v918_v48  ;;  %v2168_v12 = vshll.u32 %v5474_v20, 16  ;;  %v2203_v18 = vld [vmem:[%s4917_s13 + $0x4] sm:$0x8]  ;;  %v2108_v33 = vpack.c.b16 %v4647_v24, %v2054_v22 }
  0xde   : > { %v5417_v15 = vadd.f32 %v889_v40, %v888_v6  ;;  %932 = vst.msk [vmem:[%s5383_s6 + $0x2] sm:$0x3] %vm930_vm10, %v927_v49  ;;  %v1865_v9 = vpack.c.b16 %v4644_v13, %v4644_v13  ;;  %v2060_v26 = vshrl.u32 %v2057_v55, 16  ;;  %v2063_v28 = vshll.u32 %v2057_v55, 16 }
  0xdf   : > { %933 = vst.msk [vmem:[%s5383_s6 + $0x4] sm:$0x3] %vm930_vm10, %v928_v50  ;;  %v2071_v29 = vshll.u32 %v5472_v4, 16  ;;  %v2207_v40 = vunpack.c.l.b16 %v2203_v18  ;;  %v2167_v58 = vrot.slane %v2165_v23, 2  ;;  %v2210_v53 = vrot.slane %v5474_v20, 3 }
  0xe0   : > { %v2062_v0 = vrot.slane %v2060_v26, 3  ;;  %v2065_v11 = vrot.slane %v2063_v28, 4  ;;  %v4648_v13 = vunpack.c.h.b16 %v5472_v4  ;;  %v4691_v26 = vld [vmem:[%s4917_s13] sm:$0x8]  ;;  %v4487_v28 = vld [vmem:[%s6372_s3 + $0x4c] sm:$0x3] }
  0xe1   : > { %v5425_v45 = vpop.f32.mrf.mxu0  ;;  %4440 = vmatmul.msk.bf16.vlgmr.msra.gmra.mxu2 %vm507_vm1, %v1973_v42 }
  0xe2   : > { %4443 = vmatmul.msk.bf16.vlgmr.msra.gmra.mxu3 %vm507_vm1, %v2012_v47  ;;  %2425 = vmatpush.bf16.msra.mxu2 %v2416_v10  ;;  %v1022_v10 = vadd.f32 %v5392_v21, %v5425_v45  ;;  %v2066_v50 = vor.u32 %v2065_v11, %v2062_v0  ;;  %v2109_v5 = vpack.c.b16 %v4648_v13, %v4648_v13  ;;  %v4490_v0 = vld [vmem:[%s6372_s3 + $0x4e] sm:$0x3]  ;;  %v4484_v11 = vld [vmem:[%s6372_s3 + $0x4a] sm:$0x3] }
  0xe3   : > { %2478 = vmatpush.bf16.msra.mxu3 %v2469_v1 }
  0xe4   : > { %4431 = vmatmul.msk.bf16.vlgmr.msra.gmra.mxu0 %vm507_vm1, %v1864_v35  ;;  %v921_v25 = vld.sshfl [vmem:[#allocation1 + $0x20] sm:$0xff pattern:$0x73625140]  ;;  %v5435_v52 = vpop.f32.mrf.mxu2  ;;  %v2170_v35 = vrot.slane %v2168_v12, 3  ;;  %v2397_v12 = vld [vmem:[%s4917_s13 + $0xc] sm:$0x7] }
  0xe5   : > { %v929_v36 = vpack.c.bf16 %v921_v25, %v921_v25  ;;  %v5439_v44 = vpop.f32.mrf.mxu1  ;;  %v5452_v46 = vpop.f32.mrf.mxu3  ;;  %2358 = vmatpush.bf16.msra.mxu0 %v2349_v54  ;;  %v2073_v25 = vrot.slane %v2071_v29, 4  ;;  %v1084_v54 = vadd.f32 %v5435_v52, %v1022_v10  ;;  %v5539_v29 = vld [vmem:[%s4917_s13] sm:$0xff]  }
  0xe6   : > { %v5495_v57 = vor.u32 %v2170_v35, %v2167_v58 }
  0xe7   : > { %934 = vst.msk [vmem:[%s5383_s6 + $0x6] sm:$0x3] %vm930_vm10, %v929_v36  ;;  %v2208_v36 = vpack.c.b16 %v2151_v62, %v2207_v40  ;;  %v2403_v40 = vunpack.c.l.b16 %v2397_v12 }
  0xe8   : > { %4434 = vmatmul.msk.bf16.gmra.mxu1 %vm507_vm1, %v5116_v59  ;;  %v2154_v59 = vpack.c.b16 %v2151_v62, %v2150_v63  ;;  %v1118_v63 = vadd.f32 %v5452_v46, %v1084_v54 }
  0xe9   : > { %v5459_v56 = vpop.f32.mrf.mxu0  ;;  %v2209_v1 = vrot.slane %v2208_v36, 3  ;;  %v2669_v36 = vsel %vm514_vm0, %v4490_v0, 0 }
  0xea   : > { %v2157_v19 = vshrl.u32 %v2154_v59, 16  ;;  %v2160_v38 = vshll.u32 %v2154_v59, 16  ;;  %v1024_v2 = vadd.f32 %v5414_v32, %v5459_v56 }
  0xeb   : > { %v2211_v52 = vsel %vm573_vm2, %v2209_v1, %v2210_v53 }
  0xec   : > { %v5469_v37 = vpop.f32.mrf.mxu2  ;;  %v2159_v17 = vrot.slane %v2157_v19, 2  ;;  %v2162_v42 = vrot.slane %v2160_v38, 3  ;;  %v5522_v38 = vld [vmem:[%s4917_s13 + $0x8] sm:$0xff]  }
  0xed   : > { %v1028_v6 = vpop.f32.mrf.mxu1  ;;  %v1111_v31 = vpop.f32.mrf.mxu3 }
  0xee   : > { %v2163_v41 = vor.u32 %v2162_v42, %v2159_v17  ;;  %v2616_v17 = vsel %vm514_vm0, %v4487_v28, 0 }
  0xf0   : > { %v2172_v16 = vsel %vm1531_vm7, %v2163_v41, %v5495_v57  ;;  %v2573_v41 = vsel %vm514_vm0, %v4484_v11, 0 }
  0xf1   : > { %v981_v27 = vpop.f32.mrf.mxu0  ;;  %4441 = vmatmul.msk.bf16.gmra.mxu2 %vm507_vm1, %v5407_v3  ;;  %v2068_v3 = vshrl.u32 %v5472_v4, 16  ;;  %v1085_v4 = vadd.f32 %v5469_v37, %v1024_v2 }
  0xf2   : > { %4444 = vmatmul.msk.bf16.gmra.mxu3 %vm507_vm1, %v2011_v39  ;;  %v1027_v32 = vadd.f32 %v5439_v44, %v981_v27  ;;  %v4690_v44 = vld [vmem:[%s4917_s13] sm:$0xf0]  ;;  %v2314_v27 = vld [vmem:[%s4917_s13 + $0xc] sm:$0x1] }
  0xf3   : > { %v2070_v39 = vrot.slane %v2068_v3, 3  ;;  %v2324_v35 = vunpack.c.l.b16 %v2314_v27  ;;  %v5569_v1 = vor.u32 %v4691_v26, %v4690_v44 }
  0xf4   : > { %4432 = vmatmul.msk.bf16.gmra.mxu0 %vm507_vm1, %v1865_v9  ;;  %v5483_v49 = vpop.f32.mrf.mxu2  ;;  %v1119_v9 = vadd.f32 %v1111_v31, %v1085_v4 }
  0xf5   : > { %v1209_v14 = vpop.f32.mrf.mxu1  ;;  %v5490_v47 = vpop.f32.mrf.mxu3  ;;  %v5497_v51 = vor.u32 %v2073_v25, %v2070_v39  ;;  %v1086_v18 = vadd.f32 %v5483_v49, %v1027_v32  ;;  %v4477_v49 = vld [vmem:[%s6372_s3 + $0x48] sm:$0x3]  ;;  %v876_v39 = vrot.slane %v5411_v30, 4  ;;  %v2454_v32 = vshrl.u32 %v5522_v38, 16 }
  0xf6   : > { %v2406_v12 = vrot.slane %v5569_v1, 3 }
  0xf7   : > { %v2075_v62 = vsel %vm613_vm4, %v2066_v50, %v5497_v51  ;;  %v1120_v25 = vadd.f32 %v5490_v47, %v1086_v18  ;;  %v2456_v28 = vrot.slane %v2454_v32, 3 }
  0xf8   : > { %4449 = vmatmul.msk.bf16.vlgmr.msrb.gmra.mxu1 %vm507_vm1, %v2108_v33 }
  0xf9   : > { %v983_v48 = vpop.f32.mrf.mxu0  ;;  %2582 = vmatpush.bf16.msrb.mxu1 %v2573_v41 }
  0xfa   : > { %v2512_v48 = vsel %vm514_vm0, %v4477_v49, 0 }
  0xfc   : > { %v1082_v43 = vpop.f32.mrf.mxu2 }
  0xfd   : > { %v1211_v8 = vpop.f32.mrf.mxu1  ;;  %v1116_v21 = vpop.f32.mrf.mxu3  ;;  %v891_v43 = vrot.slane %v5417_v15, 4 }
 0x101   : > { %v1170_v45 = vpop.f32.mrf.mxu0  ;;  %4456 = vmatmul.msk.bf16.vlgmr.msrb.gmra.mxu2 %vm507_vm1, %v2172_v16 }
 0x102   : > { %v1179_v60 = vadd.f32 %v1170_v45, %v1118_v63  ;;  %4459 = vmatmul.msk.bf16.vlgmr.msrb.gmra.mxu3 %vm507_vm1, %v2211_v52  ;;  %2625 = vmatpush.bf16.msrb.mxu2 %v2616_v17 }
 0x103   : > { %2678 = vmatpush.bf16.msrb.mxu3 %v2669_v36 }
 0x104   : > { %4446 = vmatmul.msk.bf16.vlgmr.msrb.gmra.mxu0 %vm507_vm1, %v2075_v62  ;;  %v1218_v46 = vadd.f32 %v1209_v14, %v1179_v60  ;;  %v1266_v22 = vpop.f32.mrf.mxu2  ;;  %v5542_v14 = vunpack.c.l.b16 %v5522_v38 }
 0x105   : > { %v5516_v6 = vpop.f32.mrf.mxu1  ;;  %v1300_v24 = vpop.f32.mrf.mxu3  ;;  %2521 = vmatpush.bf16.msrb.mxu0 %v2512_v48 }
 0x106   : > { %v1275_v59 = vadd.f32 %v1266_v22, %v1218_v46  ;;  %v5574_v63 = vpack.c.b16 %v2403_v40, %v5542_v14  ;;  %v5579_v13 = vpack.c.b16 %v2324_v35, %v5542_v14 }
 0x108   : > { %v1309_v55 = vadd.f32 %v1300_v24, %v1275_v59  ;;  %4450 = vmatmul.msk.bf16.gmra.mxu1 %vm507_vm1, %v2109_v5  ;;  %v2446_v59 = vshrl.u32 %v5569_v1, 16  ;;  %v2335_v27 = vshll.u32 %v5579_v13, 16 }
 0x109   : > { %v1172_v56 = vpop.f32.mrf.mxu0 }
 0x10a   : > { %v1180_v19 = vadd.f32 %v1172_v56, %v1119_v9  ;;  %v1345_v37 = vrot.slane %v1309_v55, 2  ;;  %v1346_v23 = vrot.slane %v1309_v55, 6  ;;  %1351 = vst [vmem:[#allocation1] ss:$4 sm:$0xff] %v1309_v55  ;;  %v1312_v42 = vsel %vm5311_vm12, %v1309_v55, 0.0 }
 0x10b   : > { %v1327_v47 = vmul.f32 %v1312_v42, %v1309_v55  ;;  %v2457_v56 = vshll.u32 %v5522_v38, 16  ;;  %v2407_v38 = vrot.slane %v5574_v63, 3  ;;  %v2448_v18 = vrot.slane %v2446_v59, 3 }
 0x10c   : > { %v1219_v31 = vadd.f32 %v1211_v8, %v1180_v19  ;;  %1353 = vst [vmem:[#allocation1 + $0x1] ss:$4 sm:$0xff] %v1345_v37  ;;  %v1268_v33 = vpop.f32.mrf.mxu2  ;;  %v2330_v8 = vshll.u32 %v5539_v29, 16  ;;  %v2328_v37 = vshrl.u32 %v5539_v29, 16 }
 0x10d   : > { %1356 = vst [vmem:[#allocation1 + $0x20] ss:$4 sm:$0xff] %v1346_v23  ;;  %v1216_v3 = vpop.f32.mrf.mxu1  ;;  %v1302_v10 = vpop.f32.mrf.mxu3 }
 0x10e   : > { %v1276_v58 = vadd.f32 %v1268_v33, %v1219_v31  ;;  %v2332_v23 = vrot.slane %v2330_v8, 1  ;;  %v2459_v3 = vrot.slane %v2457_v56, 4 }
 0x110   : > { %v1310_v54 = vadd.f32 %v1302_v10, %v1276_v58 }
 0x111   : > { %v1175_v50 = vpop.f32.mrf.mxu0  ;;  %4457 = vmatmul.msk.bf16.gmra.mxu2 %vm507_vm1, %v5495_v57  ;;  %v1315_v57 = vsel %vm870_vm8, %v1312_v42, 0.0 }
 0x112   : > { %v1181_v16 = vadd.f32 %v1175_v50, %v1120_v25  ;;  %v1313_v21 = vsel %vm5349_vm15, %v1310_v54, 0.0  ;;  %v1347_v45 = vrot.slane %v1310_v54, 4  ;;  %v1348_v62 = vrot.slane %v1310_v54, 6  ;;  %1358 = vst [vmem:[#allocation1 + $0x21] ss:$4 sm:$0xff] %v1310_v54  ;;  %4460 = vmatmul.msk.bf16.gmra.mxu3 %vm507_vm1, %v2210_v53 }
 0x113   : > { %v1354_v60 = vld.sshfl [vmem:[#allocation1] sm:$0xff pattern:$0x73625140]  ;;  %v1328_v52 = vmul.f32 %v1313_v21, %v1310_v54  ;;  %v1316_v46 = vsel %vm870_vm8, %v1313_v21, 0.0  ;;  %v877_v53 = vadd.f32 %v876_v39, %v5411_v30  ;;  %v892_v30 = vadd.f32 %v891_v43, %v5417_v15 }
 0x114   : > { %4447 = vmatmul.msk.bf16.gmra.mxu0 %vm507_vm1, %v5497_v51  ;;  %v1220_v2 = vadd.f32 %v5516_v6, %v1181_v16  ;;  %v1370_v22 = vpack.c.bf16 %v1354_v60, %v1354_v60  ;;  %1360 = vst [vmem:[#allocation1] ss:$4 sm:$0xff] %v1347_v45  ;;  %v1271_v5 = vpop.f32.mrf.mxu2  ;;  %v1317_v4 = vadd.f32 %v1316_v46, %v1315_v57  ;;  %v2449_v51 = vshll.u32 %v5569_v1, 16  ;;  %v5645_v57 = vld [vmem:[%s5627_s17 + $0x8] sm:$0xff]  }
 0x115   : > { %1361 = vst [vmem:[#allocation1 + $0x1] ss:$4 sm:$0xff] %v1348_v62  ;;  %v1330_v6 = vsel %vm870_vm8, %v1327_v47, 0.0  ;;  %v1331_v9 = vsel %vm870_vm8, %v1328_v52, 0.0  ;;  %v5594_v24 = vpop.f32.mrf.mxu1  ;;  %v1305_v19 = vpop.f32.mrf.mxu3  ;;  %v878_v58 = vrot.slane %v877_v53, 2  ;;  %v5615_v39 = vor.u32 %v2332_v23, %v2328_v37  ;;  %v5661_v23 = vld [vmem:[%s5627_s17] sm:$0xff]  }
 0x116   : > { %v1277_v20 = vadd.f32 %v1271_v5, %v1220_v2  ;;  %v1332_v55 = vadd.f32 %v1331_v9, %v1330_v6  ;;  %4381 = vst.msk [vmem:[%s5383_s6 + $0x8] sm:$0x3] %vm930_vm10, %v1370_v22  ;;  %v2451_v26 = vrot.slane %v2449_v51, 4  ;;  %v5617_v25 = vrot.slane %v2335_v27, 1  ;;  %v2538_v46 = vld [vmem:[%s5627_s17 + $0xc] sm:$0x1] }
 0x117   : > { %v5622_v50 = vor.u32 %v2459_v3, %v2456_v28  ;;  %v893_v54 = vrot.slane %v892_v30, 2  ;;  %v2408_v47 = vsel %vm573_vm2, %v2406_v12, %v2407_v38  ;;  %v879_v16 = vadd.f32 %v878_v58, %v877_v53  ;;  %v4503_v6 = vld [vmem:[%s6372_s3 + $0x54] sm:$0x3]  ;;  %v4498_v12 = vld [vmem:[%s6372_s3 + $0x52] sm:$0x3] }
 0x118   : > { %v1311_v44 = vadd.f32 %v1305_v19, %v1277_v20  ;;  %4469 = vmatmul.msk.bf16.vlgmr.msra.gmra.mxu1 %vm507_vm1, %v5539_v29  ;;  %v2452_v43 = vor.u32 %v2451_v26, %v2448_v18  ;;  %v2338_v52 = vsel %vm491_vm3, %v5615_v39, %v5617_v25  ;;  %v2369_v51 = vpack.c.b16 %v5542_v14, %v5542_v14 }
 0x119   : > { %v1177_v31 = vpop.f32.mrf.mxu0  ;;  %v1359_v33 = vld.sshfl [vmem:[#allocation1 + $0x20] sm:$0xff pattern:$0x73625140]  ;;  %v894_v22 = vadd.f32 %v893_v54, %v892_v30  ;;  %v880_v59 = vrot.slane %v879_v16, 1  ;;  %v2548_v53 = vunpack.c.l.b16 %v2538_v46  ;;  %v2887_v14 = vsel %vm514_vm0, %v4503_v6, 0 }
 0x11a   : > { %v1371_v40 = vpack.c.bf16 %v1359_v33, %v1359_v33  ;;  %v1314_v17 = vsel %vm5398_vm11, %v1311_v44, 0.0  ;;  %v1349_v49 = vrot.slane %v1311_v44, 2  ;;  %v1350_v42 = vrot.slane %v1311_v44, 4 }
 0x11b   : > { %v1318_v35 = vsel %vm870_vm8, %v1314_v17, 0.0  ;;  %v1329_v48 = vmul.f32 %v1314_v17, %v1311_v44  ;;  %v2461_v2 = vsel %vm613_vm4, %v2452_v43, %v5622_v50  ;;  %v895_v31 = vrot.slane %v894_v22, 1 }
 0x11c   : > { %v1362_v0 = vld.sshfl [vmem:[#allocation1] sm:$0xff pattern:$0x73625140]  ;;  %v1319_v11 = vadd.f32 %v1318_v35, %v1317_v4  ;;  %1363 = vst [vmem:[#allocation1 + $0x20] ss:$4 sm:$0xff] %v1349_v49  ;;  %v1273_v15 = vpop.f32.mrf.mxu2  ;;  %v881_v18 = vadd.f32 %v880_v59, %v879_v16  ;;  %v2788_v33 = vsel %vm514_vm0, %v4498_v12, 0 }
 0x11d   : > { %v1372_v10 = vpack.c.bf16 %v1362_v0, %v1362_v0  ;;  %v1333_v36 = vsel %vm870_vm8, %v1329_v48, 0.0  ;;  %1364 = vst [vmem:[#allocation1 + $0x21] ss:$4 sm:$0xff] %v1350_v42  ;;  %v5620_v41 = vpop.f32.mrf.mxu1  ;;  %v1307_v21 = vpop.f32.mrf.mxu3  ;;  %v2554_v17 = vshll.u32 %v5661_v23, 16  ;;  %v4506_v49 = vld [vmem:[%s6372_s3 + $0x56] sm:$0x3]  ;;  %v896_v58 = vadd.f32 %v895_v31, %v894_v22 }
 0x11e   : > { %v1320_v8 = vrot.slane %v1319_v11, 4  ;;  %v1334_v1 = vadd.f32 %v1333_v36, %v1332_v55  ;;  %4382 = vst.msk [vmem:[%s5383_s6 + $0xa] sm:$0x3] %vm930_vm10, %v1371_v40  ;;  %v2547_v55 = vunpack.c.l.b16 %v5645_v57  ;;  %v4497_v42 = vld [vmem:[%s6372_s3 + $0x50] sm:$0x3]  ;;  %v2339_v0 = vshrl.u32 %v5579_v13, 16 }
 0x11f   : > { %4383 = vst.msk [vmem:[%s5383_s6 + $0xc] sm:$0x3] %vm930_vm10, %v1372_v10  ;;  %v2833_v15 = vsel %vm514_vm0, %v4497_v42, 0  ;;  %v2552_v43 = vshrl.u32 %v5661_v23, 16  ;;  %v2556_v54 = vrot.slane %v2554_v17, 1  ;;  %v2654_v6 = vshrl.u32 %v5645_v57, 16 }
 0x120   : > { %v1321_v45 = vadd.f32 %v1320_v8, %v1319_v11  ;;  %v1335_v62 = vrot.slane %v1334_v1, 4  ;;  %v5675_v40 = vpack.c.b16 %v2548_v53, %v2547_v55  ;;  %v2921_v11 = vsel %vm514_vm0, %v4506_v49, 0  ;;  %2842 = vmatpush.bf16.msra.mxu1 %v2833_v15  ;;  %v4694_v16 = vld [vmem:[%s5627_s17] sm:$0x8] }
 0x121   : > { %v5636_v60 = vpop.f32.mrf.mxu0  ;;  %4472 = vmatmul.msk.bf16.vlgmr.msra.gmra.mxu2 %vm507_vm1, %v2408_v47  ;;  %v4693_v47 = vld [vmem:[%s5627_s17] sm:$0xf0]  ;;  %v2341_v13 = vor.u32 %v2339_v0, %v5617_v25  ;;  %v2657_v63 = vshll.u32 %v5645_v57, 16  ;;  %v2853_v0 = vld [vmem:[%s4917_s13] sm:$0x8] }
 0x122   : > { %v1322_v5 = vrot.slane %v1321_v45, 2  ;;  %v1336_v4 = vadd.f32 %v1335_v62, %v1334_v1  ;;  %4475 = vmatmul.msk.bf16.vlgmr.msra.gmra.mxu3 %vm507_vm1, %v2461_v2  ;;  %2896 = vmatpush.bf16.msra.mxu2 %v2887_v14  ;;  %v2559_v8 = vshll.u32 %v5675_v40, 16  ;;  %v4695_v46 = vor.u32 %v4694_v16, %v4693_v47 }
 0x123   : > { %2930 = vmatpush.bf16.msra.mxu3 %v2921_v11  ;;  %v2659_v14 = vrot.slane %v2657_v63, 4  ;;  %v2563_v17 = vshrl.u32 %v5675_v40, 16  ;;  %v4509_v63 = vld [vmem:[%s6372_s3 + $0x58] sm:$0x3] }
 0x124   : > { %4467 = vmatmul.msk.bf16.vlgmr.msra.gmra.mxu0 %vm507_vm1, %v2338_v52  ;;  %v1323_v9 = vadd.f32 %v1322_v5, %v1321_v45  ;;  %v1337_v32 = vrot.slane %v1336_v4, 2  ;;  %v1365_v56 = vld.sshfl [vmem:[#allocation1 + $0x20] sm:$0xff pattern:$0x73625140]  ;;  %v5654_v20 = vpop.f32.mrf.mxu2  ;;  %v2597_v45 = vld [vmem:[%s5627_s17 + $0xc] sm:$0x7]  ;;  %v5697_v52 = vor.u32 %v2556_v54, %v2552_v43  ;;  %v5743_v54 = vunpack.c.h.b16 %v5539_v29 }
 0x125   : > { %v1373_v19 = vpack.c.bf16 %v1365_v56, %v1365_v56  ;;  %v5658_v37 = vpop.f32.mrf.mxu1  ;;  %v5667_v30 = vpop.f32.mrf.mxu3  ;;  %2797 = vmatpush.bf16.msra.mxu0 %v2788_v33  ;;  %v2561_v2 = vrot.slane %v2559_v8, 1  ;;  %v2603_v22 = vunpack.c.l.b16 %v2597_v45  ;;  %v2646_v59 = vshrl.u32 %v4695_v46, 16 }
 0x126   : > { %v1324_v44 = vrot.slane %v1323_v9, 1  ;;  %v1338_v27 = vadd.f32 %v1337_v32, %v1336_v4  ;;  %v1467_v32 = vadd.f32 %v5594_v24, %v5636_v60  ;;  %v2606_v12 = vrot.slane %v4695_v46, 3 }
 0x127   : > { %4384 = vst.msk [vmem:[%s5383_s6 + $0xe] sm:$0x3] %vm930_vm10, %v1373_v19  ;;  %v2562_v25 = vsel %vm491_vm3, %v5697_v52, %v2561_v2  ;;  %v2656_v19 = vrot.slane %v2654_v6, 3  ;;  %v2565_v40 = vor.u32 %v2563_v17, %v2561_v2  ;;  %v2859_v8 = vunpack.c.l.b16 %v2853_v0  ;;  %v4515_v6 = vld [vmem:[%s6372_s3 + $0x5c] sm:$0x3] }
 0x128   : > { %v1325_v26 = vadd.f32 %v1324_v44, %v1323_v9  ;;  %v1339_v28 = vrot.slane %v1338_v27, 1  ;;  %4470 = vmatmul.msk.bf16.gmra.mxu1 %vm507_vm1, %v2369_v51  ;;  %v2649_v51 = vshll.u32 %v4695_v46, 16  ;;  %v5749_v46 = vld [vmem:[%s5627_s17 + $0x8] sm:$0xff]  }
 0x129   : > { %v5672_v3 = vpop.f32.mrf.mxu0  ;;  %v5720_v24 = vor.u32 %v2659_v14, %v2656_v19 }
 0x12a   : > { %v5684_v35 = vadd.f32 %v1325_v26, %v881_v18  ;;  %v1340_v48 = vadd.f32 %v1339_v28, %v1338_v27  ;;  %v2651_v53 = vrot.slane %v2649_v51, 4  ;;  %v4614_v26 = vld [vmem:[%s5627_s17] sm:$0xff]  ;;  %v1469_v42 = vadd.f32 %v5620_v41, %v5672_v3 }
 0x12c   : > { %v5689_v10 = vadd.f32 %v1340_v48, %v896_v58  ;;  %v1515_v36 = vpop.f32.mrf.mxu2  ;;  %v5734_v58 = vld [vmem:[%s4917_s13 + $0x8] sm:$0xff]  }
 0x12d   : > { %v1473_v1 = vpop.f32.mrf.mxu1  ;;  %v1569_v21 = vpop.f32.mrf.mxu3  ;;  %v2762_v48 = vld [vmem:[%s4917_s13 + $0xc] sm:$0x1]  ;;  %v1523_v11 = vadd.f32 %v1515_v36, %v1469_v42  ;;  %v2774_v41 = vunpack.c.l.b16 %v5734_v58  ;;  %v2860_v2 = vunpack.c.h.b16 %v5734_v58 }
 0x12e   : > { %v2775_v3 = vunpack.c.l.b16 %v2762_v48 }
 0x12f   : > { %v1577_v47 = vadd.f32 %v1569_v21, %v1523_v11 }
 0x130   : > { %v5754_v29 = vpack.c.b16 %v2775_v3, %v2774_v41 }
 0x131   : > { %v1438_v62 = vpop.f32.mrf.mxu0  ;;  %4473 = vmatmul.msk.bf16.gmra.mxu2 %vm507_vm1, %v2407_v38  ;;  %v5711_v38 = vpack.c.b16 %v2603_v22, %v2547_v55  ;;  %v1522_v55 = vadd.f32 %v5654_v20, %v1467_v32 }
 0x132   : > { %4476 = vmatmul.msk.bf16.gmra.mxu3 %vm507_vm1, %v5622_v50  ;;  %v2648_v50 = vrot.slane %v2646_v59, 3 }
 0x133   : > { %v2607_v31 = vrot.slane %v5711_v38, 3  ;;  %v1576_v18 = vadd.f32 %v5667_v30, %v1522_v55 }
 0x134   : > { %4468 = vmatmul.msk.bf16.gmra.mxu0 %vm507_vm1, %v2341_v13  ;;  %v5703_v5 = vpop.f32.mrf.mxu2  ;;  %v2652_v27 = vor.u32 %v2651_v53, %v2648_v50  ;;  %v1472_v13 = vadd.f32 %v5658_v37, %v1438_v62  ;;  %v2502_v37 = vunpack.c.l.b16 %v5749_v46  ;;  %v3078_v53 = vsel %vm514_vm0, %v4515_v6, 0 }
 0x135   : > { %v1669_v4 = vpop.f32.mrf.mxu1  ;;  %v5713_v9 = vpop.f32.mrf.mxu3  ;;  %v2608_v60 = vsel %vm573_vm2, %v2606_v12, %v2607_v31  ;;  %v4518_v12 = vld [vmem:[%s6372_s3 + $0x5e] sm:$0x3] }
 0x136   : > { %v2661_v20 = vsel %vm613_vm4, %v2652_v27, %v5720_v24  ;;  %v1524_v62 = vadd.f32 %v5703_v5, %v1472_v13  ;;  %v2982_v5 = vsel %vm514_vm0, %v4509_v63, 0  ;;  %v2504_v27 = vpack.c.b16 %v2502_v37, %v2502_v37 }
 0x138   : > { %4485 = vmatmul.msk.bf16.vlgmr.msrb.gmra.mxu1 %vm507_vm1, %v2562_v25  ;;  %v2861_v25 = vpack.c.b16 %v5743_v54, %v2859_v8  ;;  %v1578_v55 = vadd.f32 %v5713_v9, %v1524_v62 }
 0x139   : > { %v1440_v56 = vpop.f32.mrf.mxu0 }
 0x13a   : > { %v2819_v56 = vshll.u32 %v5754_v29, 16  ;;  %v2864_v50 = vshrl.u32 %v2861_v25, 16  ;;  %v2867_v17 = vshll.u32 %v2861_v25, 16 }
 0x13c   : > { %v1520_v57 = vpop.f32.mrf.mxu2  ;;  %v5785_v9 = vrot.slane %v2819_v56, 1  ;;  %v2866_v0 = vrot.slane %v2864_v50, 3 }
 0x13d   : > { %v1671_v44 = vpop.f32.mrf.mxu1  ;;  %v1574_v33 = vpop.f32.mrf.mxu3  ;;  %v4512_v57 = vld [vmem:[%s6372_s3 + $0x5a] sm:$0x3] }
 0x13e   : > { %v3021_v33 = vsel %vm514_vm0, %v4512_v57, 0  ;;  %v2779_v57 = vrot.slane %v5754_v29, 1 }
 0x13f   : > { %3030 = vmatpush.bf16.msrb.mxu1 %v3021_v33 }
 0x141   : > { %v1616_v28 = vpop.f32.mrf.mxu0  ;;  %4488 = vmatmul.msk.bf16.vlgmr.msrb.gmra.mxu2 %vm507_vm1, %v2608_v60  ;;  %v2765_v60 = vld [vmem:[%s4917_s13] sm:$0xe] }
 0x142   : > { %v1625_v49 = vadd.f32 %v1616_v28, %v1576_v18  ;;  %4491 = vmatmul.msk.bf16.vlgmr.msrb.gmra.mxu3 %vm507_vm1, %v2661_v20  ;;  %3087 = vmatpush.bf16.msrb.mxu2 %v3078_v53  ;;  %v3112_v18 = vsel %vm514_vm0, %v4518_v12, 0  ;;  %v2875_v20 = vshll.u32 %v5734_v58, 16 }
 0x143   : > { %3121 = vmatpush.bf16.msrb.mxu3 %v3112_v18 }
 0x144   : > { %4482 = vmatmul.msk.bf16.vlgmr.msrb.gmra.mxu0 %vm507_vm1, %v4614_v26  ;;  %v1678_v30 = vadd.f32 %v1669_v4, %v1625_v49  ;;  %v1718_v15 = vpop.f32.mrf.mxu2  ;;  %v2872_v49 = vshrl.u32 %v5734_v58, 16 }
 0x145   : > { %v5740_v43 = vpop.f32.mrf.mxu1  ;;  %v1771_v16 = vpop.f32.mrf.mxu3  ;;  %2991 = vmatpush.bf16.msrb.mxu0 %v2982_v5 }
 0x146   : > { %v1727_v1 = vadd.f32 %v1718_v15, %v1678_v30 }
 0x148   : > { %v1780_v45 = vadd.f32 %v1771_v16, %v1727_v1  ;;  %4486 = vmatmul.msk.bf16.gmra.mxu1 %vm507_vm1, %v2565_v40  ;;  %v2772_v40 = vunpack.c.l.b16 %v2765_v60 }
 0x149   : > { %v1618_v36 = vpop.f32.mrf.mxu0 }
 0x14a   : > { %v1626_v22 = vadd.f32 %v1618_v36, %v1577_v47  ;;  %v1816_v4 = vrot.slane %v1780_v45, 2  ;;  %v1817_v21 = vrot.slane %v1780_v45, 6  ;;  %1822 = vst [vmem:[#allocation1] ss:$4 sm:$0xff] %v1780_v45  ;;  %v1783_v19 = vsel %vm5311_vm12, %v1780_v45, 0.0 }
 0x14b   : > { %v1798_v42 = vmul.f32 %v1783_v19, %v1780_v45  ;;  %v1786_v38 = vsel %vm870_vm8, %v1783_v19, 0.0  ;;  %v2869_v36 = vrot.slane %v2867_v17, 4  ;;  %v2874_v45 = vrot.slane %v2872_v49, 3 }
 0x14c   : > { %v1679_v59 = vadd.f32 %v1671_v44, %v1626_v22  ;;  %1824 = vst [vmem:[#allocation1 + $0x1] ss:$4 sm:$0xff] %v1816_v4  ;;  %v1720_v51 = vpop.f32.mrf.mxu2  ;;  %v2822_v4 = vsel %vm491_vm3, %v5615_v39, %v5785_v9  ;;  %v2776_v62 = vpack.c.b16 %v5743_v54, %v2772_v40 }
 0x14d   : > { %1827 = vst [vmem:[#allocation1 + $0x20] ss:$4 sm:$0xff] %v1817_v21  ;;  %v1676_v32 = vpop.f32.mrf.mxu1  ;;  %v1773_v44 = vpop.f32.mrf.mxu3  ;;  %v1801_v22 = vsel %vm870_vm8, %v1798_v42, 0.0  ;;  %v2877_v21 = vrot.slane %v2875_v20, 4 }
 0x14e   : > { %v1728_v14 = vadd.f32 %v1720_v51, %v1679_v59  ;;  %v2870_v32 = vor.u32 %v2869_v36, %v2866_v0  ;;  %v2778_v5 = vrot.slane %v2776_v62, 1  ;;  %v3005_v36 = vld [vmem:[%s5627_s17] sm:$0xe] }
 0x14f   : > { %v5806_v56 = vor.u32 %v2877_v21, %v2874_v45  ;;  %v4526_v45 = vld [vmem:[%s6372_s3 + $0x62] sm:$0x3]  ;;  %v4525_v62 = vld [vmem:[%s6372_s3 + $0x60] sm:$0x3] }
 0x150   : > { %v1781_v28 = vadd.f32 %v1773_v44, %v1728_v14  ;;  %v2780_v20 = vsel %vm954_vm5, %v2778_v5, %v2779_v57 }
 0x151   : > { %v1621_v26 = vpop.f32.mrf.mxu0  ;;  %4489 = vmatmul.msk.bf16.gmra.mxu2 %vm507_vm1, %v2607_v31  ;;  %v2879_v17 = vsel %vm613_vm4, %v2870_v32, %v5806_v56 }
 0x152   : > { %v1627_v48 = vadd.f32 %v1621_v26, %v1578_v55  ;;  %v1784_v30 = vsel %vm5349_vm15, %v1781_v28, 0.0  ;;  %v1818_v11 = vrot.slane %v1781_v28, 4  ;;  %v1819_v15 = vrot.slane %v1781_v28, 6  ;;  %1829 = vst [vmem:[#allocation1 + $0x21] ss:$4 sm:$0xff] %v1781_v28  ;;  %4492 = vmatmul.msk.bf16.gmra.mxu3 %vm507_vm1, %v5720_v24 }
 0x153   : > { %v1825_v3 = vld.sshfl [vmem:[#allocation1] sm:$0xff pattern:$0x73625140]  ;;  %v1799_v8 = vmul.f32 %v1784_v30, %v1781_v28  ;;  %v1787_v31 = vsel %vm870_vm8, %v1784_v30, 0.0  ;;  %v2912_v30 = vpack.c.b16 %v2774_v41, %v5743_v54 }
 0x154   : > { %4483 = vmatmul.msk.bf16.gmra.mxu0 %vm507_vm1, %v2504_v27  ;;  %v1680_v1 = vadd.f32 %v5740_v43, %v1627_v48  ;;  %v1841_v47 = vpack.c.bf16 %v1825_v3, %v1825_v3  ;;  %1831 = vst [vmem:[#allocation1] ss:$4 sm:$0xff] %v1818_v11  ;;  %v1723_v16 = vpop.f32.mrf.mxu2  ;;  %v1788_v13 = vadd.f32 %v1787_v31, %v1786_v38  ;;  %v2823_v11 = vshrl.u32 %v5754_v29, 16  ;;  %v5833_v3 = vld [vmem:[%s5627_s17 + $0x8] sm:$0xff]   ;;  %v4535_v41 = vld [vmem:[%s6372_s3 + $0x64] sm:$0x3] }
 0x155   : > { %1832 = vst [vmem:[#allocation1 + $0x1] ss:$4 sm:$0xff] %v1819_v15  ;;  %v1802_v25 = vsel %vm870_vm8, %v1799_v8, 0.0  ;;  %v5797_v43 = vpop.f32.mrf.mxu1  ;;  %v1776_v24 = vpop.f32.mrf.mxu3  ;;  %v5865_v32 = vunpack.c.l.b16 %v5833_v3 }
 0x156   : > { %v1729_v59 = vadd.f32 %v1723_v16, %v1680_v1  ;;  %v1803_v37 = vadd.f32 %v1802_v25, %v1801_v22  ;;  %4425 = vst.msk [vmem:[%s5383_s6 + $0x10] sm:$0x3] %vm930_vm10, %v1841_v47  ;;  %v2825_v54 = vor.u32 %v2823_v11, %v5785_v9  ;;  %v4542_v9 = vld [vmem:[%s6372_s3 + $0x66] sm:$0x3] }
 0x157   : > { %v3377_v5 = vsel %vm514_vm0, %v4542_v9, 0 }
 0x158   : > { %v1782_v6 = vadd.f32 %v1776_v24, %v1729_v59  ;;  %4501 = vmatmul.msk.bf16.vlgmr.msra.gmra.mxu1 %vm507_vm1, %v2822_v4  ;;  %v3044_v4 = vld [vmem:[%s5627_s17] sm:$0x8]  ;;  %v3324_v59 = vsel %vm514_vm0, %v4535_v41, 0 }
 0x159   : > { %v1623_v51 = vpop.f32.mrf.mxu0  ;;  %v1830_v63 = vld.sshfl [vmem:[#allocation1 + $0x20] sm:$0xff pattern:$0x73625140] }
 0x15a   : > { %v1785_v50 = vsel %vm5398_vm11, %v1782_v6, 0.0  ;;  %v1820_v39 = vrot.slane %v1782_v6, 2  ;;  %v1821_v53 = vrot.slane %v1782_v6, 4  ;;  %v1842_v19 = vpack.c.bf16 %v1830_v63, %v1830_v63 }
 0x15b   : > { %v1789_v14 = vsel %vm870_vm8, %v1785_v50, 0.0  ;;  %v1800_v12 = vmul.f32 %v1785_v50, %v1782_v6  ;;  %v5862_v63 = vunpack.c.h.b16 %v5661_v23  ;;  %v3278_v23 = vsel %vm514_vm0, %v4525_v62, 0 }
 0x15c   : > { %v1833_v55 = vld.sshfl [vmem:[#allocation1] sm:$0xff pattern:$0x73625140]  ;;  %v1790_v44 = vadd.f32 %v1789_v14, %v1788_v13  ;;  %1834 = vst [vmem:[#allocation1 + $0x20] ss:$4 sm:$0xff] %v1820_v39  ;;  %v1725_v27 = vpop.f32.mrf.mxu2  ;;  %v3009_v39 = vunpack.c.l.b16 %v3005_v36  ;;  %3287 = vmatpush.bf16.msra.mxu1 %v3278_v23 }
 0x15d   : > { %v1843_v60 = vpack.c.bf16 %v1833_v55, %v1833_v55  ;;  %v1804_v18 = vsel %vm870_vm8, %v1800_v12, 0.0  ;;  %1835 = vst [vmem:[#allocation1 + $0x21] ss:$4 sm:$0xff] %v1821_v53  ;;  %v5813_v33 = vpop.f32.mrf.mxu1  ;;  %v1778_v49 = vpop.f32.mrf.mxu3  ;;  %v2947_v13 = vld [vmem:[%s5627_s17 + $0xc] sm:$0x1]  ;;  %v5868_v53 = vunpack.c.h.b16 %v5749_v46  ;;  %v3050_v12 = vunpack.c.l.b16 %v3044_v4 }
 0x15e   : > { %v1791_v26 = vrot.slane %v1790_v44, 4  ;;  %v1805_v28 = vadd.f32 %v1804_v18, %v1803_v37  ;;  %4426 = vst.msk [vmem:[%s5383_s6 + $0x12] sm:$0x3] %vm930_vm10, %v1842_v19  ;;  %v3245_v37 = vsel %vm514_vm0, %v4526_v45, 0  ;;  %v2957_v50 = vunpack.c.l.b16 %v2947_v13 }
 0x15f   : > { %4427 = vst.msk [vmem:[%s5383_s6 + $0x14] sm:$0x3] %vm930_vm10, %v1843_v60  ;;  %v3010_v60 = vpack.c.b16 %v5862_v63, %v3009_v39  ;;  %v3052_v18 = vpack.c.b16 %v5862_v63, %v3050_v12 }
 0x160   : > { %v1792_v42 = vadd.f32 %v1791_v26, %v1790_v44  ;;  %v1806_v48 = vrot.slane %v1805_v28, 4  ;;  %v5879_v46 = vpack.c.b16 %v2957_v50, %v5865_v32 }
 0x161   : > { %v5822_v0 = vpop.f32.mrf.mxu0  ;;  %4504 = vmatmul.msk.bf16.vlgmr.msra.gmra.mxu2 %vm507_vm1, %v2879_v17  ;;  %v2913_v17 = vpack.c.b16 %v2860_v2, %v2860_v2 }
 0x162   : > { %v1793_v15 = vrot.slane %v1792_v42, 2  ;;  %v1807_v40 = vadd.f32 %v1806_v48, %v1805_v28  ;;  %4507 = vmatmul.msk.bf16.vlgmr.msra.gmra.mxu3 %vm507_vm1, %v2912_v30  ;;  %3333 = vmatpush.bf16.msra.mxu2 %v3324_v59  ;;  %v3012_v49 = vrot.slane %v5879_v46, 1  ;;  %v1933_v29 = vadd.f32 %v5797_v43, %v5822_v0 }
 0x163   : > { %3386 = vmatpush.bf16.msra.mxu3 %v3377_v5  ;;  %v3103_v43 = vpack.c.b16 %v5865_v32, %v5862_v63  ;;  %v4529_v63 = vld [vmem:[%s4917_s13] sm:$0x8]  ;;  %v2972_v12 = vshrl.u32 %v5879_v46, 16 }
 0x164   : > { %4499 = vmatmul.msk.bf16.vlgmr.msra.gmra.mxu0 %vm507_vm1, %v2780_v20  ;;  %v1794_v8 = vadd.f32 %v1793_v15, %v1792_v42  ;;  %v1808_v1 = vrot.slane %v1807_v40, 2  ;;  %v1836_v38 = vld.sshfl [vmem:[#allocation1 + $0x20] sm:$0xff pattern:$0x73625140]  ;;  %v5835_v31 = vpop.f32.mrf.mxu2  ;;  %v3055_v20 = vshrl.u32 %v3052_v18, 16  ;;  %v3058_v42 = vshll.u32 %v3052_v18, 16 }
 0x165   : > { %v1844_v47 = vpack.c.bf16 %v1836_v38, %v1836_v38  ;;  %v5842_v16 = vpop.f32.mrf.mxu1  ;;  %v2031_v21 = vpop.f32.mrf.mxu3  ;;  %3254 = vmatpush.bf16.msra.mxu0 %v3245_v37  ;;  %v2001_v36 = vadd.f32 %v5835_v31, %v1933_v29 }
 0x166   : > { %v1795_v22 = vrot.slane %v1794_v8, 1  ;;  %v1809_v25 = vadd.f32 %v1808_v1, %v1807_v40  ;;  %v3057_v15 = vrot.slane %v3055_v20, 3  ;;  %v3060_v40 = vrot.slane %v3058_v42, 4  ;;  %v4616_v20 = vld [vmem:[%s4917_s13 + $0x4] sm:$0xf0] }
 0x167   : > { %4428 = vst.msk [vmem:[%s5383_s6 + $0x16] sm:$0x3] %vm930_vm10, %v1844_v47 }
 0x168   : > { %v1796_v24 = vadd.f32 %v1795_v22, %v1794_v8  ;;  %v1810_v51 = vrot.slane %v1809_v25, 1  ;;  %4502 = vmatmul.msk.bf16.gmra.mxu1 %vm507_vm1, %v2825_v54  ;;  %v2968_v54 = vshll.u32 %v5879_v46, 16 }
 0x169   : > { %v1886_v6 = vpop.f32.mrf.mxu0 }
 0x16a   : > { %v5872_v19 = vadd.f32 %v1796_v24, %v5684_v35  ;;  %v1811_v14 = vadd.f32 %v1810_v51, %v1809_v25  ;;  %v3053_v35 = vpack.c.b16 %v5868_v53, %v5865_v32  ;;  %v2970_v13 = vrot.slane %v2968_v54, 1  ;;  %v4615_v32 = vld [vmem:[%s4917_s13] sm:$0xf0] }
 0x16b   : > { %v2040_v25 = vadd.f32 %v2031_v21, %v2001_v36  ;;  %v1935_v31 = vadd.f32 %v5813_v33, %v1886_v6  ;;  %v4699_v33 = vld [vmem:[%s4917_s13 + $0x8] sm:$0xf]   ;;  %v4704_v6 = vld [vmem:[%s4917_s13 + $0x8] sm:$0x70] }
 0x16c   : > { %v5876_v55 = vadd.f32 %v1811_v14, %v5689_v10  ;;  %v1994_v44 = vpop.f32.mrf.mxu2  ;;  %v3011_v10 = vrot.slane %v3010_v60, 1  ;;  %v3063_v48 = vshrl.u32 %v3053_v35, 16  ;;  %v3066_v30 = vshll.u32 %v3053_v35, 16 }
 0x16d   : > { %v1939_v27 = vpop.f32.mrf.mxu1  ;;  %v2033_v26 = vpop.f32.mrf.mxu3  ;;  %v2971_v59 = vsel %vm491_vm3, %v5697_v52, %v2970_v13  ;;  %v2002_v62 = vadd.f32 %v1994_v44, %v1935_v31  ;;  %v5922_v44 = vor.u32 %v4615_v32, %v4529_v63 }
 0x16e   : > { %v3013_v2 = vsel %vm954_vm5, %v3011_v10, %v3012_v49  ;;  %v3068_v8 = vrot.slane %v3066_v30, 4  ;;  %v3301_v27 = vld [vmem:[%s4917_s13 + $0x10] sm:$0x3]  ;;  %v4538_v10 = vld [vmem:[%s4917_s13 + $0x4] sm:$0xc] }
 0x16f   : > { %v2041_v50 = vadd.f32 %v2033_v26, %v2002_v62  ;;  %v4700_v26 = vor.u32 %v4704_v6, %v4699_v33  ;;  %v3311_v30 = vunpack.c.l.b16 %v3301_v27  ;;  %v5943_v29 = vor.u32 %v4616_v20, %v4538_v10 }
 0x170   : > { %v3225_v36 = vshll.u32 %v5922_v44, 16 }
 0x171   : > { %v1889_v28 = vpop.f32.mrf.mxu0  ;;  %4505 = vmatmul.msk.bf16.gmra.mxu2 %vm507_vm1, %v5806_v56  ;;  %v3065_v56 = vrot.slane %v3063_v48, 3  ;;  %v2974_v48 = vor.u32 %v2972_v12, %v2970_v13  ;;  %v5941_v54 = vrot.slane %v4700_v26, 3  ;;  %v3222_v13 = vshrl.u32 %v5922_v44, 16 }
 0x172   : > { %4508 = vmatmul.msk.bf16.gmra.mxu3 %vm507_vm1, %v2913_v17  ;;  %v1938_v52 = vadd.f32 %v5842_v16, %v1889_v28  ;;  %v3300_v16 = vld [vmem:[%s4917_s13 + $0xc] sm:$0xf]  ;;  %v3347_v28 = vld [vmem:[%s4917_s13 + $0x10] sm:$0x7] }
 0x173   : > { %v5900_v41 = vor.u32 %v3068_v8, %v3065_v56  ;;  %v3310_v46 = vunpack.c.l.b16 %v3300_v16  ;;  %v3351_v8 = vunpack.c.l.b16 %v3347_v28  ;;  %v3224_v20 = vrot.slane %v3222_v13, 3 }
 0x174   : > { %4500 = vmatmul.msk.bf16.gmra.mxu0 %vm507_vm1, %v2779_v57  ;;  %v1997_v11 = vpop.f32.mrf.mxu2  ;;  %v3061_v57 = vor.u32 %v3060_v40, %v3057_v15  ;;  %v3268_v15 = vrot.slane %v5922_v44, 3  ;;  %v5936_v40 = vld [vmem:[%s4917_s13 + $0x8] sm:$0xff]   ;;  %v3357_v44 = vshll.u32 %v5943_v29, 16 }
 0x175   : > { %v2128_v58 = vpop.f32.mrf.mxu1  ;;  %v2036_v1 = vpop.f32.mrf.mxu3  ;;  %v2003_v60 = vadd.f32 %v1997_v11, %v1938_v52  ;;  %v3352_v62 = vpack.c.b16 %v3351_v8, %v3310_v46 }
 0x176   : > { %v3070_v22 = vsel %vm613_vm4, %v3061_v57, %v5900_v41  ;;  %v4562_v57 = vld [vmem:[%s6372_s3 + $0x6e] sm:$0x3]  ;;  %v3270_v32 = vsel %vm573_vm2, %v3268_v15, %v5941_v54 }
 0x177   : > { %v2042_v42 = vadd.f32 %v2036_v1, %v2003_v60  ;;  %v3362_v60 = vshrl.u32 %v3352_v62, 16 }
 0x178   : > { %4513 = vmatmul.msk.bf16.vlgmr.msrb.gmra.mxu1 %vm507_vm1, %v3013_v2  ;;  %v3104_v2 = vpack.c.b16 %v5868_v53, %v5868_v53  ;;  %v4545_v53 = vld [vmem:[%s6372_s3 + $0x68] sm:$0x3] }
 0x179   : > { %v1891_v38 = vpop.f32.mrf.mxu0  ;;  %v3364_v15 = vrot.slane %v3362_v60, 2 }
 0x17c   : > { %v1999_v47 = vpop.f32.mrf.mxu2 }
 0x17d   : > { %v2130_v45 = vpop.f32.mrf.mxu1  ;;  %v2038_v4 = vpop.f32.mrf.mxu3 }
 0x181   : > { %v2094_v9 = vpop.f32.mrf.mxu0  ;;  %4516 = vmatmul.msk.bf16.vlgmr.msrb.gmra.mxu2 %vm507_vm1, %v3070_v22  ;;  %v3581_v22 = vsel %vm514_vm0, %v4562_v57, 0 }
 0x182   : > { %v2103_v0 = vadd.f32 %v2094_v9, %v2040_v25  ;;  %4519 = vmatmul.msk.bf16.vlgmr.msrb.gmra.mxu3 %vm507_vm1, %v3103_v43  ;;  %v4552_v25 = vld [vmem:[%s6372_s3 + $0x6a] sm:$0x3]  ;;  %v3230_v43 = vshrl.u32 %v5936_v40, 16 }
 0x183   : > { %3590 = vmatpush.bf16.msrb.mxu3 %v3581_v22 }
 0x184   : > { %4510 = vmatmul.msk.bf16.vlgmr.msrb.gmra.mxu0 %vm507_vm1, %v2971_v59  ;;  %v2137_v21 = vadd.f32 %v2128_v58, %v2103_v0  ;;  %v2191_v37 = vpop.f32.mrf.mxu2  ;;  %v4555_v58 = vld [vmem:[%s6372_s3 + $0x6c] sm:$0x3]  ;;  %v5958_v59 = vpack.c.b16 %v3311_v30, %v3310_v46  ;;  %v3479_v0 = vsel %vm514_vm0, %v4552_v25, 0  ;;  %v3232_v46 = vrot.slane %v3230_v43, 3 }
 0x185   : > { %v5913_v24 = vpop.f32.mrf.mxu1  ;;  %v2230_v39 = vpop.f32.mrf.mxu3  ;;  %v3528_v56 = vsel %vm514_vm0, %v4555_v58, 0  ;;  %3488 = vmatpush.bf16.msrb.mxu1 %v3479_v0  ;;  %v5991_v25 = vld [vmem:[%s5627_s17 + $0x8] sm:$0xff]  }
 0x186   : > { %v2200_v51 = vadd.f32 %v2191_v37, %v2137_v21  ;;  %3537 = vmatpush.bf16.msrb.mxu2 %v3528_v56  ;;  %v3233_v37 = vshll.u32 %v5936_v40, 16  ;;  %v3315_v10 = vrot.slane %v5958_v59, 2 }
 0x188   : > { %v2239_v14 = vadd.f32 %v2230_v39, %v2200_v51  ;;  %4514 = vmatmul.msk.bf16.gmra.mxu1 %vm507_vm1, %v3012_v49  ;;  %v3235_v30 = vrot.slane %v3233_v37, 4 }
 0x189   : > { %v2096_v5 = vpop.f32.mrf.mxu0 }
 0x18a   : > { %v2104_v23 = vadd.f32 %v2096_v5, %v2041_v50  ;;  %v2275_v18 = vrot.slane %v2239_v14, 2  ;;  %v2276_v35 = vrot.slane %v2239_v14, 6  ;;  %2281 = vst [vmem:[#allocation1] ss:$4 sm:$0xff] %v2239_v14  ;;  %v2242_v1 = vsel %vm5311_vm12, %v2239_v14, 0.0 }
 0x18b   : > { %v2257_v31 = vmul.f32 %v2242_v1, %v2239_v14  ;;  %v5988_v22 = vor.u32 %v3235_v30, %v3232_v46 }
 0x18c   : > { %v2138_v17 = vadd.f32 %v2130_v45, %v2104_v23  ;;  %2283 = vst [vmem:[#allocation1 + $0x1] ss:$4 sm:$0xff] %v2275_v18  ;;  %v2193_v49 = vpop.f32.mrf.mxu2  ;;  %v3426_v45 = vsel %vm514_vm0, %v4545_v53, 0  ;;  %v3354_v23 = vshrl.u32 %v5943_v29, 16  ;;  %v3365_v18 = vshll.u32 %v3352_v62, 16 }
 0x18d   : > { %2286 = vst [vmem:[#allocation1 + $0x20] ss:$4 sm:$0xff] %v2276_v35  ;;  %v2135_v11 = vpop.f32.mrf.mxu1  ;;  %v2232_v47 = vpop.f32.mrf.mxu3  ;;  %3435 = vmatpush.bf16.msrb.mxu0 %v3426_v45  ;;  %v2260_v16 = vsel %vm870_vm8, %v2257_v31, 0.0 }
 0x18e   : > { %v2201_v38 = vadd.f32 %v2193_v49, %v2138_v17  ;;  %v3314_v17 = vrot.slane %v5943_v29, 2  ;;  %v3356_v58 = vrot.slane %v3354_v23, 2  ;;  %v3367_v56 = vrot.slane %v3365_v18, 3  ;;  %v4575_v18 = vld [vmem:[%s6372_s3 + $0x74] sm:$0x3] }
 0x18f   : > { %v3802_v46 = vsel %vm514_vm0, %v4575_v18, 0 }
 0x190   : > { %v2240_v9 = vadd.f32 %v2232_v47, %v2201_v38  ;;  %v5996_v31 = vor.u32 %v3367_v56, %v3364_v15  ;;  %v3316_v62 = vsel %vm1491_vm6, %v3314_v17, %v3315_v10  ;;  %v4570_v15 = vld [vmem:[%s6372_s3 + $0x72] sm:$0x3]  ;;  %v4582_v56 = vld [vmem:[%s6372_s3 + $0x76] sm:$0x3] }
 0x191   : > { %v2099_v4 = vpop.f32.mrf.mxu0  ;;  %4517 = vmatmul.msk.bf16.gmra.mxu2 %vm507_vm1, %v5900_v41  ;;  %v2245_v41 = vsel %vm870_vm8, %v2242_v1, 0.0 }
 0x192   : > { %v2105_v21 = vadd.f32 %v2099_v4, %v2042_v42  ;;  %v2243_v52 = vsel %vm5349_vm15, %v2240_v9, 0.0  ;;  %v2277_v51 = vrot.slane %v2240_v9, 4  ;;  %v2278_v63 = vrot.slane %v2240_v9, 6  ;;  %2288 = vst [vmem:[#allocation1 + $0x21] ss:$4 sm:$0xff] %v2240_v9  ;;  %4520 = vmatmul.msk.bf16.gmra.mxu3 %vm507_vm1, %v3104_v2 }
 0x193   : > { %v2284_v50 = vld.sshfl [vmem:[#allocation1] sm:$0xff pattern:$0x73625140]  ;;  %v2258_v39 = vmul.f32 %v2243_v52, %v2240_v9  ;;  %v2246_v6 = vsel %vm870_vm8, %v2243_v52, 0.0  ;;  %v3227_v42 = vrot.slane %v3225_v36, 4  ;;  %v3359_v2 = vrot.slane %v3357_v44, 3 }
 0x194   : > { %4511 = vmatmul.msk.bf16.gmra.mxu0 %vm507_vm1, %v2974_v48  ;;  %v2139_v33 = vadd.f32 %v5913_v24, %v2105_v21  ;;  %v2300_v5 = vpack.c.bf16 %v2284_v50, %v2284_v50  ;;  %2290 = vst [vmem:[#allocation1] ss:$4 sm:$0xff] %v2277_v51  ;;  %v2196_v14 = vpop.f32.mrf.mxu2  ;;  %v2247_v12 = vadd.f32 %v2246_v6, %v2245_v41  ;;  %v3412_v51 = vunpack.c.l.b16 %v5991_v25  ;;  %v4548_v41 = vld [vmem:[%s5627_s17] sm:$0x8]  ;;  %v4617_v6 = vld [vmem:[%s5627_s17] sm:$0xf0] }
 0x195   : > { %2291 = vst [vmem:[#allocation1 + $0x1] ss:$4 sm:$0xff] %v2278_v63  ;;  %v2261_v24 = vsel %vm870_vm8, %v2258_v39, 0.0  ;;  %v5978_v27 = vpop.f32.mrf.mxu1  ;;  %v2235_v28 = vpop.f32.mrf.mxu3  ;;  %v3228_v45 = vor.u32 %v3227_v42, %v3224_v20  ;;  %v3360_v0 = vor.u32 %v3359_v2, %v3356_v58  ;;  %v3453_v63 = vunpack.c.h.b16 %v5833_v3 }
 0x196   : > { %v2202_v35 = vadd.f32 %v2196_v14, %v2139_v33  ;;  %v2262_v26 = vadd.f32 %v2261_v24, %v2260_v16  ;;  %4461 = vst.msk [vmem:[%s5383_s6 + $0x18] sm:$0x3] %vm930_vm10, %v2300_v5  ;;  %v6017_v3 = vor.u32 %v4617_v6, %v4548_v41  ;;  %v3403_v41 = vld [vmem:[%s5627_s17 + $0xc] sm:$0x7] }
 0x197   : > { %v3237_v33 = vsel %vm613_vm4, %v3228_v45, %v5988_v22  ;;  %v3369_v5 = vsel %vm1531_vm7, %v3360_v0, %v5996_v31  ;;  %v3454_v23 = vpack.c.b16 %v3453_v63, %v3412_v51  ;;  %v3514_v0 = vunpack.c.h.b16 %v5991_v25 }
 0x198   : > { %v2241_v48 = vadd.f32 %v2235_v28, %v2202_v35  ;;  %4533 = vmatmul.msk.bf16.vlgmr.msra.gmra.mxu1 %vm507_vm1, %v3270_v32  ;;  %v3456_v42 = vshrl.u32 %v6017_v3, 16  ;;  %v3459_v2 = vshll.u32 %v6017_v3, 16 }
 0x199   : > { %v2101_v49 = vpop.f32.mrf.mxu0  ;;  %v2289_v11 = vld.sshfl [vmem:[#allocation1 + $0x20] sm:$0xff pattern:$0x73625140] }
 0x19a   : > { %v2301_v8 = vpack.c.bf16 %v2289_v11, %v2289_v11  ;;  %v2244_v1 = vsel %vm5398_vm11, %v2241_v48, 0.0  ;;  %v2279_v38 = vrot.slane %v2241_v48, 2  ;;  %v2280_v29 = vrot.slane %v2241_v48, 4 }
 0x19b   : > { %v2248_v53 = vsel %vm870_vm8, %v2244_v1, 0.0  ;;  %v2259_v57 = vmul.f32 %v2244_v1, %v2241_v48  ;;  %v3464_v49 = vshrl.u32 %v3454_v23, 16  ;;  %v3467_v48 = vshll.u32 %v3454_v23, 16 }
 0x19c   : > { %v2292_v47 = vld.sshfl [vmem:[#allocation1] sm:$0xff pattern:$0x73625140]  ;;  %v2249_v13 = vadd.f32 %v2248_v53, %v2247_v12  ;;  %2293 = vst [vmem:[#allocation1 + $0x20] ss:$4 sm:$0xff] %v2279_v38  ;;  %v2198_v36 = vpop.f32.mrf.mxu2  ;;  %v3458_v45 = vrot.slane %v3456_v42, 3  ;;  %v3413_v23 = vunpack.c.l.b16 %v3403_v41 }
 0x19d   : > { %v2302_v4 = vpack.c.bf16 %v2292_v47, %v2292_v47  ;;  %v2263_v9 = vsel %vm870_vm8, %v2259_v57, 0.0  ;;  %2294 = vst [vmem:[#allocation1 + $0x21] ss:$4 sm:$0xff] %v2280_v29  ;;  %v5994_v43 = vpop.f32.mrf.mxu1  ;;  %v2237_v52 = vpop.f32.mrf.mxu3  ;;  %v3466_v29 = vrot.slane %v3464_v49, 3  ;;  %v3469_v53 = vrot.slane %v3467_v48, 4 }
 0x19e   : > { %v2250_v21 = vrot.slane %v2249_v13, 4  ;;  %v2264_v37 = vadd.f32 %v2263_v9, %v2262_v26  ;;  %4462 = vst.msk [vmem:[%s5383_s6 + $0x1a] sm:$0x3] %vm930_vm10, %v2301_v8  ;;  %v4569_v8 = vld [vmem:[%s6372_s3 + $0x70] sm:$0x3]  ;;  %v3694_v57 = vsel %vm514_vm0, %v4570_v15, 0 }
 0x19f   : > { %4463 = vst.msk [vmem:[%s5383_s6 + $0x1c] sm:$0x3] %vm930_vm10, %v2302_v4  ;;  %v3841_v47 = vsel %vm514_vm0, %v4582_v56, 0  ;;  %v3461_v4 = vrot.slane %v3459_v2, 4  ;;  %v3416_v15 = vrot.slane %v6017_v3, 3  ;;  %v6099_v56 = vld [vmem:[%s4917_s13 + $0x4] sm:$0xff]  }
 0x1a0   : > { %v2251_v32 = vadd.f32 %v2250_v21, %v2249_v13  ;;  %v2265_v50 = vrot.slane %v2264_v37, 4  ;;  %v3682_v3 = vunpack.c.l.b16 %v6099_v56 }
 0x1a1   : > { %v6007_v39 = vpop.f32.mrf.mxu0  ;;  %4540 = vmatmul.msk.bf16.vlgmr.msra.gmra.mxu2 %vm507_vm1, %v3316_v62  ;;  %v4618_v62 = vld [vmem:[%s5627_s17 + $0x4] sm:$0xf0] }
 0x1a2   : > { %v2252_v14 = vrot.slane %v2251_v32, 2  ;;  %v2266_v12 = vadd.f32 %v2265_v50, %v2264_v37  ;;  %4543 = vmatmul.msk.bf16.vlgmr.msra.gmra.mxu3 %vm507_vm1, %v3369_v5  ;;  %3811 = vmatpush.bf16.msra.mxu2 %v3802_v46  ;;  %v4558_v37 = vld [vmem:[%s5627_s17 + $0x4] sm:$0xc]  ;;  %v6069_v50 = vor.u32 %v3469_v53, %v3466_v29 }
 0x1a3   : > { %3850 = vmatpush.bf16.msra.mxu3 %v3841_v47 }
 0x1a4   : > { %4531 = vmatmul.msk.bf16.vlgmr.msra.gmra.mxu0 %vm507_vm1, %v3237_v33  ;;  %v2253_v44 = vadd.f32 %v2252_v14, %v2251_v32  ;;  %v2267_v16 = vrot.slane %v2266_v12, 2  ;;  %v2295_v24 = vld.sshfl [vmem:[#allocation1 + $0x20] sm:$0xff pattern:$0x73625140]  ;;  %v6021_v60 = vpop.f32.mrf.mxu2  ;;  %v3462_v32 = vor.u32 %v3461_v4, %v3458_v45  ;;  %v4559_v33 = vor.u32 %v4618_v62, %v4558_v37 }
 0x1a5   : > { %v2303_v35 = vpack.c.bf16 %v2295_v24, %v2295_v24  ;;  %v6027_v26 = vpop.f32.mrf.mxu1  ;;  %v6029_v20 = vpop.f32.mrf.mxu3  ;;  %3703 = vmatpush.bf16.msra.mxu0 %v3694_v57  ;;  %v3773_v37 = vunpack.c.h.b16 %v6099_v56 }
 0x1a6   : > { %v2254_v28 = vrot.slane %v2253_v44, 1  ;;  %v2268_v17 = vadd.f32 %v2267_v16, %v2266_v12  ;;  %v3471_v12 = vsel %vm613_vm4, %v3462_v32, %v6069_v50  ;;  %v3558_v59 = vshrl.u32 %v4559_v33, 16 }
 0x1a7   : > { %4464 = vst.msk [vmem:[%s5383_s6 + $0x1e] sm:$0x3] %vm930_vm10, %v2303_v35  ;;  %v3561_v16 = vshll.u32 %v4559_v33, 16 }
 0x1a8   : > { %v2255_v30 = vadd.f32 %v2254_v28, %v2253_v44  ;;  %v2269_v58 = vrot.slane %v2268_v17, 1  ;;  %4534 = vmatmul.msk.bf16.gmra.mxu1 %vm507_vm1, %v5941_v54  ;;  %v3551_v54 = vld [vmem:[%s5627_s17 + $0x10] sm:$0x7]  ;;  %v2388_v28 = vadd.f32 %v5978_v27, %v6007_v39  ;;  %v3560_v42 = vrot.slane %v3558_v59, 2  ;;  %v3671_v39 = vld [vmem:[%s4917_s13] sm:$0x8] }
 0x1a9   : > { %v6035_v11 = vpop.f32.mrf.mxu0  ;;  %v3555_v21 = vunpack.c.l.b16 %v3551_v54  ;;  %v3563_v49 = vrot.slane %v3561_v16, 3  ;;  %v3715_v57 = vunpack.c.l.b16 %v3671_v39  ;;  %v4619_v16 = vld [vmem:[%s4917_s13 + $0xc] sm:$0x70] }
 0x1aa   : > { %v6050_v1 = vadd.f32 %v2255_v30, %v5872_v19  ;;  %v2270_v38 = vadd.f32 %v2269_v58, %v2268_v17  ;;  %v3742_v19 = vsel %vm514_vm0, %v4569_v8, 0  ;;  %v3518_v30 = vrot.slane %v4559_v33, 2 }
 0x1ab   : > { %3751 = vmatpush.bf16.msra.mxu1 %v3742_v19  ;;  %v3556_v6 = vpack.c.b16 %v3555_v21, %v3514_v0  ;;  %v2436_v25 = vadd.f32 %v6021_v60, %v2388_v28  ;;  %v3564_v8 = vor.u32 %v3563_v49, %v3560_v42  ;;  %v3762_v60 = vld [vmem:[%s4917_s13 + $0x4] sm:$0xc] }
 0x1ac   : > { %v6056_v13 = vadd.f32 %v2270_v38, %v5876_v55  ;;  %v6058_v36 = vpop.f32.mrf.mxu2  ;;  %v3505_v55 = vld [vmem:[%s5627_s17 + $0x10] sm:$0x3]  ;;  %v3772_v21 = vunpack.c.l.b16 %v3762_v60 }
 0x1ad   : > { %v2394_v9 = vpop.f32.mrf.mxu1  ;;  %v6064_v52 = vpop.f32.mrf.mxu3  ;;  %v3515_v5 = vunpack.c.l.b16 %v3505_v55  ;;  %v3569_v24 = vshll.u32 %v3556_v6, 16  ;;  %v2489_v29 = vadd.f32 %v6029_v20, %v2436_v25 }
 0x1ae   : > { %v2390_v9 = vadd.f32 %v5994_v43, %v6035_v11 }
 0x1af   : > { %v6083_v18 = vpack.c.b16 %v3515_v5, %v3514_v0  ;;  %v3571_v46 = vrot.slane %v3569_v24, 3  ;;  %v3716_v0 = vpack.c.b16 %v3682_v3, %v3715_v57  ;;  %v3776_v5 = vpack.c.b16 %v3773_v37, %v3772_v21 }
 0x1b0   : > { %v2437_v55 = vadd.f32 %v6058_v36, %v2390_v9  ;;  %v4578_v36 = vld [vmem:[%s4917_s13 + $0xc] sm:$0xf] }
 0x1b1   : > { %v6067_v63 = vpop.f32.mrf.mxu0  ;;  %4541 = vmatmul.msk.bf16.gmra.mxu2 %vm507_vm1, %v3315_v10  ;;  %v3566_v10 = vshrl.u32 %v3556_v6, 16  ;;  %v3519_v58 = vrot.slane %v6083_v18, 2  ;;  %v3719_v41 = vshrl.u32 %v3716_v0, 16  ;;  %v3722_v6 = vshll.u32 %v3716_v0, 16 }
 0x1b2   : > { %4544 = vmatmul.msk.bf16.gmra.mxu3 %vm507_vm1, %v5996_v31  ;;  %v6092_v31 = vpack.c.b16 %v3413_v23, %v3412_v51  ;;  %v2490_v43 = vadd.f32 %v6064_v52, %v2437_v55  ;;  %v3779_v42 = vshrl.u32 %v3776_v5, 16 }
 0x1b3   : > { %v3568_v48 = vrot.slane %v3566_v10, 2  ;;  %v3520_v54 = vsel %vm1491_vm6, %v3518_v30, %v3519_v58  ;;  %v3721_v28 = vrot.slane %v3719_v41, 3  ;;  %v3782_v30 = vshll.u32 %v3776_v5, 16 }
 0x1b4   : > { %4532 = vmatmul.msk.bf16.gmra.mxu0 %vm507_vm1, %v5988_v22  ;;  %v6077_v14 = vpop.f32.mrf.mxu2  ;;  %v3417_v27 = vrot.slane %v6092_v31, 3 }
 0x1b5   : > { %v2584_v44 = vpop.f32.mrf.mxu1  ;;  %v6085_v35 = vpop.f32.mrf.mxu3  ;;  %v6102_v38 = vor.u32 %v3571_v46, %v3568_v48  ;;  %v6133_v48 = vor.u32 %v4619_v16, %v4578_v36  ;;  %v3784_v55 = vrot.slane %v3782_v30, 3 }
 0x1b6   : > { %v3418_v45 = vsel %vm573_vm2, %v3416_v15, %v3417_v27  ;;  %v4598_v15 = vld [vmem:[%s6372_s3 + $0x7e] sm:$0x3] }
 0x1b7   : > { %v3573_v19 = vsel %vm1531_vm7, %v3564_v8, %v6102_v38  ;;  %v4040_v8 = vsel %vm514_vm0, %v4598_v15, 0  ;;  %v3790_v60 = vshll.u32 %v6133_v48, 16 }
 0x1b8   : > { %4553 = vmatmul.msk.bf16.vlgmr.msrb.gmra.mxu1 %vm507_vm1, %v3471_v12 }
 0x1b9   : > { %v2367_v17 = vpop.f32.mrf.mxu0 }
 0x1ba   : > { %v3724_v17 = vrot.slane %v3722_v6, 4 }
 0x1bc   : > { %v2434_v2 = vpop.f32.mrf.mxu2  ;;  %v3725_v9 = vor.u32 %v3724_v17, %v3721_v28 }
 0x1bd   : > { %v2586_v51 = vpop.f32.mrf.mxu1  ;;  %v2487_v53 = vpop.f32.mrf.mxu3 }
 0x1c1   : > { %v2523_v47 = vpop.f32.mrf.mxu0  ;;  %4560 = vmatmul.msk.bf16.vlgmr.msrb.gmra.mxu2 %vm507_vm1, %v3520_v54 }
 0x1c2   : > { %v2532_v4 = vadd.f32 %v2523_v47, %v2489_v29  ;;  %4563 = vmatmul.msk.bf16.vlgmr.msrb.gmra.mxu3 %vm507_vm1, %v3573_v19 }
 0x1c3   : > { %4049 = vmatpush.bf16.msrb.mxu3 %v4040_v8 }
 0x1c4   : > { %4550 = vmatmul.msk.bf16.vlgmr.msrb.gmra.mxu0 %vm507_vm1, %v3418_v45  ;;  %v2593_v20 = vadd.f32 %v2584_v44, %v2532_v4  ;;  %v2627_v62 = vpop.f32.mrf.mxu2  ;;  %v2393_v44 = vadd.f32 %v6027_v26, %v6067_v63  ;;  %v4585_v26 = vld [vmem:[%s6372_s3 + $0x78] sm:$0x3]  ;;  %v3787_v45 = vshrl.u32 %v6133_v48, 16 }
 0x1c5   : > { %v2589_v32 = vpop.f32.mrf.mxu1  ;;  %v2680_v11 = vpop.f32.mrf.mxu3 }
 0x1c6   : > { %v2636_v33 = vadd.f32 %v2627_v62, %v2593_v20  ;;  %v2438_v63 = vadd.f32 %v6077_v14, %v2393_v44  ;;  %v4588_v14 = vld [vmem:[%s6372_s3 + $0x7a] sm:$0x3]  ;;  %v3825_v20 = vld [vmem:[%s4917_s13 + $0x4] sm:$0x8]  ;;  %v3734_v44 = vsel %vm613_vm4, %v3725_v9, %v5988_v22  ;;  %s4328_s13 = sshll.u32 %s6399_s19, 2 }
 0x1c7   : > { %v3938_v53 = vsel %vm514_vm0, %v4588_v14, 0 }
 0x1c8   : > { %v2689_v23 = vadd.f32 %v2680_v11, %v2636_v33  ;;  %4554 = vmatmul.msk.bf16.gmra.mxu1 %vm507_vm1, %v6069_v50  ;;  %v4591_v50 = vld [vmem:[%s6372_s3 + $0x7c] sm:$0x3]  ;;  %v2491_v54 = vadd.f32 %v6085_v35, %v2438_v63  ;;  %v3781_v35 = vrot.slane %v3779_v42, 2 }
 0x1c9   : > { %v2525_v12 = vpop.f32.mrf.mxu0  ;;  %v4001_v2 = vsel %vm514_vm0, %v4591_v50, 0  ;;  %3947 = vmatpush.bf16.msrb.mxu1 %v3938_v53 }
 0x1ca   : > { %v2533_v59 = vadd.f32 %v2525_v12, %v2490_v43  ;;  %v2725_v10 = vrot.slane %v2689_v23, 2  ;;  %v2726_v24 = vrot.slane %v2689_v23, 6  ;;  %2731 = vst [vmem:[#allocation1] ss:$4 sm:$0xff] %v2689_v23  ;;  %v2692_v39 = vsel %vm5311_vm12, %v2689_v23, 0.0  ;;  %4010 = vmatpush.bf16.msrb.mxu2 %v4001_v2 }
 0x1cb   : > { %v2707_v4 = vmul.f32 %v2692_v39, %v2689_v23  ;;  %v2695_v18 = vsel %vm870_vm8, %v2692_v39, 0.0  ;;  %v3789_v12 = vrot.slane %v3787_v45, 2  ;;  %v3792_v23 = vrot.slane %v3790_v60, 3 }
 0x1cc   : > { %v2594_v52 = vadd.f32 %v2586_v51, %v2533_v59  ;;  %2733 = vst [vmem:[#allocation1 + $0x1] ss:$4 sm:$0xff] %v2725_v10  ;;  %v2629_v49 = vpop.f32.mrf.mxu2  ;;  %v3904_v51 = vsel %vm514_vm0, %v4585_v26, 0  ;;  %v3829_v59 = vunpack.c.l.b16 %v3825_v20  ;;  %v3785_v28 = vor.u32 %v3784_v55, %v3781_v35 }
 0x1cd   : > { %2736 = vst [vmem:[#allocation1 + $0x20] ss:$4 sm:$0xff] %v2726_v24  ;;  %v2591_v46 = vpop.f32.mrf.mxu1  ;;  %v2682_v29 = vpop.f32.mrf.mxu3  ;;  %3913 = vmatpush.bf16.msrb.mxu0 %v3904_v51  ;;  %v2710_v31 = vsel %vm870_vm8, %v2707_v4, 0.0  ;;  %v6179_v17 = vor.u32 %v3792_v23, %v3789_v12  ;;  %v4671_v2 = vunpack.c.l.b16 %v5936_v40  ;;  %v3864_v12 = vld [vmem:[%s5627_s17] sm:$0x8]  ;;  %vm4130_vm0 = vcmask 1040384  }
 0x1ce   : > { %v2637_v25 = vadd.f32 %v2629_v49, %v2594_v52  ;;  %v3830_v42 = vpack.c.b16 %v3773_v37, %v3829_v59  ;;  %v4672_v59 = vunpack.c.h.b16 %v5936_v40 }
 0x1cf   : > { %v3685_v45 = vpack.c.b16 %v4671_v2, %v3682_v3 }
 0x1d0   : > { %v2690_v47 = vadd.f32 %v2682_v29, %v2637_v25  ;;  %v3831_v14 = vrot.slane %v3830_v42, 3 }
 0x1d1   : > { %v2528_v57 = vpop.f32.mrf.mxu0  ;;  %4561 = vmatmul.msk.bf16.gmra.mxu2 %vm507_vm1, %v3519_v58 }
 0x1d2   : > { %v2534_v19 = vadd.f32 %v2528_v57, %v2491_v54  ;;  %v2693_v0 = vsel %vm5349_vm15, %v2690_v47, 0.0  ;;  %v2727_v21 = vrot.slane %v2690_v47, 4  ;;  %v2728_v62 = vrot.slane %v2690_v47, 6  ;;  %2738 = vst [vmem:[#allocation1 + $0x21] ss:$4 sm:$0xff] %v2690_v47  ;;  %4564 = vmatmul.msk.bf16.gmra.mxu3 %vm507_vm1, %v6102_v38 }
 0x1d3   : > { %v2734_v33 = vld.sshfl [vmem:[#allocation1] sm:$0xff pattern:$0x73625140]  ;;  %v2708_v43 = vmul.f32 %v2693_v0, %v2690_v47  ;;  %v2696_v58 = vsel %vm870_vm8, %v2693_v0, 0.0  ;;  %v3832_v54 = vrot.slane %v6133_v48, 3  ;;  %v3794_v57 = vsel %vm1531_vm7, %v3785_v28, %v6179_v17 }
 0x1d4   : > { %4551 = vmatmul.msk.bf16.gmra.mxu0 %vm507_vm1, %v3417_v27  ;;  %v2595_v11 = vadd.f32 %v2589_v32, %v2534_v19  ;;  %v2750_v41 = vpack.c.bf16 %v2734_v33, %v2734_v33  ;;  %2740 = vst [vmem:[#allocation1] ss:$4 sm:$0xff] %v2727_v21  ;;  %v2632_v6 = vpop.f32.mrf.mxu2  ;;  %v2697_v5 = vadd.f32 %v2696_v58, %v2695_v18  ;;  %v3865_v18 = vld [vmem:[%s5627_s17 + $0x4] sm:$0xff]  }
 0x1d5   : > { %2741 = vst [vmem:[#allocation1 + $0x1] ss:$4 sm:$0xff] %v2728_v62  ;;  %v2711_v27 = vsel %vm870_vm8, %v2708_v43, 0.0  ;;  %v6172_v32 = vpop.f32.mrf.mxu1  ;;  %v2685_v10 = vpop.f32.mrf.mxu3  ;;  %v3833_v9 = vsel %vm573_vm2, %v3831_v14, %v3832_v54  ;;  %v3961_v58 = vld [vmem:[%s5627_s17 + $0x4] sm:$0xc] }
 0x1d6   : > { %v2638_v36 = vadd.f32 %v2632_v6, %v2595_v11  ;;  %v2712_v16 = vadd.f32 %v2711_v27, %v2710_v31  ;;  %4493 = vst.msk [vmem:[%s5383_s6 + $0x20] sm:$0x3] %vm930_vm10, %v2750_v41  ;;  %v3971_v27 = vunpack.c.l.b16 %v3961_v58 }
 0x1d8   : > { %v2691_v24 = vadd.f32 %v2685_v10, %v2638_v36  ;;  %4573 = vmatmul.msk.bf16.vlgmr.msra.gmra.mxu1 %vm507_vm1, %v3734_v44  ;;  %v3972_v44 = vunpack.c.h.b16 %v3865_v18  ;;  %v4594_v36 = vld [vmem:[%s5627_s17 + $0xc] sm:$0xf] }
 0x1d9   : > { %v2530_v38 = vpop.f32.mrf.mxu0  ;;  %v2739_v52 = vld.sshfl [vmem:[#allocation1 + $0x20] sm:$0xff pattern:$0x73625140] }
 0x1da   : > { %v2751_v49 = vpack.c.bf16 %v2739_v52, %v2739_v52  ;;  %v2694_v50 = vsel %vm5398_vm11, %v2691_v24, 0.0  ;;  %v2729_v26 = vrot.slane %v2691_v24, 2  ;;  %v2730_v63 = vrot.slane %v2691_v24, 4 }
 0x1db   : > { %v2698_v46 = vsel %vm870_vm8, %v2694_v50, 0.0  ;;  %v2709_v30 = vmul.f32 %v2694_v50, %v2691_v24  ;;  %v6234_v24 = vld [vmem:[%s5627_s17 + $0x8] sm:$0xff]   ;;  %v3874_v52 = vunpack.c.l.b16 %v3864_v12  ;;  %v3686_v50 = vpack.c.b16 %v4672_v59, %v4672_v59 }
 0x1dc   : > { %v2742_v15 = vld.sshfl [vmem:[#allocation1] sm:$0xff pattern:$0x73625140]  ;;  %v2699_v39 = vadd.f32 %v2698_v46, %v2697_v5  ;;  %2743 = vst [vmem:[#allocation1 + $0x20] ss:$4 sm:$0xff] %v2729_v26  ;;  %v2634_v25 = vpop.f32.mrf.mxu2  ;;  %v4675_v40 = vunpack.c.l.b16 %v6234_v24  ;;  %v3889_v14 = vshrl.u32 %v6234_v24, 16 }
 0x1dd   : > { %v2752_v51 = vpack.c.bf16 %v2742_v15, %v2742_v15  ;;  %v2713_v37 = vsel %vm870_vm8, %v2709_v30, 0.0  ;;  %2744 = vst [vmem:[#allocation1 + $0x21] ss:$4 sm:$0xff] %v2730_v63  ;;  %v6188_v8 = vpop.f32.mrf.mxu1  ;;  %v2687_v47 = vpop.f32.mrf.mxu3  ;;  %v4024_v15 = vld [vmem:[%s5627_s17 + $0x4] sm:$0x8] }
 0x1de   : > { %v2700_v29 = vrot.slane %v2699_v39, 4  ;;  %v2714_v53 = vadd.f32 %v2713_v37, %v2712_v16  ;;  %4494 = vst.msk [vmem:[%s5383_s6 + $0x22] sm:$0x3] %vm930_vm10, %v2751_v49  ;;  %v4620_v16 = vld [vmem:[%s5627_s17 + $0xc] sm:$0x70]  ;;  %s361_s17 = sadd.s32 %s4328_s13, %s5284_s7 }
 0x1df   : > { %4495 = vst.msk [vmem:[%s5383_s6 + $0x24] sm:$0x3] %vm930_vm10, %v2752_v51  ;;  %v6236_v42 = vor.u32 %v4620_v16, %v4594_v36  ;;  %s4329_s28 = sshll.u32 %s361_s17, 1 }
 0x1e0   : > { %v2701_v60 = vadd.f32 %v2700_v29, %v2699_v39  ;;  %v2715_v4 = vrot.slane %v2714_v53, 4  ;;  %s363_s29 = scalar_lea.vmem %s6374_s5, %s4329_s28 }
 0x1e1   : > { %v6197_v19 = vpop.f32.mrf.mxu0  ;;  %4580 = vmatmul.msk.bf16.vlgmr.msra.gmra.mxu2 %vm507_vm1, %v3794_v57  ;;  %v3986_v30 = vshrl.u32 %v6236_v42, 16  ;;  %v3989_v2 = vshll.u32 %v6236_v42, 16  ;;  %v4031_v12 = vrot.slane %v6236_v42, 3 }
 0x1e2   : > { %v2702_v35 = vrot.slane %v2701_v60, 2  ;;  %v2716_v20 = vadd.f32 %v2715_v4, %v2714_v53  ;;  %4583 = vmatmul.msk.bf16.vlgmr.msra.gmra.mxu3 %vm507_vm1, %v3833_v9  ;;  %v4028_v53 = vunpack.c.l.b16 %v4024_v15 }
 0x1e4   : > { %4571 = vmatmul.msk.bf16.vlgmr.msra.gmra.mxu0 %vm507_vm1, %v3685_v45  ;;  %v2703_v56 = vadd.f32 %v2702_v35, %v2701_v60  ;;  %v2717_v3 = vrot.slane %v2716_v20, 2  ;;  %v2745_v0 = vld.sshfl [vmem:[#allocation1 + $0x20] sm:$0xff pattern:$0x73625140]  ;;  %v6206_v21 = vpop.f32.mrf.mxu2  ;;  %v3988_v45 = vrot.slane %v3986_v30, 2  ;;  %v3991_v60 = vrot.slane %v3989_v2, 3 }
 0x1e5   : > { %v2753_v62 = vpack.c.bf16 %v2745_v0, %v2745_v0  ;;  %v6209_v55 = vpop.f32.mrf.mxu1  ;;  %v6211_v11 = vpop.f32.mrf.mxu3 }
 0x1e6   : > { %v2704_v33 = vrot.slane %v2703_v56, 1  ;;  %v2718_v43 = vadd.f32 %v2717_v3, %v2716_v20  ;;  %v3891_v20 = vrot.slane %v3889_v14, 3  ;;  %v4029_v3 = vpack.c.b16 %v3972_v44, %v4028_v53 }
 0x1e7   : > { %4496 = vst.msk [vmem:[%s5383_s6 + $0x26] sm:$0x3] %vm930_vm10, %v2753_v62  ;;  %v3992_v62 = vor.u32 %v3991_v60, %v3988_v45 }
 0x1e8   : > { %v2705_v41 = vadd.f32 %v2704_v33, %v2703_v56  ;;  %v2719_v6 = vrot.slane %v2718_v43, 1  ;;  %4574 = vmatmul.msk.bf16.gmra.mxu1 %vm507_vm1, %v5988_v22  ;;  %v3875_v22 = vunpack.c.l.b16 %v3865_v18  ;;  %v2845_v56 = vadd.f32 %v6172_v32, %v6197_v19 }
 0x1e9   : > { %v6217_v5 = vpop.f32.mrf.mxu0  ;;  %v4676_v19 = vunpack.c.h.b16 %v6234_v24 }
 0x1ea   : > { %v6223_v23 = vadd.f32 %v2705_v41, %v6050_v1  ;;  %v2720_v31 = vadd.f32 %v2719_v6, %v2718_v43  ;;  %v3975_v1 = vpack.c.b16 %v3972_v44, %v3971_v27  ;;  %v3878_v63 = vpack.c.b16 %v3875_v22, %v3874_v52 }
 0x1eb   : > { %v3929_v39 = vpack.c.b16 %v4675_v40, %v3875_v22  ;;  %v2907_v58 = vadd.f32 %v6206_v21, %v2845_v56  ;;  %v4030_v6 = vrot.slane %v4029_v3, 3  ;;  %v2847_v21 = vadd.f32 %v6188_v8, %v6217_v5 }
 0x1ec   : > { %v6229_v10 = vadd.f32 %v2720_v31, %v6056_v13  ;;  %v6231_v38 = vpop.f32.mrf.mxu2  ;;  %v3978_v13 = vshrl.u32 %v3975_v1, 16  ;;  %v3981_v46 = vshll.u32 %v3975_v1, 16  ;;  %v3881_v51 = vshrl.u32 %v3878_v63, 16 }
 0x1ed   : > { %v2851_v28 = vpop.f32.mrf.mxu1  ;;  %v2934_v49 = vpop.f32.mrf.mxu3  ;;  %v3884_v37 = vshll.u32 %v3878_v63, 16  ;;  %v2941_v27 = vadd.f32 %v6211_v11, %v2907_v58  ;;  %v4032_v16 = vsel %vm573_vm2, %v4030_v6, %v4031_v12  ;;  %v3930_v11 = vpack.c.b16 %v4676_v19, %v4676_v19 }
 0x1ee   : > { %v3980_v57 = vrot.slane %v3978_v13, 2  ;;  %v3983_v47 = vrot.slane %v3981_v46, 3  ;;  %v3883_v35 = vrot.slane %v3881_v51, 3  ;;  %v2908_v28 = vadd.f32 %v6231_v38, %v2847_v21 }
 0x1ef   : > { %v3886_v48 = vrot.slane %v3884_v37, 4 }
 0x1f0   : > { %v3984_v0 = vor.u32 %v3983_v47, %v3980_v57 }
 0x1f1   : > { %v6239_v26 = vpop.f32.mrf.mxu0  ;;  %4581 = vmatmul.msk.bf16.gmra.mxu2 %vm507_vm1, %v6179_v17  ;;  %v3892_v17 = vshll.u32 %v6234_v24, 16  ;;  %v3887_v43 = vor.u32 %v3886_v48, %v3883_v35  ;;  %v2942_v24 = vadd.f32 %v2934_v49, %v2908_v28 }
 0x1f2   : > { %4584 = vmatmul.msk.bf16.gmra.mxu3 %vm507_vm1, %v3832_v54  ;;  %v3993_v31 = vsel %vm1531_vm7, %v3984_v0, %v3992_v62  ;;  %v2850_v8 = vadd.f32 %v6209_v55, %v6239_v26 }
 0x1f3   : > { %v3894_v54 = vrot.slane %v3892_v17, 4 }
 0x1f4   : > { %4572 = vmatmul.msk.bf16.gmra.mxu0 %vm507_vm1, %v3686_v50  ;;  %v2903_v25 = vpop.f32.mrf.mxu2 }
 0x1f5   : > { %v3032_v29 = vpop.f32.mrf.mxu1  ;;  %v2937_v4 = vpop.f32.mrf.mxu3  ;;  %v3895_v18 = vor.u32 %v3894_v54, %v3891_v20  ;;  %v2909_v15 = vadd.f32 %v2903_v25, %v2850_v8 }
 0x1f7   : > { %v3896_v32 = vsel %vm613_vm4, %v3887_v43, %v3895_v18  ;;  %v2943_v51 = vadd.f32 %v2937_v4, %v2909_v15 }
 0x1f8   : > { %4589 = vmatmul.msk.bf16.vlgmr.msrb.gmra.mxu1 %vm507_vm1, %v3929_v39 }
 0x1f9   : > { %v2806_v9 = vpop.f32.mrf.mxu0 }
 0x1fc   : > { %v2905_v33 = vpop.f32.mrf.mxu2 }
 0x1fd   : > { %v3034_v41 = vpop.f32.mrf.mxu1  ;;  %v2939_v59 = vpop.f32.mrf.mxu3 }
 0x201   : > { %v2993_v36 = vpop.f32.mrf.mxu0  ;;  %4596 = vmatmul.msk.bf16.vlgmr.msrb.gmra.mxu2 %vm507_vm1, %v3993_v31 }
 0x202   : > { %v3002_v44 = vadd.f32 %v2993_v36, %v2941_v27  ;;  %4599 = vmatmul.msk.bf16.vlgmr.msrb.gmra.mxu3 %vm507_vm1, %v4032_v16 }
 0x204   : > { %4586 = vmatmul.msk.bf16.vlgmr.msrb.gmra.mxu0 %vm507_vm1, %v3896_v32  ;;  %v3041_v22 = vadd.f32 %v3032_v29, %v3002_v44  ;;  %v3089_v52 = vpop.f32.mrf.mxu2 }
 0x205   : > { %v3037_v1 = vpop.f32.mrf.mxu1  ;;  %v3123_v50 = vpop.f32.mrf.mxu3 }
 0x206   : > { %v3098_v42 = vadd.f32 %v3089_v52, %v3041_v22 }
 0x208   : > { %v3132_v63 = vadd.f32 %v3123_v50, %v3098_v42  ;;  %4590 = vmatmul.msk.bf16.gmra.mxu1 %vm507_vm1, %v3930_v11 }
 0x209   : > { %v2995_v40 = vpop.f32.mrf.mxu0 }
 0x20a   : > { %v3003_v5 = vadd.f32 %v2995_v40, %v2942_v24  ;;  %v3168_v13 = vrot.slane %v3132_v63, 2  ;;  %v3169_v46 = vrot.slane %v3132_v63, 6  ;;  %3174 = vst [vmem:[#allocation1] ss:$4 sm:$0xff] %v3132_v63  ;;  %v3135_v49 = vsel %vm5311_vm12, %v3132_v63, 0.0 }
 0x20b   : > { %v3150_v29 = vmul.f32 %v3135_v49, %v3132_v63  ;;  %v3138_v60 = vsel %vm870_vm8, %v3135_v49, 0.0 }
 0x20c   : > { %v3042_v30 = vadd.f32 %v3034_v41, %v3003_v5  ;;  %3176 = vst [vmem:[#allocation1 + $0x1] ss:$4 sm:$0xff] %v3168_v13  ;;  %v3091_v2 = vpop.f32.mrf.mxu2 }
 0x20d   : > { %3179 = vst [vmem:[#allocation1 + $0x20] ss:$4 sm:$0xff] %v3169_v46  ;;  %v3039_v38 = vpop.f32.mrf.mxu1  ;;  %v3125_v37 = vpop.f32.mrf.mxu3  ;;  %v3153_v20 = vsel %vm870_vm8, %v3150_v29, 0.0 }
 0x20e   : > { %v3099_v39 = vadd.f32 %v3091_v2, %v3042_v30 }
 0x210   : > { %v3133_v17 = vadd.f32 %v3125_v37, %v3099_v39 }
 0x211   : > { %v2998_v14 = vpop.f32.mrf.mxu0  ;;  %4597 = vmatmul.msk.bf16.gmra.mxu2 %vm507_vm1, %v3992_v62 }
 0x212   : > { %v3004_v55 = vadd.f32 %v2998_v14, %v2943_v51  ;;  %v3136_v26 = vsel %vm5349_vm15, %v3133_v17, 0.0  ;;  %v3170_v53 = vrot.slane %v3133_v17, 4  ;;  %v3171_v57 = vrot.slane %v3133_v17, 6  ;;  %3181 = vst [vmem:[#allocation1 + $0x21] ss:$4 sm:$0xff] %v3133_v17  ;;  %4600 = vmatmul.msk.bf16.gmra.mxu3 %vm507_vm1, %v4031_v12 }
 0x213   : > { %v3177_v25 = vld.sshfl [vmem:[#allocation1] sm:$0xff pattern:$0x73625140]  ;;  %v3151_v47 = vmul.f32 %v3136_v26, %v3133_v17  ;;  %v3139_v4 = vsel %vm870_vm8, %v3136_v26, 0.0 }
 0x214   : > { %4587 = vmatmul.msk.bf16.gmra.mxu0 %vm507_vm1, %v3895_v18  ;;  %v3043_v45 = vadd.f32 %v3037_v1, %v3004_v55  ;;  %v3193_v9 = vpack.c.bf16 %v3177_v25, %v3177_v25  ;;  %3183 = vst [vmem:[#allocation1] ss:$4 sm:$0xff] %v3170_v53  ;;  %v3094_v35 = vpop.f32.mrf.mxu2  ;;  %v3140_v48 = vadd.f32 %v3139_v4, %v3138_v60 }
 0x215   : > { %3184 = vst [vmem:[#allocation1 + $0x1] ss:$4 sm:$0xff] %v3171_v57  ;;  %v3154_v54 = vsel %vm870_vm8, %v3151_v47, 0.0  ;;  %v3289_v56 = vpop.f32.mrf.mxu1  ;;  %v3128_v62 = vpop.f32.mrf.mxu3 }
 0x216   : > { %v3100_v3 = vadd.f32 %v3094_v35, %v3043_v45  ;;  %v3155_v0 = vadd.f32 %v3154_v54, %v3153_v20  ;;  %4521 = vst.msk [vmem:[%s5383_s6 + $0x28] sm:$0x3] %vm930_vm10, %v3193_v9 }
 0x218   : > { %v3134_v43 = vadd.f32 %v3128_v62, %v3100_v3 }
 0x219   : > { %v3000_v33 = vpop.f32.mrf.mxu0  ;;  %v3182_v18 = vld.sshfl [vmem:[#allocation1 + $0x20] sm:$0xff pattern:$0x73625140] }
 0x21a   : > { %v3194_v58 = vpack.c.bf16 %v3182_v18, %v3182_v18  ;;  %v3137_v41 = vsel %vm5398_vm11, %v3134_v43, 0.0  ;;  %v3172_v6 = vrot.slane %v3134_v43, 2  ;;  %v3173_v12 = vrot.slane %v3134_v43, 4 }
 0x21b   : > { %v3141_v31 = vsel %vm870_vm8, %v3137_v41, 0.0  ;;  %v3152_v27 = vmul.f32 %v3137_v41, %v3134_v43 }
 0x21c   : > { %v3185_v59 = vld.sshfl [vmem:[#allocation1] sm:$0xff pattern:$0x73625140]  ;;  %v3142_v36 = vadd.f32 %v3141_v31, %v3140_v48  ;;  %3186 = vst [vmem:[#allocation1 + $0x20] ss:$4 sm:$0xff] %v3172_v6  ;;  %v3096_v32 = vpop.f32.mrf.mxu2 }
 0x21d   : > { %v3195_v19 = vpack.c.bf16 %v3185_v59, %v3185_v59  ;;  %v3156_v44 = vsel %vm870_vm8, %v3152_v27, 0.0  ;;  %3187 = vst [vmem:[#allocation1 + $0x21] ss:$4 sm:$0xff] %v3173_v12  ;;  %v3291_v16 = vpop.f32.mrf.mxu1  ;;  %v3130_v52 = vpop.f32.mrf.mxu3 }
 0x21e   : > { %v3143_v21 = vrot.slane %v3142_v36, 4  ;;  %v3157_v22 = vadd.f32 %v3156_v44, %v3155_v0  ;;  %4522 = vst.msk [vmem:[%s5383_s6 + $0x2a] sm:$0x3] %vm930_vm10, %v3194_v58 }
 0x21f   : > { %4523 = vst.msk [vmem:[%s5383_s6 + $0x2c] sm:$0x3] %vm930_vm10, %v3195_v19 }
 0x220   : > { %v3144_v11 = vadd.f32 %v3143_v21, %v3142_v36  ;;  %v3158_v28 = vrot.slane %v3157_v22, 4 }
 0x221   : > { %v3256_v1 = vpop.f32.mrf.mxu0 }
 0x222   : > { %v3145_v42 = vrot.slane %v3144_v11, 2  ;;  %v3159_v24 = vadd.f32 %v3158_v28, %v3157_v22  ;;  %v3290_v47 = vadd.f32 %v3289_v56, %v3256_v1 }
 0x224   : > { %v3146_v50 = vadd.f32 %v3145_v42, %v3144_v11  ;;  %v3160_v40 = vrot.slane %v3159_v24, 2  ;;  %v3188_v63 = vld.sshfl [vmem:[#allocation1 + $0x20] sm:$0xff pattern:$0x73625140]  ;;  %v3335_v8 = vpop.f32.mrf.mxu2 }
 0x225   : > { %v3196_v5 = vpack.c.bf16 %v3188_v63, %v3188_v63  ;;  %v3294_v13 = vpop.f32.mrf.mxu1  ;;  %v3388_v2 = vpop.f32.mrf.mxu3  ;;  %v3344_v60 = vadd.f32 %v3335_v8, %v3290_v47 }
 0x226   : > { %v3147_v46 = vrot.slane %v3146_v50, 1  ;;  %v3161_v30 = vadd.f32 %v3160_v40, %v3159_v24 }
 0x227   : > { %4524 = vst.msk [vmem:[%s5383_s6 + $0x2e] sm:$0x3] %vm930_vm10, %v3196_v5  ;;  %v3397_v9 = vadd.f32 %v3388_v2, %v3344_v60 }
 0x228   : > { %v3148_v15 = vadd.f32 %v3147_v46, %v3146_v50  ;;  %v3162_v38 = vrot.slane %v3161_v30, 1 }
 0x229   : > { %v3258_v49 = vpop.f32.mrf.mxu0 }
 0x22a   : > { %v6295_v39 = vadd.f32 %v3148_v15, %v6223_v23  ;;  %v3163_v51 = vadd.f32 %v3162_v38, %v3161_v30  ;;  %v3292_v20 = vadd.f32 %v3291_v16, %v3258_v49 }
 0x22c   : > { %v6298_v37 = vadd.f32 %v3163_v51, %v6229_v10  ;;  %v3337_v14 = vpop.f32.mrf.mxu2 }
 0x22d   : > { %v3296_v17 = vpop.f32.mrf.mxu1  ;;  %v3390_v29 = vpop.f32.mrf.mxu3  ;;  %v3345_v3 = vadd.f32 %v3337_v14, %v3292_v20 }
 0x22f   : > { %v3398_v33 = vadd.f32 %v3390_v29, %v3345_v3 }
 0x231   : > { %v3261_v55 = vpop.f32.mrf.mxu0 }
 0x232   : > { %v3295_v41 = vadd.f32 %v3294_v13, %v3261_v55 }
 0x234   : > { %v3340_v26 = vpop.f32.mrf.mxu2 }
 0x235   : > { %v3490_v53 = vpop.f32.mrf.mxu1  ;;  %v3393_v57 = vpop.f32.mrf.mxu3  ;;  %v3346_v59 = vadd.f32 %v3340_v26, %v3295_v41 }
 0x237   : > { %v3399_v44 = vadd.f32 %v3393_v57, %v3346_v59 }
 0x239   : > { %v3263_v25 = vpop.f32.mrf.mxu0 }
 0x23c   : > { %v3342_v45 = vpop.f32.mrf.mxu2 }
 0x23d   : > { %v3492_v4 = vpop.f32.mrf.mxu1  ;;  %v3395_v35 = vpop.f32.mrf.mxu3 }
 0x241   : > { %v3437_v23 = vpop.f32.mrf.mxu0 }
 0x242   : > { %v3446_v48 = vadd.f32 %v3437_v23, %v3397_v9 }
 0x244   : > { %v3499_v54 = vadd.f32 %v3490_v53, %v3446_v48  ;;  %v3539_v10 = vpop.f32.mrf.mxu2 }
 0x245   : > { %v3495_v0 = vpop.f32.mrf.mxu1  ;;  %v3592_v43 = vpop.f32.mrf.mxu3 }
 0x246   : > { %v3548_v62 = vadd.f32 %v3539_v10, %v3499_v54 }
 0x248   : > { %v3601_v58 = vadd.f32 %v3592_v43, %v3548_v62 }
 0x249   : > { %v3439_v18 = vpop.f32.mrf.mxu0 }
 0x24a   : > { %v3447_v6 = vadd.f32 %v3439_v18, %v3398_v33  ;;  %v3637_v56 = vrot.slane %v3601_v58, 2  ;;  %v3638_v12 = vrot.slane %v3601_v58, 6  ;;  %3643 = vst [vmem:[#allocation1] ss:$4 sm:$0xff] %v3601_v58  ;;  %v3604_v32 = vsel %vm5311_vm12, %v3601_v58, 0.0 }
 0x24b   : > { %v3619_v52 = vmul.f32 %v3604_v32, %v3601_v58  ;;  %v3607_v63 = vsel %vm870_vm8, %v3604_v32, 0.0 }
 0x24c   : > { %v3500_v31 = vadd.f32 %v3492_v4, %v3447_v6  ;;  %3645 = vst [vmem:[#allocation1 + $0x1] ss:$4 sm:$0xff] %v3637_v56  ;;  %v3541_v27 = vpop.f32.mrf.mxu2 }
 0x24d   : > { %3648 = vst [vmem:[#allocation1 + $0x20] ss:$4 sm:$0xff] %v3638_v12  ;;  %v3497_v36 = vpop.f32.mrf.mxu1  ;;  %v3594_v16 = vpop.f32.mrf.mxu3  ;;  %v3622_v30 = vsel %vm870_vm8, %v3619_v52, 0.0 }
 0x24e   : > { %v3549_v19 = vadd.f32 %v3541_v27, %v3500_v31 }
 0x250   : > { %v3602_v22 = vadd.f32 %v3594_v16, %v3549_v19 }
 0x251   : > { %v3442_v21 = vpop.f32.mrf.mxu0 }
 0x252   : > { %v3448_v11 = vadd.f32 %v3442_v21, %v3399_v44  ;;  %v3605_v28 = vsel %vm5349_vm15, %v3602_v22, 0.0  ;;  %v3639_v1 = vrot.slane %v3602_v22, 4  ;;  %v3640_v42 = vrot.slane %v3602_v22, 6  ;;  %3650 = vst [vmem:[#allocation1 + $0x21] ss:$4 sm:$0xff] %v3602_v22 }
 0x253   : > { %v3646_v24 = vld.sshfl [vmem:[#allocation1] sm:$0xff pattern:$0x73625140]  ;;  %v3620_v50 = vmul.f32 %v3605_v28, %v3602_v22  ;;  %v3608_v8 = vsel %vm870_vm8, %v3605_v28, 0.0 }
 0x254   : > { %v3501_v40 = vadd.f32 %v3495_v0, %v3448_v11  ;;  %v3662_v5 = vpack.c.bf16 %v3646_v24, %v3646_v24  ;;  %3652 = vst [vmem:[#allocation1] ss:$4 sm:$0xff] %v3639_v1  ;;  %v3544_v13 = vpop.f32.mrf.mxu2  ;;  %v3609_v46 = vadd.f32 %v3608_v8, %v3607_v63 }
 0x255   : > { %3653 = vst [vmem:[#allocation1 + $0x1] ss:$4 sm:$0xff] %v3640_v42  ;;  %v3623_v2 = vsel %vm870_vm8, %v3620_v50, 0.0  ;;  %v3753_v15 = vpop.f32.mrf.mxu1  ;;  %v3597_v51 = vpop.f32.mrf.mxu3 }
 0x256   : > { %v3550_v38 = vadd.f32 %v3544_v13, %v3501_v40  ;;  %v3624_v49 = vadd.f32 %v3623_v2, %v3622_v30  ;;  %4565 = vst.msk [vmem:[%s5383_s6 + $0x30] sm:$0x3] %vm930_vm10, %v3662_v5 }
 0x258   : > { %v3603_v17 = vadd.f32 %v3597_v51, %v3550_v38 }
 0x259   : > { %v3444_v14 = vpop.f32.mrf.mxu0  ;;  %v3651_v29 = vld.sshfl [vmem:[#allocation1 + $0x20] sm:$0xff pattern:$0x73625140] }
 0x25a   : > { %v3663_v55 = vpack.c.bf16 %v3651_v29, %v3651_v29  ;;  %v3606_v26 = vsel %vm5398_vm11, %v3603_v17, 0.0  ;;  %v3641_v53 = vrot.slane %v3603_v17, 2  ;;  %v3642_v57 = vrot.slane %v3603_v17, 4 }
 0x25b   : > { %v3610_v25 = vsel %vm870_vm8, %v3606_v26, 0.0  ;;  %v3621_v47 = vmul.f32 %v3606_v26, %v3603_v17 }
 0x25c   : > { %v3654_v45 = vld.sshfl [vmem:[#allocation1] sm:$0xff pattern:$0x73625140]  ;;  %v3611_v60 = vadd.f32 %v3610_v25, %v3609_v46  ;;  %3655 = vst [vmem:[#allocation1 + $0x20] ss:$4 sm:$0xff] %v3641_v53  ;;  %v3546_v4 = vpop.f32.mrf.mxu2 }
 0x25d   : > { %v3664_v9 = vpack.c.bf16 %v3654_v45, %v3654_v45  ;;  %v3625_v35 = vsel %vm870_vm8, %v3621_v47, 0.0  ;;  %3656 = vst [vmem:[#allocation1 + $0x21] ss:$4 sm:$0xff] %v3642_v57  ;;  %v3755_v23 = vpop.f32.mrf.mxu1  ;;  %v3599_v54 = vpop.f32.mrf.mxu3 }
 0x25e   : > { %v3612_v48 = vrot.slane %v3611_v60, 4  ;;  %v3626_v20 = vadd.f32 %v3625_v35, %v3624_v49  ;;  %4566 = vst.msk [vmem:[%s5383_s6 + $0x32] sm:$0x3] %vm930_vm10, %v3663_v55 }
 0x25f   : > { %4567 = vst.msk [vmem:[%s5383_s6 + $0x34] sm:$0x3] %vm930_vm10, %v3664_v9 }
 0x260   : > { %v3613_v10 = vadd.f32 %v3612_v48, %v3611_v60  ;;  %v3627_v3 = vrot.slane %v3626_v20, 4 }
 0x261   : > { %v3705_v0 = vpop.f32.mrf.mxu0 }
 0x262   : > { %v3614_v62 = vrot.slane %v3613_v10, 2  ;;  %v3628_v33 = vadd.f32 %v3627_v3, %v3626_v20  ;;  %v3754_v50 = vadd.f32 %v3753_v15, %v3705_v0 }
 0x264   : > { %v3615_v43 = vadd.f32 %v3614_v62, %v3613_v10  ;;  %v3629_v18 = vrot.slane %v3628_v33, 2  ;;  %v3657_v58 = vld.sshfl [vmem:[#allocation1 + $0x20] sm:$0xff pattern:$0x73625140]  ;;  %v3813_v41 = vpop.f32.mrf.mxu2 }
 0x265   : > { %v3665_v6 = vpack.c.bf16 %v3657_v58, %v3657_v58  ;;  %v3758_v56 = vpop.f32.mrf.mxu1  ;;  %v3852_v27 = vpop.f32.mrf.mxu3  ;;  %v3822_v63 = vadd.f32 %v3813_v41, %v3754_v50 }
 0x266   : > { %v3616_v12 = vrot.slane %v3615_v43, 1  ;;  %v3630_v31 = vadd.f32 %v3629_v18, %v3628_v33 }
 0x267   : > { %4568 = vst.msk [vmem:[%s5383_s6 + $0x36] sm:$0x3] %vm930_vm10, %v3665_v6  ;;  %v3861_v5 = vadd.f32 %v3852_v27, %v3822_v63 }
 0x268   : > { %v3617_v59 = vadd.f32 %v3616_v12, %v3615_v43  ;;  %v3631_v36 = vrot.slane %v3630_v31, 1 }
 0x269   : > { %v3707_v32 = vpop.f32.mrf.mxu0 }
 0x26a   : > { %v6321_v19 = vadd.f32 %v3617_v59, %v6295_v39  ;;  %v3632_v44 = vadd.f32 %v3631_v36, %v3630_v31  ;;  %v3756_v30 = vadd.f32 %v3755_v23, %v3707_v32 }
 0x26c   : > { %v6324_v16 = vadd.f32 %v3632_v44, %v6298_v37  ;;  %v3815_v21 = vpop.f32.mrf.mxu2 }
 0x26d   : > { %v3760_v22 = vpop.f32.mrf.mxu1  ;;  %v3854_v52 = vpop.f32.mrf.mxu3  ;;  %v3823_v38 = vadd.f32 %v3815_v21, %v3756_v30 }
 0x26f   : > { %v3862_v14 = vadd.f32 %v3854_v52, %v3823_v38 }
 0x271   : > { %v3710_v11 = vpop.f32.mrf.mxu0 }
 0x272   : > { %v3759_v26 = vadd.f32 %v3758_v56, %v3710_v11 }
 0x274   : > { %v3818_v28 = vpop.f32.mrf.mxu2 }
 0x275   : > { %v3949_v1 = vpop.f32.mrf.mxu1  ;;  %v3857_v42 = vpop.f32.mrf.mxu3  ;;  %v3824_v45 = vadd.f32 %v3818_v28, %v3759_v26 }
 0x277   : > { %v3863_v9 = vadd.f32 %v3857_v42, %v3824_v45 }
 0x279   : > { %v3712_v24 = vpop.f32.mrf.mxu0 }
 0x27c   : > { %v3820_v40 = vpop.f32.mrf.mxu2 }
 0x27d   : > { %v3951_v8 = vpop.f32.mrf.mxu1  ;;  %v3859_v13 = vpop.f32.mrf.mxu3 }
 0x281   : > { %v3915_v39 = vpop.f32.mrf.mxu0 }
 0x282   : > { %v3924_v46 = vadd.f32 %v3915_v39, %v3861_v5 }
 0x284   : > { %v3958_v2 = vadd.f32 %v3949_v1, %v3924_v46  ;;  %v4012_v37 = vpop.f32.mrf.mxu2 }
 0x285   : > { %v3954_v49 = vpop.f32.mrf.mxu1  ;;  %v4051_v17 = vpop.f32.mrf.mxu3 }
 0x286   : > { %v4021_v51 = vadd.f32 %v4012_v37, %v3958_v2 }
 0x288   : > { %v4060_v55 = vadd.f32 %v4051_v17, %v4021_v51 }
 0x289   : > { %v3917_v29 = vpop.f32.mrf.mxu0 }
 0x28a   : > { %v3925_v53 = vadd.f32 %v3917_v29, %v3862_v14  ;;  %v4096_v15 = vrot.slane %v4060_v55, 2  ;;  %v4097_v57 = vrot.slane %v4060_v55, 6  ;;  %4102 = vst [vmem:[#allocation1] ss:$4 sm:$0xff] %v4060_v55  ;;  %v4063_v33 = vsel %vm5311_vm12, %v4060_v55, 0.0 }
 0x28b   : > { %v4078_v34 = vmul.f32 %v4063_v33, %v4060_v55  ;;  %v4066_v27 = vsel %vm870_vm8, %v4063_v33, 0.0 }
 0x28c   : > { %v3959_v25 = vadd.f32 %v3951_v8, %v3925_v53  ;;  %4104 = vst [vmem:[#allocation1 + $0x1] ss:$4 sm:$0xff] %v4096_v15  ;;  %v4014_v47 = vpop.f32.mrf.mxu2 }
 0x28d   : > { %4107 = vst [vmem:[#allocation1 + $0x20] ss:$4 sm:$0xff] %v4097_v57  ;;  %v3956_v60 = vpop.f32.mrf.mxu1  ;;  %v4053_v35 = vpop.f32.mrf.mxu3  ;;  %v4081_v28 = vsel %vm870_vm8, %v4078_v34, 0.0 }
 0x28e   : > { %v4022_v4 = vadd.f32 %v4014_v47, %v3959_v25 }
 0x290   : > { %v4061_v48 = vadd.f32 %v4053_v35, %v4022_v4 }
 0x291   : > { %v3920_v23 = vpop.f32.mrf.mxu0 }
 0x292   : > { %v3926_v20 = vadd.f32 %v3920_v23, %v3863_v9  ;;  %v4064_v54 = vsel %vm5349_vm15, %v4061_v48, 0.0  ;;  %v4098_v10 = vrot.slane %v4061_v48, 4  ;;  %v4099_v3 = vrot.slane %v4061_v48, 6  ;;  %4109 = vst [vmem:[#allocation1 + $0x21] ss:$4 sm:$0xff] %v4061_v48 }
 0x293   : > { %v4105_v0 = vld.sshfl [vmem:[#allocation1] sm:$0xff pattern:$0x73625140]  ;;  %v4079_v58 = vmul.f32 %v4064_v54, %v4061_v48  ;;  %v4067_v6 = vsel %vm870_vm8, %v4064_v54, 0.0 }
 0x294   : > { %v3960_v62 = vadd.f32 %v3954_v49, %v3926_v20  ;;  %v4121_v43 = vpack.c.bf16 %v4105_v0, %v4105_v0  ;;  %4111 = vst [vmem:[#allocation1] ss:$4 sm:$0xff] %v4098_v10  ;;  %v4017_v18 = vpop.f32.mrf.mxu2  ;;  %v4068_v36 = vadd.f32 %v4067_v6, %v4066_v27 }
 0x295   : > { %4112 = vst [vmem:[#allocation1 + $0x1] ss:$4 sm:$0xff] %v4099_v3  ;;  %v4056_v56 = vpop.f32.mrf.mxu3  ;;  %v4082_v7 = vsel %vm870_vm8, %v4079_v58, 0.0 }
 0x296   : > { %v4023_v41 = vadd.f32 %v4017_v18, %v3960_v62  ;;  %4601 = vst.msk [vmem:[%s5383_s6 + $0x38] sm:$0x3] %vm930_vm10, %v4121_v43  ;;  %v4083_v24 = vadd.f32 %v4082_v7, %v4081_v28 }
 0x298   : > { %v4062_v31 = vadd.f32 %v4056_v56, %v4023_v41 }
 0x299   : > { %v3922_v12 = vpop.f32.mrf.mxu0  ;;  %v4110_v59 = vld.sshfl [vmem:[#allocation1 + $0x20] sm:$0xff pattern:$0x73625140] }
 0x29a   : > { %v4122_v32 = vpack.c.bf16 %v4110_v59, %v4110_v59  ;;  %v4065_v44 = vsel %vm5398_vm11, %v4062_v31, 0.0  ;;  %v4100_v21 = vrot.slane %v4062_v31, 2  ;;  %v4101_v22 = vrot.slane %v4062_v31, 4 }
 0x29b   : > { %v4069_v52 = vsel %vm870_vm8, %v4065_v44, 0.0  ;;  %v4080_v11 = vmul.f32 %v4065_v44, %v4062_v31 }
 0x29c   : > { %v4113_v1 = vld.sshfl [vmem:[#allocation1] sm:$0xff pattern:$0x73625140]  ;;  %v4070_v42 = vadd.f32 %v4069_v52, %v4068_v36  ;;  %4114 = vst [vmem:[#allocation1 + $0x20] ss:$4 sm:$0xff] %v4100_v21  ;;  %v4019_v50 = vpop.f32.mrf.mxu2 }
 0x29d   : > { %v4123_v40 = vpack.c.bf16 %v4113_v1, %v4113_v1  ;;  %v4084_v63 = vsel %vm870_vm8, %v4080_v11, 0.0  ;;  %4115 = vst [vmem:[#allocation1 + $0x21] ss:$4 sm:$0xff] %v4101_v22  ;;  %v4058_v5 = vpop.f32.mrf.mxu3 }
 0x29e   : > { %v4071_v61 = vrot.slane %v4070_v42, 4  ;;  %v4085_v8 = vadd.f32 %v4084_v63, %v4083_v24  ;;  %4602 = vst.msk [vmem:[%s5383_s6 + $0x3a] sm:$0x3] %vm930_vm10, %v4122_v32 }
 0x29f   : > { %4603 = vst.msk [vmem:[%s5383_s6 + $0x3c] sm:$0x3] %vm930_vm10, %v4123_v40 }
 0x2a0   : > { %v4072_v13 = vadd.f32 %v4071_v61, %v4070_v42  ;;  %v4086_v39 = vrot.slane %v4085_v8, 4 }
 0x2a2   : > { %v4073_v46 = vrot.slane %v4072_v13, 2  ;;  %v4087_v30 = vadd.f32 %v4086_v39, %v4085_v8 }
 0x2a4   : > { %v4074_v2 = vadd.f32 %v4073_v46, %v4072_v13  ;;  %v4088_v37 = vrot.slane %v4087_v30, 2  ;;  %v4116_v38 = vld.sshfl [vmem:[#allocation1 + $0x20] sm:$0xff pattern:$0x73625140] }
 0x2a5   : > { %v4124_v49 = vpack.c.bf16 %v4116_v38, %v4116_v38 }
 0x2a6   : > { %v4075_v51 = vrot.slane %v4074_v2, 1  ;;  %v4089_v14 = vadd.f32 %v4088_v37, %v4087_v30 }
 0x2a7   : > { %4604 = vst.msk [vmem:[%s5383_s6 + $0x3e] sm:$0x3] %vm930_vm10, %v4124_v49 }
 0x2a8   : > { %v4076_v17 = vadd.f32 %v4075_v51, %v4074_v2  ;;  %v4090_v29 = vrot.slane %v4089_v14, 1 }
 0x2aa   : > { %v4091_v55 = vadd.f32 %v4090_v29, %v4089_v14  ;;  %v4077_v26 = vadd.f32 %v4076_v17, %v6321_v19 }
 0x2ac   : > { %v4092_v53 = vadd.f32 %v4091_v55, %v6324_v16 }
 0x2ae   : > { %v4131_v15 = vsel %vm4130_vm0, %v4077_v26, %v4092_v53 }
 0x2af   : > { %4132 = vst.msk [vmem:[%s363_s29] sm:$0x3] %vm930_vm10, %v4131_v15 }
 0x2b0 PF: > { %s16_s22 = sadd.s32 1, %s4788_s22   ;;  %s6388_s18 = smov %s4780_s20 }
 0x2b1   : > { %p13_p10 = scmp.ge.s32.totalorder %s16_s22, 10   ;;  %s6389_s19 = smov %s4784_s21 }
 0x2b2   : > { %s6390_s20 = smov %s6393_s23  ;;  %s6391_s21 = smov %s6397_s24 }
 0x2b3   :  { %15 = sbr.rel (!%p13_p10) target bundleno = 3 (0x3), region = 178 }

</bundles_post_ra>
